<compile_context>
chip_gen: v7x
topology: tpu7x:2x2x1
jax: 0.10.0
libtpu: 0.0.40
codegen_flags: <defaults>
</compile_context>

<pallas_src>
import functools

import jax
import jax.numpy as jnp
from jax.experimental import pallas as pl
from jax.experimental.pallas import tpu as pltpu


C_PAD = 128        # lane-dense channel width (all channel dims padded to 128)
TILE_M = 128       # M-tile for the 1x1 / tail matmuls (use 256-512 for big layers)
TILE_M_UP = 256    # M-tile for the upsample matmul


# ---------------------------------------------------------------------------
# Pallas kernels
# ---------------------------------------------------------------------------
def _matmul_bn_act_kernel(x_ref, w_ref, s_ref, b_ref, o_ref, *, relu):
    # (tm, K) @ (K, Cout) on the MXU: bf16 inputs, f32 accumulate,
    # folded-BN scale/shift (+ ReLU) epilogue in f32.
    y = jnp.dot(x_ref[...], w_ref[...], preferred_element_type=jnp.float32)
    y = y * s_ref[...] + b_ref[...]
    if relu:
        y = jnp.maximum(y, 0.0)
    o_ref[...] = y.astype(o_ref.dtype)


def matmul_bn_act(x, w, scale, bias, *, relu, out_dtype=jnp.bfloat16,
                  tile_m=TILE_M):
    """1x1 conv as a matmul, tiled over M (rows), 'parallel' for megacore."""
    M, K = x.shape
    Cout = w.shape[1]
    tm = tile_m if (M % tile_m == 0) else M
    kernel = functools.partial(_matmul_bn_act_kernel, relu=relu)
    return pl.pallas_call(
        kernel,
        out_shape=jax.ShapeDtypeStruct((M, Cout), out_dtype),
        grid=(M // tm,),
        in_specs=[
            pl.BlockSpec((tm, K), lambda i: (i, 0)),
            pl.BlockSpec((K, Cout), lambda i: (0, 0)),
            pl.BlockSpec((1, Cout), lambda i: (0, 0)),
            pl.BlockSpec((1, Cout), lambda i: (0, 0)),
        ],
        out_specs=pl.BlockSpec((tm, Cout), lambda i: (i, 0)),
        compiler_params=pltpu.CompilerParams(
            dimension_semantics=("parallel",)),
    )(x, w, scale, bias)


def _conv3x3_s2_kernel(x00_ref, x01_ref, x10_ref, x11_ref,
                       w_ref, s_ref, b_ref, o_ref, *, ho, wo):
    # Phase-decomposed padded input: x{r}{c} holds padded rows r::2, cols c::2,
    # shape [ho+1, wo+1, C].  Every 3x3 / stride-2 tap is then a unit-stride
    # VMEM slice -> 9 MXU matmuls accumulated in f32 (no HBM im2col).
    phases = ((x00_ref, x01_ref), (x10_ref, x11_ref))
    cout = w_ref.shape[-1]
    acc = jnp.zeros((ho * wo, cout), jnp.float32)
    for di in range(3):
        for dj in range(3):
            ref = phases[di % 2][dj % 2]
            hg, wg = di // 2, dj // 2
            tap = ref[hg:hg + ho, wg:wg + wo, :]                 # [ho, wo, C]
            acc = acc + jnp.dot(tap.reshape(ho * wo, tap.shape[-1]),
                                w_ref[di * 3 + dj],
                                preferred_element_type=jnp.float32)
    y = acc * s_ref[...] + b_ref[...]
    o_ref[...] = jnp.maximum(y, 0.0).astype(o_ref.dtype)


def conv3x3_s2_bn_relu(x_hwc, w, scale, bias):
    """3x3 / stride-2 / pad-1 conv + folded BN + ReLU (H, W even)."""
    H, W, C = x_hwc.shape
    Ho, Wo = H // 2, W // 2
    Cout = w.shape[-1]
    xp = jnp.pad(x_hwc, ((1, 1), (1, 1), (0, 0)))                # [2Ho+2, 2Wo+2, C]
    # stride-2 phase decomposition (cheap XLA strided slices on a tiny tensor)
    phases = [xp[r::2, c::2, :] for r in (0, 1) for c in (0, 1)]
    kernel = functools.partial(_conv3x3_s2_kernel, ho=Ho, wo=Wo)
    full3 = lambda i: (0, 0, 0)
    full2 = lambda i: (0, 0)
    out = pl.pallas_call(
        kernel,
        out_shape=jax.ShapeDtypeStruct((Ho * Wo, Cout), jnp.bfloat16),
        grid=(1,),
        in_specs=[pl.BlockSpec((Ho + 1, Wo + 1, C), full3)] * 4 + [
            pl.BlockSpec((9, C, Cout), full3),
            pl.BlockSpec((1, Cout), full2),
            pl.BlockSpec((1, Cout), full2),
        ],
        out_specs=pl.BlockSpec((Ho * Wo, Cout), full2),
        compiler_params=pltpu.CompilerParams(
            dimension_semantics=("arbitrary",)),
    )(*phases, w, scale, bias)
    return out.reshape(Ho, Wo, Cout)


def _bottleneck_tail_kernel(y2_ref, sc_ref, w3_ref, s3_ref, b3_ref,
                            wc_ref, scl_ref, bcl_ref, o_ref):
    # conv3 (1x1) + BN + residual add + ReLU + classifier 1x1 + BN, all fused
    # so the bottleneck output never round-trips HBM.  Epilogue math in f32.
    y = jnp.dot(y2_ref[...], w3_ref[...], preferred_element_type=jnp.float32)
    y = y * s3_ref[...] + b3_ref[...] + sc_ref[...].astype(jnp.float32)
    z = jnp.maximum(y, 0.0).astype(jnp.bfloat16)
    logits = jnp.dot(z, wc_ref[...], preferred_element_type=jnp.float32)
    o_ref[...] = logits * scl_ref[...] + bcl_ref[...]


def bottleneck_tail(y2, shortcut, p3, pcls, *, tile_m=TILE_M):
    M, C = y2.shape
    Cout = pcls["w"].shape[1]
    tm = tile_m if (M % tile_m == 0) else M
    return pl.pallas_call(
        _bottleneck_tail_kernel,
        out_shape=jax.ShapeDtypeStruct((M, Cout), jnp.float32),
        grid=(M // tm,),
        in_specs=[
            pl.BlockSpec((tm, C), lambda i: (i, 0)),
            pl.BlockSpec((tm, C), lambda i: (i, 0)),
            pl.BlockSpec((C, C), lambda i: (0, 0)),
            pl.BlockSpec((1, C), lambda i: (0, 0)),
            pl.BlockSpec((1, C), lambda i: (0, 0)),
            pl.BlockSpec((C, Cout), lambda i: (0, 0)),
            pl.BlockSpec((1, Cout), lambda i: (0, 0)),
            pl.BlockSpec((1, Cout), lambda i: (0, 0)),
        ],
        out_specs=pl.BlockSpec((tm, Cout), lambda i: (i, 0)),
        compiler_params=pltpu.CompilerParams(
            dimension_semantics=("parallel",)),
    )(y2, shortcut, p3["w"], p3["s"], p3["b"], pcls["w"], pcls["s"], pcls["b"])


def _upsample_kernel(a_ref, f_ref, o_ref):
    o_ref[...] = jnp.dot(a_ref[...], f_ref[...],
                         preferred_element_type=jnp.float32)


def bilinear_upsample_hwc(feat_mc, ho, wo, out_h, out_w, *, tile_m=TILE_M_UP):
    """align_corners=True bilinear upsample as one Kronecker-matrix matmul.

    feat_mc: [ho*wo, C] channels-last features; returns [out_h*out_w, C]."""
    M_out = out_h * out_w
    C = feat_mc.shape[1]
    ah = _bilinear_matrix(out_h, ho)                      # [out_h, ho]
    aw = _bilinear_matrix(out_w, wo)                      # [out_w, wo]
    A = (ah[:, None, :, None] * aw[None, :, None, :]).reshape(M_out, ho * wo)
    tm = tile_m if (M_out % tile_m == 0) else M_out
    return pl.pallas_call(
        _upsample_kernel,
        out_shape=jax.ShapeDtypeStruct((M_out, C), jnp.float32),
        grid=(M_out // tm,),
        in_specs=[
            pl.BlockSpec((tm, ho * wo), lambda i: (i, 0)),
            pl.BlockSpec((ho * wo, C), lambda i: (0, 0)),
        ],
        out_specs=pl.BlockSpec((tm, C), lambda i: (i, 0)),
        compiler_params=pltpu.CompilerParams(
            dimension_semantics=("parallel",)),
    )(A, feat_mc)


# ---------------------------------------------------------------------------
# Glue: interpolation matrices, parameter init
# ---------------------------------------------------------------------------
def _bilinear_matrix(out_size, in_size):
    """Row-stochastic interpolation matrix for align_corners=True bilinear."""
    if in_size == 1 or out_size == 1:
        A = jnp.zeros((out_size, in_size), jnp.float32)
        return A.at[:, 0].set(1.0)
    dst = jnp.arange(out_size, dtype=jnp.float32)
    src = dst * (in_size - 1) / (out_size - 1)
    i0 = jnp.clip(jnp.floor(src).astype(jnp.int32), 0, in_size - 1)
    i1 = jnp.clip(i0 + 1, 0, in_size - 1)
    frac = src - i0.astype(jnp.float32)
    A = jnp.zeros((out_size, in_size), jnp.float32)
    rows = jnp.arange(out_size)
    A = A.at[rows, i0].add(1.0 - frac)
    A = A.at[rows, i1].add(frac)
    return A


def _conv_param(key, taps, cin, cout):
    kw_, ks, kb = jax.random.split(key, 3)
    shape = (taps, cin, cout) if taps > 1 else (cin, cout)
    w = 0.1 * jax.random.normal(kw_, shape, jnp.float32)
    s = 1.0 + 0.05 * jax.random.normal(ks, (1, cout), jnp.float32)
    b = 0.05 * jax.random.normal(kb, (1, cout), jnp.float32)
    return dict(w=w.astype(jnp.bfloat16), s=s, b=b)   # bf16 weights, f32 BN


def init_params(key, num_classes):
    del num_classes  # classifier kept channel-padded to C_PAD; sliced at the end
    keys = jax.random.split(key, 6)
    return dict(
        stem=_conv_param(keys[0], 9, C_PAD, C_PAD),      # 3x3 /2
        b_conv1=_conv_param(keys[1], 1, C_PAD, C_PAD),   # 1x1
        b_conv2=_conv_param(keys[2], 9, C_PAD, C_PAD),   # 3x3 /2
        b_conv3=_conv_param(keys[3], 1, C_PAD, C_PAD),   # 1x1
        b_short=_conv_param(keys[4], 1, C_PAD, C_PAD),   # 1x1 /2 projection
        cls=_conv_param(keys[5], 1, C_PAD, C_PAD),       # 1x1 classifier (padded)
    )


# ---------------------------------------------------------------------------
# WrappedResnet101.forward
# ---------------------------------------------------------------------------
def wrapped_resnet101_forward(x_nchw, params, input_size, num_classes):
    """x_nchw: [N, 3, H, W] -> [input_size[0], input_size[1], num_classes]."""
    # The wrapper only consumes output[0]; inference with folded BN is
    # per-sample independent, so slice the batch up front (halves all work).
    x = jnp.transpose(x_nchw[0], (1, 2, 0)).astype(jnp.float32)      # [H, W, 3]
    H, W, cin = x.shape
    # lane-dense: zero-pad input channels to C_PAD; bf16 at the MXU inputs
    x = jnp.pad(x, ((0, 0), (0, 0), (0, C_PAD - cin))).astype(jnp.bfloat16)

    # --- reduced ResNet-style backbone (stand-in for resnet101) -------------
    p = params["stem"]
    h = conv3x3_s2_bn_relu(x, p["w"], p["s"], p["b"])               # [H/2, W/2, C]
    Hs, Ws, _ = h.shape

    p = params["b_conv1"]
    y1 = matmul_bn_act(h.reshape(Hs * Ws, C_PAD), p["w"], p["s"], p["b"],
                       relu=True)                                    # [Hs*Ws, C]
    p = params["b_conv2"]
    y2 = conv3x3_s2_bn_relu(y1.reshape(Hs, Ws, C_PAD),
                            p["w"], p["s"], p["b"])                  # [Hs/2, Ws/2, C]
    Ho, Wo, _ = y2.shape

    p = params["b_short"]
    sc = matmul_bn_act(h[::2, ::2, :].reshape(Ho * Wo, C_PAD),
                       p["w"], p["s"], p["b"], relu=False)           # [Ho*Wo, C]

    # conv3 + BN + residual add + ReLU + classifier 1x1, fused in one kernel
    logits = bottleneck_tail(y2.reshape(Ho * Wo, C_PAD), sc,
                             params["b_conv3"], params["cls"])       # [Ho*Wo, C] f32

    # --- wrapper semantics: bilinear upsample (align_corners=True) ----------
    up = bilinear_upsample_hwc(logits, Ho, Wo, input_size[0], input_size[1])
    # channels-last throughout == permute(1, 2, 0) of PyTorch's CHW output;
    # drop the lane-padding channels only now (after the per-channel upsample).
    return up.reshape(input_size[0], input_size[1], C_PAD)[..., :num_classes]


if __name__ == "__main__":
    num_classes = 8
    input_size = (32, 32)

    key = jax.random.PRNGKey(0)
    kx, kp = jax.random.split(key)
    x = jax.random.normal(kx, (2, 3, 32, 32), dtype=jnp.float32)     # NCHW
    params = init_params(kp, num_classes)

    fwd = jax.jit(functools.partial(wrapped_resnet101_forward,
                                    input_size=input_size,
                                    num_classes=num_classes))
    out = fwd(x, params)
    out = jax.block_until_ready(out)
    assert out.shape == (input_size[0], input_size[1], num_classes), out.shape
    assert out.dtype == jnp.float32
    print("KERNEL_OK")
</pallas_src>

<mosaic_0001>
module attributes {stable_mosaic.version = 11 : i64} {
  func.func private @main(%arg0: i32) attributes {dimension_semantics = [#tpu.dimension_semantics<core_parallel>], iteration_bounds = array<i64: 2>, tpu.core_type = #tpu.core_type<sc_scalar_subcore>, window_params = []} {
    return
  }
}

module attributes {stable_mosaic.version = 11 : i64} {
  func.func private @main(%arg0: i32) attributes {dimension_semantics = [#tpu.dimension_semantics<core_parallel>], iteration_bounds = array<i64: 2>, tpu.core_type = #tpu.core_type<sc_scalar_subcore>, window_params = []} {
    return
  }
}

module attributes {stable_mosaic.version = 11 : i64} {
  func.func @_conv3x3_s2_kernel(%arg0: i32, %arg1: memref<17x17x128xbf16, #tpu.memory_space<vmem>>, %arg2: memref<17x17x128xbf16, #tpu.memory_space<vmem>>, %arg3: memref<17x17x128xbf16, #tpu.memory_space<vmem>>, %arg4: memref<17x17x128xbf16, #tpu.memory_space<vmem>>, %arg5: memref<9x128x128xbf16, #tpu.memory_space<vmem>>, %arg6: memref<1x128xf32, #tpu.memory_space<vmem>>, %arg7: memref<1x128xf32, #tpu.memory_space<vmem>>, %arg8: memref<256x128xbf16, #tpu.memory_space<vmem>>) attributes {dimension_semantics = [#tpu.dimension_semantics<arbitrary>], iteration_bounds = array<i64: 1>, scalar_prefetch = 0 : i64, scratch_operands = 0 : i64, tpu.core_type = #tpu.core_type<tc>, window_params = [{pipeline_mode = #tpu.pipeline_mode<synchronous>, transform_indices = @transform_0, window_bounds = array<i64: 17, 17, 128>}, {pipeline_mode = #tpu.pipeline_mode<synchronous>, transform_indices = @transform_1, window_bounds = array<i64: 17, 17, 128>}, {pipeline_mode = #tpu.pipeline_mode<synchronous>, transform_indices = @transform_2, window_bounds = array<i64: 17, 17, 128>}, {pipeline_mode = #tpu.pipeline_mode<synchronous>, transform_indices = @transform_3, window_bounds = array<i64: 17, 17, 128>}, {pipeline_mode = #tpu.pipeline_mode<synchronous>, transform_indices = @transform_4, window_bounds = array<i64: 9, 128, 128>}, {pipeline_mode = #tpu.pipeline_mode<synchronous>, transform_indices = @transform_5, window_bounds = array<i64: 1, 128>}, {pipeline_mode = #tpu.pipeline_mode<synchronous>, transform_indices = @transform_6, window_bounds = array<i64: 1, 128>}, {pipeline_mode = #tpu.pipeline_mode<synchronous>, transform_indices = @transform_7, window_bounds = array<i64: 256, 128>}]} {
    %cst = arith.constant 0.000000e+00 : f32
    %0 = vector.broadcast %cst : f32 to vector<256x128xf32>
    %c0 = arith.constant 0 : index
    %c0_0 = arith.constant 0 : index
    %c0_1 = arith.constant 0 : index
    %1 = vector.load %arg1[%c0, %c0_0, %c0_1] : memref<17x17x128xbf16, #tpu.memory_space<vmem>>, vector<16x16x128xbf16>
    %2 = vector.shape_cast %1 : vector<16x16x128xbf16> to vector<256x128xbf16>
    %c0_2 = arith.constant 0 : index
    %c0_3 = arith.constant 0 : index
    %c0_4 = arith.constant 0 : index
    %3 = vector.load %arg5[%c0_2, %c0_3, %c0_4] : memref<9x128x128xbf16, #tpu.memory_space<vmem>>, vector<1x128x128xbf16>
    %4 = vector.shape_cast %3 : vector<1x128x128xbf16> to vector<128x128xbf16>
    %cst_5 = arith.constant dense<0.000000e+00> : vector<256x128xf32>
    %5 = tpu.matmul %2, %4, %cst_5 {dimension_numbers = #tpu.dot_dimension_numbers<[1], [0], [0], [1], [0, 0, 1, 1], [], []>} : vector<256x128xbf16>, vector<128x128xbf16>, vector<256x128xf32> -> vector<256x128xf32>
    %6 = arith.addf %0, %5 : vector<256x128xf32>
    %c0_6 = arith.constant 0 : index
    %c0_7 = arith.constant 0 : index
    %c0_8 = arith.constant 0 : index
    %7 = vector.load %arg2[%c0_6, %c0_7, %c0_8] : memref<17x17x128xbf16, #tpu.memory_space<vmem>>, vector<16x16x128xbf16>
    %8 = vector.shape_cast %7 : vector<16x16x128xbf16> to vector<256x128xbf16>
    %c1 = arith.constant 1 : index
    %c0_9 = arith.constant 0 : index
    %c0_10 = arith.constant 0 : index
    %9 = vector.load %arg5[%c1, %c0_9, %c0_10] : memref<9x128x128xbf16, #tpu.memory_space<vmem>>, vector<1x128x128xbf16>
    %10 = vector.shape_cast %9 : vector<1x128x128xbf16> to vector<128x128xbf16>
    %cst_11 = arith.constant dense<0.000000e+00> : vector<256x128xf32>
    %11 = tpu.matmul %8, %10, %cst_11 {dimension_numbers = #tpu.dot_dimension_numbers<[1], [0], [0], [1], [0, 0, 1, 1], [], []>} : vector<256x128xbf16>, vector<128x128xbf16>, vector<256x128xf32> -> vector<256x128xf32>
    %12 = arith.addf %6, %11 : vector<256x128xf32>
    %c0_12 = arith.constant 0 : index
    %c1_13 = arith.constant 1 : index
    %c0_14 = arith.constant 0 : index
    %13 = vector.load %arg1[%c0_12, %c1_13, %c0_14] : memref<17x17x128xbf16, #tpu.memory_space<vmem>>, vector<16x16x128xbf16>
    %14 = vector.shape_cast %13 : vector<16x16x128xbf16> to vector<256x128xbf16>
    %c2 = arith.constant 2 : index
    %c0_15 = arith.constant 0 : index
    %c0_16 = arith.constant 0 : index
    %15 = vector.load %arg5[%c2, %c0_15, %c0_16] : memref<9x128x128xbf16, #tpu.memory_space<vmem>>, vector<1x128x128xbf16>
    %16 = vector.shape_cast %15 : vector<1x128x128xbf16> to vector<128x128xbf16>
    %cst_17 = arith.constant dense<0.000000e+00> : vector<256x128xf32>
    %17 = tpu.matmul %14, %16, %cst_17 {dimension_numbers = #tpu.dot_dimension_numbers<[1], [0], [0], [1], [0, 0, 1, 1], [], []>} : vector<256x128xbf16>, vector<128x128xbf16>, vector<256x128xf32> -> vector<256x128xf32>
    %18 = arith.addf %12, %17 : vector<256x128xf32>
    %c0_18 = arith.constant 0 : index
    %c0_19 = arith.constant 0 : index
    %c0_20 = arith.constant 0 : index
    %19 = vector.load %arg3[%c0_18, %c0_19, %c0_20] : memref<17x17x128xbf16, #tpu.memory_space<vmem>>, vector<16x16x128xbf16>
    %20 = vector.shape_cast %19 : vector<16x16x128xbf16> to vector<256x128xbf16>
    %c3 = arith.constant 3 : index
    %c0_21 = arith.constant 0 : index
    %c0_22 = arith.constant 0 : index
    %21 = vector.load %arg5[%c3, %c0_21, %c0_22] : memref<9x128x128xbf16, #tpu.memory_space<vmem>>, vector<1x128x128xbf16>
    %22 = vector.shape_cast %21 : vector<1x128x128xbf16> to vector<128x128xbf16>
    %cst_23 = arith.constant dense<0.000000e+00> : vector<256x128xf32>
    %23 = tpu.matmul %20, %22, %cst_23 {dimension_numbers = #tpu.dot_dimension_numbers<[1], [0], [0], [1], [0, 0, 1, 1], [], []>} : vector<256x128xbf16>, vector<128x128xbf16>, vector<256x128xf32> -> vector<256x128xf32>
    %24 = arith.addf %18, %23 : vector<256x128xf32>
    %c0_24 = arith.constant 0 : index
    %c0_25 = arith.constant 0 : index
    %c0_26 = arith.constant 0 : index
    %25 = vector.load %arg4[%c0_24, %c0_25, %c0_26] : memref<17x17x128xbf16, #tpu.memory_space<vmem>>, vector<16x16x128xbf16>
    %26 = vector.shape_cast %25 : vector<16x16x128xbf16> to vector<256x128xbf16>
    %c4 = arith.constant 4 : index
    %c0_27 = arith.constant 0 : index
    %c0_28 = arith.constant 0 : index
    %27 = vector.load %arg5[%c4, %c0_27, %c0_28] : memref<9x128x128xbf16, #tpu.memory_space<vmem>>, vector<1x128x128xbf16>
    %28 = vector.shape_cast %27 : vector<1x128x128xbf16> to vector<128x128xbf16>
    %cst_29 = arith.constant dense<0.000000e+00> : vector<256x128xf32>
    %29 = tpu.matmul %26, %28, %cst_29 {dimension_numbers = #tpu.dot_dimension_numbers<[1], [0], [0], [1], [0, 0, 1, 1], [], []>} : vector<256x128xbf16>, vector<128x128xbf16>, vector<256x128xf32> -> vector<256x128xf32>
    %30 = arith.addf %24, %29 : vector<256x128xf32>
    %c0_30 = arith.constant 0 : index
    %c1_31 = arith.constant 1 : index
    %c0_32 = arith.constant 0 : index
    %31 = vector.load %arg3[%c0_30, %c1_31, %c0_32] : memref<17x17x128xbf16, #tpu.memory_space<vmem>>, vector<16x16x128xbf16>
    %32 = vector.shape_cast %31 : vector<16x16x128xbf16> to vector<256x128xbf16>
    %c5 = arith.constant 5 : index
    %c0_33 = arith.constant 0 : index
    %c0_34 = arith.constant 0 : index
    %33 = vector.load %arg5[%c5, %c0_33, %c0_34] : memref<9x128x128xbf16, #tpu.memory_space<vmem>>, vector<1x128x128xbf16>
    %34 = vector.shape_cast %33 : vector<1x128x128xbf16> to vector<128x128xbf16>
    %cst_35 = arith.constant dense<0.000000e+00> : vector<256x128xf32>
    %35 = tpu.matmul %32, %34, %cst_35 {dimension_numbers = #tpu.dot_dimension_numbers<[1], [0], [0], [1], [0, 0, 1, 1], [], []>} : vector<256x128xbf16>, vector<128x128xbf16>, vector<256x128xf32> -> vector<256x128xf32>
    %36 = arith.addf %30, %35 : vector<256x128xf32>
    %c1_36 = arith.constant 1 : index
    %c0_37 = arith.constant 0 : index
    %c0_38 = arith.constant 0 : index
    %37 = vector.load %arg1[%c1_36, %c0_37, %c0_38] : memref<17x17x128xbf16, #tpu.memory_space<vmem>>, vector<16x16x128xbf16>
    %38 = vector.shape_cast %37 : vector<16x16x128xbf16> to vector<256x128xbf16>
    %c6 = arith.constant 6 : index
    %c0_39 = arith.constant 0 : index
    %c0_40 = arith.constant 0 : index
    %39 = vector.load %arg5[%c6, %c0_39, %c0_40] : memref<9x128x128xbf16, #tpu.memory_space<vmem>>, vector<1x128x128xbf16>
    %40 = vector.shape_cast %39 : vector<1x128x128xbf16> to vector<128x128xbf16>
    %cst_41 = arith.constant dense<0.000000e+00> : vector<256x128xf32>
    %41 = tpu.matmul %38, %40, %cst_41 {dimension_numbers = #tpu.dot_dimension_numbers<[1], [0], [0], [1], [0, 0, 1, 1], [], []>} : vector<256x128xbf16>, vector<128x128xbf16>, vector<256x128xf32> -> vector<256x128xf32>
    %42 = arith.addf %36, %41 : vector<256x128xf32>
    %c1_42 = arith.constant 1 : index
    %c0_43 = arith.constant 0 : index
    %c0_44 = arith.constant 0 : index
    %43 = vector.load %arg2[%c1_42, %c0_43, %c0_44] : memref<17x17x128xbf16, #tpu.memory_space<vmem>>, vector<16x16x128xbf16>
    %44 = vector.shape_cast %43 : vector<16x16x128xbf16> to vector<256x128xbf16>
    %c7 = arith.constant 7 : index
    %c0_45 = arith.constant 0 : index
    %c0_46 = arith.constant 0 : index
    %45 = vector.load %arg5[%c7, %c0_45, %c0_46] : memref<9x128x128xbf16, #tpu.memory_space<vmem>>, vector<1x128x128xbf16>
    %46 = vector.shape_cast %45 : vector<1x128x128xbf16> to vector<128x128xbf16>
    %cst_47 = arith.constant dense<0.000000e+00> : vector<256x128xf32>
    %47 = tpu.matmul %44, %46, %cst_47 {dimension_numbers = #tpu.dot_dimension_numbers<[1], [0], [0], [1], [0, 0, 1, 1], [], []>} : vector<256x128xbf16>, vector<128x128xbf16>, vector<256x128xf32> -> vector<256x128xf32>
    %48 = arith.addf %42, %47 : vector<256x128xf32>
    %c1_48 = arith.constant 1 : index
    %c1_49 = arith.constant 1 : index
    %c0_50 = arith.constant 0 : index
    %49 = vector.load %arg1[%c1_48, %c1_49, %c0_50] : memref<17x17x128xbf16, #tpu.memory_space<vmem>>, vector<16x16x128xbf16>
    %50 = vector.shape_cast %49 : vector<16x16x128xbf16> to vector<256x128xbf16>
    %c8 = arith.constant 8 : index
    %c0_51 = arith.constant 0 : index
    %c0_52 = arith.constant 0 : index
    %51 = vector.load %arg5[%c8, %c0_51, %c0_52] : memref<9x128x128xbf16, #tpu.memory_space<vmem>>, vector<1x128x128xbf16>
    %52 = vector.shape_cast %51 : vector<1x128x128xbf16> to vector<128x128xbf16>
    %cst_53 = arith.constant dense<0.000000e+00> : vector<256x128xf32>
    %53 = tpu.matmul %50, %52, %cst_53 {dimension_numbers = #tpu.dot_dimension_numbers<[1], [0], [0], [1], [0, 0, 1, 1], [], []>} : vector<256x128xbf16>, vector<128x128xbf16>, vector<256x128xf32> -> vector<256x128xf32>
    %54 = arith.addf %48, %53 : vector<256x128xf32>
    %c0_54 = arith.constant 0 : index
    %c0_55 = arith.constant 0 : index
    %55 = vector.load %arg6[%c0_54, %c0_55] : memref<1x128xf32, #tpu.memory_space<vmem>>, vector<1x128xf32>
    %56 = vector.broadcast %55 : vector<1x128xf32> to vector<256x128xf32>
    %57 = arith.mulf %54, %56 : vector<256x128xf32>
    %c0_56 = arith.constant 0 : index
    %c0_57 = arith.constant 0 : index
    %58 = vector.load %arg7[%c0_56, %c0_57] : memref<1x128xf32, #tpu.memory_space<vmem>>, vector<1x128xf32>
    %59 = vector.broadcast %58 : vector<1x128xf32> to vector<256x128xf32>
    %60 = arith.addf %57, %59 : vector<256x128xf32>
    %cst_58 = arith.constant 0.000000e+00 : f32
    %61 = vector.broadcast %cst_58 : f32 to vector<256x128xf32>
    %62 = arith.maximumf %60, %61 : vector<256x128xf32>
    %63 = arith.truncf %62 : vector<256x128xf32> to vector<256x128xbf16>
    %c0_59 = arith.constant 0 : index
    %c0_60 = arith.constant 0 : index
    %64 = vector.load %arg8[%c0_59, %c0_60] : memref<256x128xbf16, #tpu.memory_space<vmem>>, vector<256x128xbf16>
    tpu.vector_store %arg8[%c0_59, %c0_60], %63 {strides = array<i32>} : memref<256x128xbf16, #tpu.memory_space<vmem>>, vector<256x128xbf16>,
    return
  }
  func.func @transform_0(%arg0: i32) -> (i32, i32, i32) {
    %c0_i32 = arith.constant 0 : i32
    %c0_i32_0 = arith.constant 0 : i32
    %c0_i32_1 = arith.constant 0 : i32
    %c0_i32_2 = arith.constant 0 : i32
    return %c0_i32, %c0_i32_0, %c0_i32_1 : i32, i32, i32
  }
  func.func @transform_1(%arg0: i32) -> (i32, i32, i32) {
    %c0_i32 = arith.constant 0 : i32
    %c0_i32_0 = arith.constant 0 : i32
    %c0_i32_1 = arith.constant 0 : i32
    %c0_i32_2 = arith.constant 0 : i32
    return %c0_i32, %c0_i32_0, %c0_i32_1 : i32, i32, i32
  }
  func.func @transform_2(%arg0: i32) -> (i32, i32, i32) {
    %c0_i32 = arith.constant 0 : i32
    %c0_i32_0 = arith.constant 0 : i32
    %c0_i32_1 = arith.constant 0 : i32
    %c0_i32_2 = arith.constant 0 : i32
    return %c0_i32, %c0_i32_0, %c0_i32_1 : i32, i32, i32
  }
  func.func @transform_3(%arg0: i32) -> (i32, i32, i32) {
    %c0_i32 = arith.constant 0 : i32
    %c0_i32_0 = arith.constant 0 : i32
    %c0_i32_1 = arith.constant 0 : i32
    %c0_i32_2 = arith.constant 0 : i32
    return %c0_i32, %c0_i32_0, %c0_i32_1 : i32, i32, i32
  }
  func.func @transform_4(%arg0: i32) -> (i32, i32, i32) {
    %c0_i32 = arith.constant 0 : i32
    %c0_i32_0 = arith.constant 0 : i32
    %c0_i32_1 = arith.constant 0 : i32
    %c0_i32_2 = arith.constant 0 : i32
    return %c0_i32, %c0_i32_0, %c0_i32_1 : i32, i32, i32
  }
  func.func @transform_5(%arg0: i32) -> (i32, i32) {
    %c0_i32 = arith.constant 0 : i32
    %c0_i32_0 = arith.constant 0 : i32
    %c0_i32_1 = arith.constant 0 : i32
    return %c0_i32, %c0_i32_0 : i32, i32
  }
  func.func @transform_6(%arg0: i32) -> (i32, i32) {
    %c0_i32 = arith.constant 0 : i32
    %c0_i32_0 = arith.constant 0 : i32
    %c0_i32_1 = arith.constant 0 : i32
    return %c0_i32, %c0_i32_0 : i32, i32
  }
  func.func @transform_7(%arg0: i32) -> (i32, i32) {
    %c0_i32 = arith.constant 0 : i32
    %c0_i32_0 = arith.constant 0 : i32
    %c0_i32_1 = arith.constant 0 : i32
    return %c0_i32, %c0_i32_0 : i32, i32
  }
}

module attributes {stable_mosaic.version = 11 : i64} {
  func.func @_matmul_bn_act_kernel(%arg0: i32, %arg1: memref<128x128xbf16, #tpu.memory_space<vmem>>, %arg2: memref<128x128xbf16, #tpu.memory_space<vmem>>, %arg3: memref<1x128xf32, #tpu.memory_space<vmem>>, %arg4: memref<1x128xf32, #tpu.memory_space<vmem>>, %arg5: memref<128x128xbf16, #tpu.memory_space<vmem>>) attributes {dimension_semantics = [#tpu.dimension_semantics<parallel>], iteration_bounds = array<i64: 2>, scalar_prefetch = 0 : i64, scratch_operands = 0 : i64, tpu.core_type = #tpu.core_type<tc>, window_params = [{transform_indices = @transform_0, window_bounds = array<i64: 128, 128>}, {pipeline_mode = #tpu.pipeline_mode<synchronous>, transform_indices = @transform_1, window_bounds = array<i64: 128, 128>}, {pipeline_mode = #tpu.pipeline_mode<synchronous>, transform_indices = @transform_2, window_bounds = array<i64: 1, 128>}, {pipeline_mode = #tpu.pipeline_mode<synchronous>, transform_indices = @transform_3, window_bounds = array<i64: 1, 128>}, {transform_indices = @transform_4, window_bounds = array<i64: 128, 128>}]} {
    %c0 = arith.constant 0 : index
    %c0_0 = arith.constant 0 : index
    %0 = vector.load %arg1[%c0, %c0_0] : memref<128x128xbf16, #tpu.memory_space<vmem>>, vector<128x128xbf16>
    %c0_1 = arith.constant 0 : index
    %c0_2 = arith.constant 0 : index
    %1 = vector.load %arg2[%c0_1, %c0_2] : memref<128x128xbf16, #tpu.memory_space<vmem>>, vector<128x128xbf16>
    %cst = arith.constant dense<0.000000e+00> : vector<128x128xf32>
    %2 = tpu.matmul %0, %1, %cst {dimension_numbers = #tpu.dot_dimension_numbers<[1], [0], [0], [1], [0, 0, 1, 1], [], []>} : vector<128x128xbf16>, vector<128x128xbf16>, vector<128x128xf32> -> vector<128x128xf32>
    %c0_3 = arith.constant 0 : index
    %c0_4 = arith.constant 0 : index
    %3 = vector.load %arg3[%c0_3, %c0_4] : memref<1x128xf32, #tpu.memory_space<vmem>>, vector<1x128xf32>
    %4 = vector.broadcast %3 : vector<1x128xf32> to vector<128x128xf32>
    %5 = arith.mulf %2, %4 : vector<128x128xf32>
    %c0_5 = arith.constant 0 : index
    %c0_6 = arith.constant 0 : index
    %6 = vector.load %arg4[%c0_5, %c0_6] : memref<1x128xf32, #tpu.memory_space<vmem>>, vector<1x128xf32>
    %7 = vector.broadcast %6 : vector<1x128xf32> to vector<128x128xf32>
    %8 = arith.addf %5, %7 : vector<128x128xf32>
    %cst_7 = arith.constant 0.000000e+00 : f32
    %9 = vector.broadcast %cst_7 : f32 to vector<128x128xf32>
    %10 = arith.maximumf %8, %9 : vector<128x128xf32>
    %11 = arith.truncf %10 : vector<128x128xf32> to vector<128x128xbf16>
    %c0_8 = arith.constant 0 : index
    %c0_9 = arith.constant 0 : index
    %12 = vector.load %arg5[%c0_8, %c0_9] : memref<128x128xbf16, #tpu.memory_space<vmem>>, vector<128x128xbf16>
    tpu.vector_store %arg5[%c0_8, %c0_9], %11 {strides = array<i32>} : memref<128x128xbf16, #tpu.memory_space<vmem>>, vector<128x128xbf16>,
    return
  }
  func.func @transform_0(%arg0: i32) -> (i32, i32) {
    %c0_i32 = arith.constant 0 : i32
    %c0_i32_0 = arith.constant 0 : i32
    return %arg0, %c0_i32 : i32, i32
  }
  func.func @transform_1(%arg0: i32) -> (i32, i32) {
    %c0_i32 = arith.constant 0 : i32
    %c0_i32_0 = arith.constant 0 : i32
    %c0_i32_1 = arith.constant 0 : i32
    return %c0_i32, %c0_i32_0 : i32, i32
  }
  func.func @transform_2(%arg0: i32) -> (i32, i32) {
    %c0_i32 = arith.constant 0 : i32
    %c0_i32_0 = arith.constant 0 : i32
    %c0_i32_1 = arith.constant 0 : i32
    return %c0_i32, %c0_i32_0 : i32, i32
  }
  func.func @transform_3(%arg0: i32) -> (i32, i32) {
    %c0_i32 = arith.constant 0 : i32
    %c0_i32_0 = arith.constant 0 : i32
    %c0_i32_1 = arith.constant 0 : i32
    return %c0_i32, %c0_i32_0 : i32, i32
  }
  func.func @transform_4(%arg0: i32) -> (i32, i32) {
    %c0_i32 = arith.constant 0 : i32
    %c0_i32_0 = arith.constant 0 : i32
    return %arg0, %c0_i32 : i32, i32
  }
}

module attributes {stable_mosaic.version = 11 : i64} {
  func.func @_conv3x3_s2_kernel(%arg0: i32, %arg1: memref<9x9x128xbf16, #tpu.memory_space<vmem>>, %arg2: memref<9x9x128xbf16, #tpu.memory_space<vmem>>, %arg3: memref<9x9x128xbf16, #tpu.memory_space<vmem>>, %arg4: memref<9x9x128xbf16, #tpu.memory_space<vmem>>, %arg5: memref<9x128x128xbf16, #tpu.memory_space<vmem>>, %arg6: memref<1x128xf32, #tpu.memory_space<vmem>>, %arg7: memref<1x128xf32, #tpu.memory_space<vmem>>, %arg8: memref<64x128xbf16, #tpu.memory_space<vmem>>) attributes {dimension_semantics = [#tpu.dimension_semantics<arbitrary>], iteration_bounds = array<i64: 1>, scalar_prefetch = 0 : i64, scratch_operands = 0 : i64, tpu.core_type = #tpu.core_type<tc>, window_params = [{pipeline_mode = #tpu.pipeline_mode<synchronous>, transform_indices = @transform_0, window_bounds = array<i64: 9, 9, 128>}, {pipeline_mode = #tpu.pipeline_mode<synchronous>, transform_indices = @transform_1, window_bounds = array<i64: 9, 9, 128>}, {pipeline_mode = #tpu.pipeline_mode<synchronous>, transform_indices = @transform_2, window_bounds = array<i64: 9, 9, 128>}, {pipeline_mode = #tpu.pipeline_mode<synchronous>, transform_indices = @transform_3, window_bounds = array<i64: 9, 9, 128>}, {pipeline_mode = #tpu.pipeline_mode<synchronous>, transform_indices = @transform_4, window_bounds = array<i64: 9, 128, 128>}, {pipeline_mode = #tpu.pipeline_mode<synchronous>, transform_indices = @transform_5, window_bounds = array<i64: 1, 128>}, {pipeline_mode = #tpu.pipeline_mode<synchronous>, transform_indices = @transform_6, window_bounds = array<i64: 1, 128>}, {pipeline_mode = #tpu.pipeline_mode<synchronous>, transform_indices = @transform_7, window_bounds = array<i64: 64, 128>}]} {
    %cst = arith.constant 0.000000e+00 : f32
    %0 = vector.broadcast %cst : f32 to vector<64x128xf32>
    %c0 = arith.constant 0 : index
    %c0_0 = arith.constant 0 : index
    %c0_1 = arith.constant 0 : index
    %1 = vector.load %arg1[%c0, %c0_0, %c0_1] : memref<9x9x128xbf16, #tpu.memory_space<vmem>>, vector<8x8x128xbf16>
    %2 = vector.shape_cast %1 : vector<8x8x128xbf16> to vector<64x128xbf16>
    %c0_2 = arith.constant 0 : index
    %c0_3 = arith.constant 0 : index
    %c0_4 = arith.constant 0 : index
    %3 = vector.load %arg5[%c0_2, %c0_3, %c0_4] : memref<9x128x128xbf16, #tpu.memory_space<vmem>>, vector<1x128x128xbf16>
    %4 = vector.shape_cast %3 : vector<1x128x128xbf16> to vector<128x128xbf16>
    %cst_5 = arith.constant dense<0.000000e+00> : vector<64x128xf32>
    %5 = tpu.matmul %2, %4, %cst_5 {dimension_numbers = #tpu.dot_dimension_numbers<[1], [0], [0], [1], [0, 0, 1, 1], [], []>} : vector<64x128xbf16>, vector<128x128xbf16>, vector<64x128xf32> -> vector<64x128xf32>
    %6 = arith.addf %0, %5 : vector<64x128xf32>
    %c0_6 = arith.constant 0 : index
    %c0_7 = arith.constant 0 : index
    %c0_8 = arith.constant 0 : index
    %7 = vector.load %arg2[%c0_6, %c0_7, %c0_8] : memref<9x9x128xbf16, #tpu.memory_space<vmem>>, vector<8x8x128xbf16>
    %8 = vector.shape_cast %7 : vector<8x8x128xbf16> to vector<64x128xbf16>
    %c1 = arith.constant 1 : index
    %c0_9 = arith.constant 0 : index
    %c0_10 = arith.constant 0 : index
    %9 = vector.load %arg5[%c1, %c0_9, %c0_10] : memref<9x128x128xbf16, #tpu.memory_space<vmem>>, vector<1x128x128xbf16>
    %10 = vector.shape_cast %9 : vector<1x128x128xbf16> to vector<128x128xbf16>
    %cst_11 = arith.constant dense<0.000000e+00> : vector<64x128xf32>
    %11 = tpu.matmul %8, %10, %cst_11 {dimension_numbers = #tpu.dot_dimension_numbers<[1], [0], [0], [1], [0, 0, 1, 1], [], []>} : vector<64x128xbf16>, vector<128x128xbf16>, vector<64x128xf32> -> vector<64x128xf32>
    %12 = arith.addf %6, %11 : vector<64x128xf32>
    %c0_12 = arith.constant 0 : index
    %c1_13 = arith.constant 1 : index
    %c0_14 = arith.constant 0 : index
    %13 = vector.load %arg1[%c0_12, %c1_13, %c0_14] : memref<9x9x128xbf16, #tpu.memory_space<vmem>>, vector<8x8x128xbf16>
    %14 = vector.shape_cast %13 : vector<8x8x128xbf16> to vector<64x128xbf16>
    %c2 = arith.constant 2 : index
    %c0_15 = arith.constant 0 : index
    %c0_16 = arith.constant 0 : index
    %15 = vector.load %arg5[%c2, %c0_15, %c0_16] : memref<9x128x128xbf16, #tpu.memory_space<vmem>>, vector<1x128x128xbf16>
    %16 = vector.shape_cast %15 : vector<1x128x128xbf16> to vector<128x128xbf16>
    %cst_17 = arith.constant dense<0.000000e+00> : vector<64x128xf32>
    %17 = tpu.matmul %14, %16, %cst_17 {dimension_numbers = #tpu.dot_dimension_numbers<[1], [0], [0], [1], [0, 0, 1, 1], [], []>} : vector<64x128xbf16>, vector<128x128xbf16>, vector<64x128xf32> -> vector<64x128xf32>
    %18 = arith.addf %12, %17 : vector<64x128xf32>
    %c0_18 = arith.constant 0 : index
    %c0_19 = arith.constant 0 : index
    %c0_20 = arith.constant 0 : index
    %19 = vector.load %arg3[%c0_18, %c0_19, %c0_20] : memref<9x9x128xbf16, #tpu.memory_space<vmem>>, vector<8x8x128xbf16>
    %20 = vector.shape_cast %19 : vector<8x8x128xbf16> to vector<64x128xbf16>
    %c3 = arith.constant 3 : index
    %c0_21 = arith.constant 0 : index
    %c0_22 = arith.constant 0 : index
    %21 = vector.load %arg5[%c3, %c0_21, %c0_22] : memref<9x128x128xbf16, #tpu.memory_space<vmem>>, vector<1x128x128xbf16>
    %22 = vector.shape_cast %21 : vector<1x128x128xbf16> to vector<128x128xbf16>
    %cst_23 = arith.constant dense<0.000000e+00> : vector<64x128xf32>
    %23 = tpu.matmul %20, %22, %cst_23 {dimension_numbers = #tpu.dot_dimension_numbers<[1], [0], [0], [1], [0, 0, 1, 1], [], []>} : vector<64x128xbf16>, vector<128x128xbf16>, vector<64x128xf32> -> vector<64x128xf32>
    %24 = arith.addf %18, %23 : vector<64x128xf32>
    %c0_24 = arith.constant 0 : index
    %c0_25 = arith.constant 0 : index
    %c0_26 = arith.constant 0 : index
    %25 = vector.load %arg4[%c0_24, %c0_25, %c0_26] : memref<9x9x128xbf16, #tpu.memory_space<vmem>>, vector<8x8x128xbf16>
    %26 = vector.shape_cast %25 : vector<8x8x128xbf16> to vector<64x128xbf16>
    %c4 = arith.constant 4 : index
    %c0_27 = arith.constant 0 : index
    %c0_28 = arith.constant 0 : index
    %27 = vector.load %arg5[%c4, %c0_27, %c0_28] : memref<9x128x128xbf16, #tpu.memory_space<vmem>>, vector<1x128x128xbf16>
    %28 = vector.shape_cast %27 : vector<1x128x128xbf16> to vector<128x128xbf16>
    %cst_29 = arith.constant dense<0.000000e+00> : vector<64x128xf32>
    %29 = tpu.matmul %26, %28, %cst_29 {dimension_numbers = #tpu.dot_dimension_numbers<[1], [0], [0], [1], [0, 0, 1, 1], [], []>} : vector<64x128xbf16>, vector<128x128xbf16>, vector<64x128xf32> -> vector<64x128xf32>
    %30 = arith.addf %24, %29 : vector<64x128xf32>
    %c0_30 = arith.constant 0 : index
    %c1_31 = arith.constant 1 : index
    %c0_32 = arith.constant 0 : index
    %31 = vector.load %arg3[%c0_30, %c1_31, %c0_32] : memref<9x9x128xbf16, #tpu.memory_space<vmem>>, vector<8x8x128xbf16>
    %32 = vector.shape_cast %31 : vector<8x8x128xbf16> to vector<64x128xbf16>
    %c5 = arith.constant 5 : index
    %c0_33 = arith.constant 0 : index
    %c0_34 = arith.constant 0 : index
    %33 = vector.load %arg5[%c5, %c0_33, %c0_34] : memref<9x128x128xbf16, #tpu.memory_space<vmem>>, vector<1x128x128xbf16>
    %34 = vector.shape_cast %33 : vector<1x128x128xbf16> to vector<128x128xbf16>
    %cst_35 = arith.constant dense<0.000000e+00> : vector<64x128xf32>
    %35 = tpu.matmul %32, %34, %cst_35 {dimension_numbers = #tpu.dot_dimension_numbers<[1], [0], [0], [1], [0, 0, 1, 1], [], []>} : vector<64x128xbf16>, vector<128x128xbf16>, vector<64x128xf32> -> vector<64x128xf32>
    %36 = arith.addf %30, %35 : vector<64x128xf32>
    %c1_36 = arith.constant 1 : index
    %c0_37 = arith.constant 0 : index
    %c0_38 = arith.constant 0 : index
    %37 = vector.load %arg1[%c1_36, %c0_37, %c0_38] : memref<9x9x128xbf16, #tpu.memory_space<vmem>>, vector<8x8x128xbf16>
    %38 = vector.shape_cast %37 : vector<8x8x128xbf16> to vector<64x128xbf16>
    %c6 = arith.constant 6 : index
    %c0_39 = arith.constant 0 : index
    %c0_40 = arith.constant 0 : index
    %39 = vector.load %arg5[%c6, %c0_39, %c0_40] : memref<9x128x128xbf16, #tpu.memory_space<vmem>>, vector<1x128x128xbf16>
    %40 = vector.shape_cast %39 : vector<1x128x128xbf16> to vector<128x128xbf16>
    %cst_41 = arith.constant dense<0.000000e+00> : vector<64x128xf32>
    %41 = tpu.matmul %38, %40, %cst_41 {dimension_numbers = #tpu.dot_dimension_numbers<[1], [0], [0], [1], [0, 0, 1, 1], [], []>} : vector<64x128xbf16>, vector<128x128xbf16>, vector<64x128xf32> -> vector<64x128xf32>
    %42 = arith.addf %36, %41 : vector<64x128xf32>
    %c1_42 = arith.constant 1 : index
    %c0_43 = arith.constant 0 : index
    %c0_44 = arith.constant 0 : index
    %43 = vector.load %arg2[%c1_42, %c0_43, %c0_44] : memref<9x9x128xbf16, #tpu.memory_space<vmem>>, vector<8x8x128xbf16>
    %44 = vector.shape_cast %43 : vector<8x8x128xbf16> to vector<64x128xbf16>
    %c7 = arith.constant 7 : index
    %c0_45 = arith.constant 0 : index
    %c0_46 = arith.constant 0 : index
    %45 = vector.load %arg5[%c7, %c0_45, %c0_46] : memref<9x128x128xbf16, #tpu.memory_space<vmem>>, vector<1x128x128xbf16>
    %46 = vector.shape_cast %45 : vector<1x128x128xbf16> to vector<128x128xbf16>
    %cst_47 = arith.constant dense<0.000000e+00> : vector<64x128xf32>
    %47 = tpu.matmul %44, %46, %cst_47 {dimension_numbers = #tpu.dot_dimension_numbers<[1], [0], [0], [1], [0, 0, 1, 1], [], []>} : vector<64x128xbf16>, vector<128x128xbf16>, vector<64x128xf32> -> vector<64x128xf32>
    %48 = arith.addf %42, %47 : vector<64x128xf32>
    %c1_48 = arith.constant 1 : index
    %c1_49 = arith.constant 1 : index
    %c0_50 = arith.constant 0 : index
    %49 = vector.load %arg1[%c1_48, %c1_49, %c0_50] : memref<9x9x128xbf16, #tpu.memory_space<vmem>>, vector<8x8x128xbf16>
    %50 = vector.shape_cast %49 : vector<8x8x128xbf16> to vector<64x128xbf16>
    %c8 = arith.constant 8 : index
    %c0_51 = arith.constant 0 : index
    %c0_52 = arith.constant 0 : index
    %51 = vector.load %arg5[%c8, %c0_51, %c0_52] : memref<9x128x128xbf16, #tpu.memory_space<vmem>>, vector<1x128x128xbf16>
    %52 = vector.shape_cast %51 : vector<1x128x128xbf16> to vector<128x128xbf16>
    %cst_53 = arith.constant dense<0.000000e+00> : vector<64x128xf32>
    %53 = tpu.matmul %50, %52, %cst_53 {dimension_numbers = #tpu.dot_dimension_numbers<[1], [0], [0], [1], [0, 0, 1, 1], [], []>} : vector<64x128xbf16>, vector<128x128xbf16>, vector<64x128xf32> -> vector<64x128xf32>
    %54 = arith.addf %48, %53 : vector<64x128xf32>
    %c0_54 = arith.constant 0 : index
    %c0_55 = arith.constant 0 : index
    %55 = vector.load %arg6[%c0_54, %c0_55] : memref<1x128xf32, #tpu.memory_space<vmem>>, vector<1x128xf32>
    %56 = vector.broadcast %55 : vector<1x128xf32> to vector<64x128xf32>
    %57 = arith.mulf %54, %56 : vector<64x128xf32>
    %c0_56 = arith.constant 0 : index
    %c0_57 = arith.constant 0 : index
    %58 = vector.load %arg7[%c0_56, %c0_57] : memref<1x128xf32, #tpu.memory_space<vmem>>, vector<1x128xf32>
    %59 = vector.broadcast %58 : vector<1x128xf32> to vector<64x128xf32>
    %60 = arith.addf %57, %59 : vector<64x128xf32>
    %cst_58 = arith.constant 0.000000e+00 : f32
    %61 = vector.broadcast %cst_58 : f32 to vector<64x128xf32>
    %62 = arith.maximumf %60, %61 : vector<64x128xf32>
    %63 = arith.truncf %62 : vector<64x128xf32> to vector<64x128xbf16>
    %c0_59 = arith.constant 0 : index
    %c0_60 = arith.constant 0 : index
    %64 = vector.load %arg8[%c0_59, %c0_60] : memref<64x128xbf16, #tpu.memory_space<vmem>>, vector<64x128xbf16>
    tpu.vector_store %arg8[%c0_59, %c0_60], %63 {strides = array<i32>} : memref<64x128xbf16, #tpu.memory_space<vmem>>, vector<64x128xbf16>,
    return
  }
  func.func @transform_0(%arg0: i32) -> (i32, i32, i32) {
    %c0_i32 = arith.constant 0 : i32
    %c0_i32_0 = arith.constant 0 : i32
    %c0_i32_1 = arith.constant 0 : i32
    %c0_i32_2 = arith.constant 0 : i32
    return %c0_i32, %c0_i32_0, %c0_i32_1 : i32, i32, i32
  }
  func.func @transform_1(%arg0: i32) -> (i32, i32, i32) {
    %c0_i32 = arith.constant 0 : i32
    %c0_i32_0 = arith.constant 0 : i32
    %c0_i32_1 = arith.constant 0 : i32
    %c0_i32_2 = arith.constant 0 : i32
    return %c0_i32, %c0_i32_0, %c0_i32_1 : i32, i32, i32
  }
  func.func @transform_2(%arg0: i32) -> (i32, i32, i32) {
    %c0_i32 = arith.constant 0 : i32
    %c0_i32_0 = arith.constant 0 : i32
    %c0_i32_1 = arith.constant 0 : i32
    %c0_i32_2 = arith.constant 0 : i32
    return %c0_i32, %c0_i32_0, %c0_i32_1 : i32, i32, i32
  }
  func.func @transform_3(%arg0: i32) -> (i32, i32, i32) {
    %c0_i32 = arith.constant 0 : i32
    %c0_i32_0 = arith.constant 0 : i32
    %c0_i32_1 = arith.constant 0 : i32
    %c0_i32_2 = arith.constant 0 : i32
    return %c0_i32, %c0_i32_0, %c0_i32_1 : i32, i32, i32
  }
  func.func @transform_4(%arg0: i32) -> (i32, i32, i32) {
    %c0_i32 = arith.constant 0 : i32
    %c0_i32_0 = arith.constant 0 : i32
    %c0_i32_1 = arith.constant 0 : i32
    %c0_i32_2 = arith.constant 0 : i32
    return %c0_i32, %c0_i32_0, %c0_i32_1 : i32, i32, i32
  }
  func.func @transform_5(%arg0: i32) -> (i32, i32) {
    %c0_i32 = arith.constant 0 : i32
    %c0_i32_0 = arith.constant 0 : i32
    %c0_i32_1 = arith.constant 0 : i32
    return %c0_i32, %c0_i32_0 : i32, i32
  }
  func.func @transform_6(%arg0: i32) -> (i32, i32) {
    %c0_i32 = arith.constant 0 : i32
    %c0_i32_0 = arith.constant 0 : i32
    %c0_i32_1 = arith.constant 0 : i32
    return %c0_i32, %c0_i32_0 : i32, i32
  }
  func.func @transform_7(%arg0: i32) -> (i32, i32) {
    %c0_i32 = arith.constant 0 : i32
    %c0_i32_0 = arith.constant 0 : i32
    %c0_i32_1 = arith.constant 0 : i32
    return %c0_i32, %c0_i32_0 : i32, i32
  }
}

module attributes {stable_mosaic.version = 11 : i64} {
  func.func @_matmul_bn_act_kernel(%arg0: i32, %arg1: memref<64x128xbf16, #tpu.memory_space<vmem>>, %arg2: memref<128x128xbf16, #tpu.memory_space<vmem>>, %arg3: memref<1x128xf32, #tpu.memory_space<vmem>>, %arg4: memref<1x128xf32, #tpu.memory_space<vmem>>, %arg5: memref<64x128xbf16, #tpu.memory_space<vmem>>) attributes {dimension_semantics = [#tpu.dimension_semantics<parallel>], iteration_bounds = array<i64: 1>, scalar_prefetch = 0 : i64, scratch_operands = 0 : i64, tpu.core_type = #tpu.core_type<tc>, window_params = [{transform_indices = @transform_0, window_bounds = array<i64: 64, 128>}, {pipeline_mode = #tpu.pipeline_mode<synchronous>, transform_indices = @transform_1, window_bounds = array<i64: 128, 128>}, {pipeline_mode = #tpu.pipeline_mode<synchronous>, transform_indices = @transform_2, window_bounds = array<i64: 1, 128>}, {pipeline_mode = #tpu.pipeline_mode<synchronous>, transform_indices = @transform_3, window_bounds = array<i64: 1, 128>}, {transform_indices = @transform_4, window_bounds = array<i64: 64, 128>}]} {
    %c0 = arith.constant 0 : index
    %c0_0 = arith.constant 0 : index
    %0 = vector.load %arg1[%c0, %c0_0] : memref<64x128xbf16, #tpu.memory_space<vmem>>, vector<64x128xbf16>
    %c0_1 = arith.constant 0 : index
    %c0_2 = arith.constant 0 : index
    %1 = vector.load %arg2[%c0_1, %c0_2] : memref<128x128xbf16, #tpu.memory_space<vmem>>, vector<128x128xbf16>
    %cst = arith.constant dense<0.000000e+00> : vector<64x128xf32>
    %2 = tpu.matmul %0, %1, %cst {dimension_numbers = #tpu.dot_dimension_numbers<[1], [0], [0], [1], [0, 0, 1, 1], [], []>} : vector<64x128xbf16>, vector<128x128xbf16>, vector<64x128xf32> -> vector<64x128xf32>
    %c0_3 = arith.constant 0 : index
    %c0_4 = arith.constant 0 : index
    %3 = vector.load %arg3[%c0_3, %c0_4] : memref<1x128xf32, #tpu.memory_space<vmem>>, vector<1x128xf32>
    %4 = vector.broadcast %3 : vector<1x128xf32> to vector<64x128xf32>
    %5 = arith.mulf %2, %4 : vector<64x128xf32>
    %c0_5 = arith.constant 0 : index
    %c0_6 = arith.constant 0 : index
    %6 = vector.load %arg4[%c0_5, %c0_6] : memref<1x128xf32, #tpu.memory_space<vmem>>, vector<1x128xf32>
    %7 = vector.broadcast %6 : vector<1x128xf32> to vector<64x128xf32>
    %8 = arith.addf %5, %7 : vector<64x128xf32>
    %9 = arith.truncf %8 : vector<64x128xf32> to vector<64x128xbf16>
    %c0_7 = arith.constant 0 : index
    %c0_8 = arith.constant 0 : index
    %10 = vector.load %arg5[%c0_7, %c0_8] : memref<64x128xbf16, #tpu.memory_space<vmem>>, vector<64x128xbf16>
    tpu.vector_store %arg5[%c0_7, %c0_8], %9 {strides = array<i32>} : memref<64x128xbf16, #tpu.memory_space<vmem>>, vector<64x128xbf16>,
    return
  }
  func.func @transform_0(%arg0: i32) -> (i32, i32) {
    %c0_i32 = arith.constant 0 : i32
    %c0_i32_0 = arith.constant 0 : i32
    return %arg0, %c0_i32 : i32, i32
  }
  func.func @transform_1(%arg0: i32) -> (i32, i32) {
    %c0_i32 = arith.constant 0 : i32
    %c0_i32_0 = arith.constant 0 : i32
    %c0_i32_1 = arith.constant 0 : i32
    return %c0_i32, %c0_i32_0 : i32, i32
  }
  func.func @transform_2(%arg0: i32) -> (i32, i32) {
    %c0_i32 = arith.constant 0 : i32
    %c0_i32_0 = arith.constant 0 : i32
    %c0_i32_1 = arith.constant 0 : i32
    return %c0_i32, %c0_i32_0 : i32, i32
  }
  func.func @transform_3(%arg0: i32) -> (i32, i32) {
    %c0_i32 = arith.constant 0 : i32
    %c0_i32_0 = arith.constant 0 : i32
    %c0_i32_1 = arith.constant 0 : i32
    return %c0_i32, %c0_i32_0 : i32, i32
  }
  func.func @transform_4(%arg0: i32) -> (i32, i32) {
    %c0_i32 = arith.constant 0 : i32
    %c0_i32_0 = arith.constant 0 : i32
    return %arg0, %c0_i32 : i32, i32
  }
}

module attributes {stable_mosaic.version = 11 : i64} {
  func.func @_bottleneck_tail_kernel(%arg0: i32, %arg1: memref<64x128xbf16, #tpu.memory_space<vmem>>, %arg2: memref<64x128xbf16, #tpu.memory_space<vmem>>, %arg3: memref<128x128xbf16, #tpu.memory_space<vmem>>, %arg4: memref<1x128xf32, #tpu.memory_space<vmem>>, %arg5: memref<1x128xf32, #tpu.memory_space<vmem>>, %arg6: memref<128x128xbf16, #tpu.memory_space<vmem>>, %arg7: memref<1x128xf32, #tpu.memory_space<vmem>>, %arg8: memref<1x128xf32, #tpu.memory_space<vmem>>, %arg9: memref<64x128xf32, #tpu.memory_space<vmem>>) attributes {dimension_semantics = [#tpu.dimension_semantics<parallel>], iteration_bounds = array<i64: 1>, scalar_prefetch = 0 : i64, scratch_operands = 0 : i64, tpu.core_type = #tpu.core_type<tc>, window_params = [{transform_indices = @transform_0, window_bounds = array<i64: 64, 128>}, {transform_indices = @transform_1, window_bounds = array<i64: 64, 128>}, {pipeline_mode = #tpu.pipeline_mode<synchronous>, transform_indices = @transform_2, window_bounds = array<i64: 128, 128>}, {pipeline_mode = #tpu.pipeline_mode<synchronous>, transform_indices = @transform_3, window_bounds = array<i64: 1, 128>}, {pipeline_mode = #tpu.pipeline_mode<synchronous>, transform_indices = @transform_4, window_bounds = array<i64: 1, 128>}, {pipeline_mode = #tpu.pipeline_mode<synchronous>, transform_indices = @transform_5, window_bounds = array<i64: 128, 128>}, {pipeline_mode = #tpu.pipeline_mode<synchronous>, transform_indices = @transform_6, window_bounds = array<i64: 1, 128>}, {pipeline_mode = #tpu.pipeline_mode<synchronous>, transform_indices = @transform_7, window_bounds = array<i64: 1, 128>}, {transform_indices = @transform_8, window_bounds = array<i64: 64, 128>}]} {
    %c0 = arith.constant 0 : index
    %c0_0 = arith.constant 0 : index
    %0 = vector.load %arg1[%c0, %c0_0] : memref<64x128xbf16, #tpu.memory_space<vmem>>, vector<64x128xbf16>
    %c0_1 = arith.constant 0 : index
    %c0_2 = arith.constant 0 : index
    %1 = vector.load %arg3[%c0_1, %c0_2] : memref<128x128xbf16, #tpu.memory_space<vmem>>, vector<128x128xbf16>
    %cst = arith.constant dense<0.000000e+00> : vector<64x128xf32>
    %2 = tpu.matmul %0, %1, %cst {dimension_numbers = #tpu.dot_dimension_numbers<[1], [0], [0], [1], [0, 0, 1, 1], [], []>} : vector<64x128xbf16>, vector<128x128xbf16>, vector<64x128xf32> -> vector<64x128xf32>
    %c0_3 = arith.constant 0 : index
    %c0_4 = arith.constant 0 : index
    %3 = vector.load %arg4[%c0_3, %c0_4] : memref<1x128xf32, #tpu.memory_space<vmem>>, vector<1x128xf32>
    %4 = vector.broadcast %3 : vector<1x128xf32> to vector<64x128xf32>
    %5 = arith.mulf %2, %4 : vector<64x128xf32>
    %c0_5 = arith.constant 0 : index
    %c0_6 = arith.constant 0 : index
    %6 = vector.load %arg5[%c0_5, %c0_6] : memref<1x128xf32, #tpu.memory_space<vmem>>, vector<1x128xf32>
    %7 = vector.broadcast %6 : vector<1x128xf32> to vector<64x128xf32>
    %8 = arith.addf %5, %7 : vector<64x128xf32>
    %c0_7 = arith.constant 0 : index
    %c0_8 = arith.constant 0 : index
    %9 = vector.load %arg2[%c0_7, %c0_8] : memref<64x128xbf16, #tpu.memory_space<vmem>>, vector<64x128xbf16>
    %10 = arith.extf %9 : vector<64x128xbf16> to vector<64x128xf32>
    %11 = arith.addf %8, %10 : vector<64x128xf32>
    %cst_9 = arith.constant 0.000000e+00 : f32
    %12 = vector.broadcast %cst_9 : f32 to vector<64x128xf32>
    %13 = arith.maximumf %11, %12 : vector<64x128xf32>
    %14 = arith.truncf %13 : vector<64x128xf32> to vector<64x128xbf16>
    %c0_10 = arith.constant 0 : index
    %c0_11 = arith.constant 0 : index
    %15 = vector.load %arg6[%c0_10, %c0_11] : memref<128x128xbf16, #tpu.memory_space<vmem>>, vector<128x128xbf16>
    %cst_12 = arith.constant dense<0.000000e+00> : vector<64x128xf32>
    %16 = tpu.matmul %14, %15, %cst_12 {dimension_numbers = #tpu.dot_dimension_numbers<[1], [0], [0], [1], [0, 0, 1, 1], [], []>} : vector<64x128xbf16>, vector<128x128xbf16>, vector<64x128xf32> -> vector<64x128xf32>
    %c0_13 = arith.constant 0 : index
    %c0_14 = arith.constant 0 : index
    %17 = vector.load %arg7[%c0_13, %c0_14] : memref<1x128xf32, #tpu.memory_space<vmem>>, vector<1x128xf32>
    %18 = vector.broadcast %17 : vector<1x128xf32> to vector<64x128xf32>
    %19 = arith.mulf %16, %18 : vector<64x128xf32>
    %c0_15 = arith.constant 0 : index
    %c0_16 = arith.constant 0 : index
    %20 = vector.load %arg8[%c0_15, %c0_16] : memref<1x128xf32, #tpu.memory_space<vmem>>, vector<1x128xf32>
    %21 = vector.broadcast %20 : vector<1x128xf32> to vector<64x128xf32>
    %22 = arith.addf %19, %21 : vector<64x128xf32>
    %c0_17 = arith.constant 0 : index
    %c0_18 = arith.constant 0 : index
    %23 = vector.load %arg9[%c0_17, %c0_18] : memref<64x128xf32, #tpu.memory_space<vmem>>, vector<64x128xf32>
    tpu.vector_store %arg9[%c0_17, %c0_18], %22 {strides = array<i32>} : memref<64x128xf32, #tpu.memory_space<vmem>>, vector<64x128xf32>,
    return
  }
  func.func @transform_0(%arg0: i32) -> (i32, i32) {
    %c0_i32 = arith.constant 0 : i32
    %c0_i32_0 = arith.constant 0 : i32
    return %arg0, %c0_i32 : i32, i32
  }
  func.func @transform_1(%arg0: i32) -> (i32, i32) {
    %c0_i32 = arith.constant 0 : i32
    %c0_i32_0 = arith.constant 0 : i32
    return %arg0, %c0_i32 : i32, i32
  }
  func.func @transform_2(%arg0: i32) -> (i32, i32) {
    %c0_i32 = arith.constant 0 : i32
    %c0_i32_0 = arith.constant 0 : i32
    %c0_i32_1 = arith.constant 0 : i32
    return %c0_i32, %c0_i32_0 : i32, i32
  }
  func.func @transform_3(%arg0: i32) -> (i32, i32) {
    %c0_i32 = arith.constant 0 : i32
    %c0_i32_0 = arith.constant 0 : i32
    %c0_i32_1 = arith.constant 0 : i32
    return %c0_i32, %c0_i32_0 : i32, i32
  }
  func.func @transform_4(%arg0: i32) -> (i32, i32) {
    %c0_i32 = arith.constant 0 : i32
    %c0_i32_0 = arith.constant 0 : i32
    %c0_i32_1 = arith.constant 0 : i32
    return %c0_i32, %c0_i32_0 : i32, i32
  }
  func.func @transform_5(%arg0: i32) -> (i32, i32) {
    %c0_i32 = arith.constant 0 : i32
    %c0_i32_0 = arith.constant 0 : i32
    %c0_i32_1 = arith.constant 0 : i32
    return %c0_i32, %c0_i32_0 : i32, i32
  }
  func.func @transform_6(%arg0: i32) -> (i32, i32) {
    %c0_i32 = arith.constant 0 : i32
    %c0_i32_0 = arith.constant 0 : i32
    %c0_i32_1 = arith.constant 0 : i32
    return %c0_i32, %c0_i32_0 : i32, i32
  }
  func.func @transform_7(%arg0: i32) -> (i32, i32) {
    %c0_i32 = arith.constant 0 : i32
    %c0_i32_0 = arith.constant 0 : i32
    %c0_i32_1 = arith.constant 0 : i32
    return %c0_i32, %c0_i32_0 : i32, i32
  }
  func.func @transform_8(%arg0: i32) -> (i32, i32) {
    %c0_i32 = arith.constant 0 : i32
    %c0_i32_0 = arith.constant 0 : i32
    return %arg0, %c0_i32 : i32, i32
  }
}

module attributes {stable_mosaic.version = 11 : i64} {
  func.func @_upsample_kernel(%arg0: i32, %arg1: memref<256x64xf32, #tpu.memory_space<vmem>>, %arg2: memref<64x128xf32, #tpu.memory_space<vmem>>, %arg3: memref<256x128xf32, #tpu.memory_space<vmem>>) attributes {dimension_semantics = [#tpu.dimension_semantics<parallel>], iteration_bounds = array<i64: 4>, scalar_prefetch = 0 : i64, scratch_operands = 0 : i64, tpu.core_type = #tpu.core_type<tc>, window_params = [{transform_indices = @transform_0, window_bounds = array<i64: 256, 64>}, {pipeline_mode = #tpu.pipeline_mode<synchronous>, transform_indices = @transform_1, window_bounds = array<i64: 64, 128>}, {transform_indices = @transform_2, window_bounds = array<i64: 256, 128>}]} {
    %c0 = arith.constant 0 : index
    %c0_0 = arith.constant 0 : index
    %0 = vector.load %arg1[%c0, %c0_0] : memref<256x64xf32, #tpu.memory_space<vmem>>, vector<256x64xf32>
    %c0_1 = arith.constant 0 : index
    %c0_2 = arith.constant 0 : index
    %1 = vector.load %arg2[%c0_1, %c0_2] : memref<64x128xf32, #tpu.memory_space<vmem>>, vector<64x128xf32>
    %cst = arith.constant dense<0.000000e+00> : vector<256x128xf32>
    %2 = tpu.matmul %0, %1, %cst {dimension_numbers = #tpu.dot_dimension_numbers<[1], [0], [0], [1], [0, 0, 1, 1], [], []>} : vector<256x64xf32>, vector<64x128xf32>, vector<256x128xf32> -> vector<256x128xf32>
    %c0_3 = arith.constant 0 : index
    %c0_4 = arith.constant 0 : index
    %3 = vector.load %arg3[%c0_3, %c0_4] : memref<256x128xf32, #tpu.memory_space<vmem>>, vector<256x128xf32>
    tpu.vector_store %arg3[%c0_3, %c0_4], %2 {strides = array<i32>} : memref<256x128xf32, #tpu.memory_space<vmem>>, vector<256x128xf32>,
    return
  }
  func.func @transform_0(%arg0: i32) -> (i32, i32) {
    %c0_i32 = arith.constant 0 : i32
    %c0_i32_0 = arith.constant 0 : i32
    return %arg0, %c0_i32 : i32, i32
  }
  func.func @transform_1(%arg0: i32) -> (i32, i32) {
    %c0_i32 = arith.constant 0 : i32
    %c0_i32_0 = arith.constant 0 : i32
    %c0_i32_1 = arith.constant 0 : i32
    return %c0_i32, %c0_i32_0 : i32, i32
  }
  func.func @transform_2(%arg0: i32) -> (i32, i32) {
    %c0_i32 = arith.constant 0 : i32
    %c0_i32_0 = arith.constant 0 : i32
    return %arg0, %c0_i32 : i32, i32
  }
}

</mosaic_0001>

<bundles_post_ra>
// kernel: wrapped_resnet101_forward.7
= control target key start
LH: loop header
LB: loop body
LE: loop exit
PB: predicated region body
PF: predicated region fallthrough
CT: control target
= control target key end

     0   :  { %s854_s15 = smov 0   ;;  %s946_s0 = inlined_call_operand.vmem [shape: bf16[256,128], index: 0, kind: input, shape index: {}]   ;;  %s947_s1 = inlined_call_operand.vmem [shape: bf16[128,128], index: 1, kind: input, shape index: {}]   ;;  %s948_s2 = inlined_call_operand.vmem [shape: f32[1,128], index: 2, kind: input, shape index: {}]   ;;  %s949_s3 = inlined_call_operand.vmem [shape: f32[1,128], index: 3, kind: input, shape index: {}]   ;;  %s950_s4 = inlined_call_operand.vmem [shape: bf16[256,128], index: 4, kind: output, shape index: {}]  }
   0x1 LB: > { %s625_s16 = sadd.s32 4294967295, %s827_s15   ;;  %p629_p0 = scmp.ge.s32.totalorder %s827_s15, 1  ;;  %s827_s15 = sphi %s854_s15, %s14_s15  }
   0x2   : > { %p163_p1 = scmp.lt.s32.totalorder %s827_s15, 3 }
   0x4   : > { %p164_p2 = pnand %p629_p0, %p163_p1 }
   0x5   : > { %v805_v0 = vld [vmem:[%s947_s1] sm:$0xff] (!%p164_p2)   ;;  %s630_s19 = sshll.u32 (!%p164_p2), %s625_s16, 4  ;;  %v806_v1 = vld [vmem:[%s947_s1 + $0x8] sm:$0xff] (!%p164_p2)   ;;  %v807_v2 = vld [vmem:[%s947_s1 + $0x10] sm:$0xff] (!%p164_p2)  }
   0x6   : > { %167 = sbr.rel (%p164_p2) target bundleno = 271 (0x10f), region = 36  ;;  %p190_p3 = scmp.lt.s32.totalorder (!%p164_p2), %s630_s19, 31  ;;  %749 = vmatprep.subr.bf16.mxu0 (!%p164_p2), %v805_v0  ;;  %781 = vmatprep.subr.bf16.mxu1 (!%p164_p2), %v805_v0  ;;  %v808_v3 = vld [vmem:[%s947_s1 + $0x18] sm:$0xff] (!%p164_p2)   ;;  %v809_v6 = vld [vmem:[%s947_s1 + $0x20] sm:$0xff] (!%p164_p2)   ;;  %v810_v7 = vld [vmem:[%s947_s1 + $0x28] sm:$0xff] (!%p164_p2)  }
   0x7   : > { %750 = vmatpush3.bf16.msra.mxu0 (!%p164_p2), %v805_v0  ;;  %789 = vmatpush3.bf16.msra.mxu1 (!%p164_p2), %v805_v0  ;;  %v811_v8 = vld [vmem:[%s947_s1 + $0x30] sm:$0xff] (!%p164_p2)   ;;  %v812_v9 = vld [vmem:[%s947_s1 + $0x38] sm:$0xff] (!%p164_p2)   ;;  %v650_v16 = vld [vmem:[%s948_s2] ss:$0 sm:$0xff] (!%p164_p2) }
   0x8   : > { %751 = vmatprep.subr.bf16.mxu0 (!%p164_p2), %v806_v1  ;;  %782 = vmatprep.subr.bf16.mxu1 (!%p164_p2), %v806_v1  ;;  %v910_v18 = vld [vmem:[%s949_s3] ss:$0 sm:$0xff] (!%p164_p2) }
   0xb   : > { %752 = vmatpush3.bf16.msra.mxu0 (!%p164_p2), %v806_v1  ;;  %790 = vmatpush3.bf16.msra.mxu1 (!%p164_p2), %v806_v1 }
   0xc   : > { %753 = vmatprep.subr.bf16.mxu0 (!%p164_p2), %v807_v2  ;;  %783 = vmatprep.subr.bf16.mxu1 (!%p164_p2), %v807_v2 }
   0xd   : > { %s952_s19 = smov (!%p190_p3, %s630_s19), 31 }
   0xe   : > { %s631_s24 = sshll.u32 %s952_s19, 2 }
   0xf   : > { %s879_s27 = scalar_lea.vmem %s946_s0, %s631_s24  ;;  %754 = vmatpush3.bf16.msra.mxu0 %v807_v2  ;;  %791 = vmatpush3.bf16.msra.mxu1 %v807_v2  ;;  %s925_s20 = scalar_lea.vmem %s950_s4, %s631_s24 }
  0x10   : > { %v813_v4 = vld [vmem:[%s879_s27] sm:$0xff]   ;;  %755 = vmatprep.subr.bf16.mxu0 %v808_v3  ;;  %784 = vmatprep.subr.bf16.mxu1 %v808_v3  ;;  %v815_v10 = vld [vmem:[%s879_s27 + $0x8] sm:$0xff]   ;;  %v817_v12 = vld [vmem:[%s879_s27 + $0x10] sm:$0xff]  }
  0x11   : > { %v814_v5 = vld [vmem:[%s879_s27 + $0x20] sm:$0xff]   ;;  %765 = vmatprep.mubr.bf16.mxu0 %v813_v4  ;;  %v816_v11 = vld [vmem:[%s879_s27 + $0x28] sm:$0xff]   ;;  %v818_v13 = vld [vmem:[%s879_s27 + $0x30] sm:$0xff]  }
  0x12   : > { %773 = vmatprep.mubr.bf16.mxu1 %v814_v5  ;;  %v819_v14 = vld [vmem:[%s879_s27 + $0x18] sm:$0xff]  }
  0x13   : > { %756 = vmatpush3.bf16.msra.mxu0 %v808_v3  ;;  %792 = vmatpush3.bf16.msra.mxu1 %v808_v3  ;;  %v820_v15 = vld [vmem:[%s879_s27 + $0x38] sm:$0xff]  }
  0x14   : > { %757 = vmatprep.subr.bf16.mxu0 %v809_v6  ;;  %785 = vmatprep.subr.bf16.mxu1 %v809_v6 }
  0x17   : > { %758 = vmatpush3.bf16.msra.mxu0 %v809_v6  ;;  %793 = vmatpush3.bf16.msra.mxu1 %v809_v6 }
  0x18   : > { %759 = vmatprep.subr.bf16.mxu0 %v810_v7  ;;  %786 = vmatprep.subr.bf16.mxu1 %v810_v7 }
  0x1b   : > { %760 = vmatpush3.bf16.msra.mxu0 %v810_v7  ;;  %794 = vmatpush3.bf16.msra.mxu1 %v810_v7 }
  0x1c   : > { %761 = vmatprep.subr.bf16.mxu0 %v811_v8  ;;  %787 = vmatprep.subr.bf16.mxu1 %v811_v8 }
  0x1f   : > { %762 = vmatpush3.bf16.msra.mxu0 %v811_v8  ;;  %795 = vmatpush3.bf16.msra.mxu1 %v811_v8 }
  0x20   : > { %763 = vmatprep.subr.bf16.mxu0 %v812_v9  ;;  %788 = vmatprep.subr.bf16.mxu1 %v812_v9 }
  0x23   : > { %764 = vmatpush3.bf16.msra.mxu0 %v812_v9  ;;  %796 = vmatpush3.bf16.msra.mxu1 %v812_v9 }
  0x26   : > { %766 = vmatmul.mubr.bf16.vlgmr.msra.gmra.mrb[0].mxu0 %v815_v10  ;;  %774 = vmatmul.mubr.bf16.vlgmr.msra.gmra.mrb[0].mxu1 %v816_v11 }
  0x27   : > { %769 = vmatprep.mubr.bf16.mxu0 %v817_v12  ;;  %777 = vmatprep.mubr.bf16.mxu1 %v818_v13 }
  0x2e   : > { %770 = vmatmul.mubr.bf16.gmra.mrb[4].mxu0 %v819_v14  ;;  %778 = vmatmul.mubr.bf16.gmra.mrb[4].mxu1 %v820_v15 }
  0xf9   : > { %v767_v17 = vpop.f32.mrb[0].mxu0  ;;  %v775_v19 = vpop.f32.mrb[0].mxu1 }
  0xfa   : > { %v436_v20 = vmul.f32 %v767_v17, %v650_v16  ;;  %v444_v21 = vmul.f32 %v775_v19, %v650_v16  ;;  %v364_v22 = vpop.f32.mrb[1].mxu0  ;;  %v396_v23 = vpop.f32.mrb[1].mxu1 }
  0xfb   : > { %v434_v24 = vmul.f32 %v650_v16, %v364_v22  ;;  %v442_v25 = vmul.f32 %v650_v16, %v396_v23  ;;  %v768_v26 = vpop.f32.mrb[2].mxu0  ;;  %v776_v27 = vpop.f32.mrb[2].mxu1 }
  0xfc   : > { %v459_v28 = vadd.f32 %v910_v18, %v436_v20  ;;  %v467_v29 = vadd.f32 %v910_v18, %v444_v21  ;;  %v437_v30 = vmul.f32 %v768_v26, %v650_v16  ;;  %v445_v31 = vmul.f32 %v776_v27, %v650_v16  ;;  %v367_v32 = vpop.f32.mrb[3].mxu0  ;;  %v399_v33 = vpop.f32.mrb[3].mxu1 }
  0xfd   : > { %v457_v34 = vadd.f32 %v910_v18, %v434_v24  ;;  %v465_v35 = vadd.f32 %v910_v18, %v442_v25  ;;  %v435_v36 = vmul.f32 %v650_v16, %v367_v32  ;;  %v443_v37 = vmul.f32 %v650_v16, %v399_v33 }
  0xfe   : > { %v460_v38 = vadd.f32 %v910_v18, %v437_v30  ;;  %v468_v39 = vadd.f32 %v910_v18, %v445_v31  ;;  %v475_v42 = vmax.f32 %v459_v28, 0.0  ;;  %v483_v43 = vmax.f32 %v467_v29, 0.0 }
  0xff   : > { %v458_v40 = vadd.f32 %v910_v18, %v435_v36  ;;  %v466_v41 = vadd.f32 %v910_v18, %v443_v37  ;;  %v473_v46 = vmax.f32 %v457_v34, 0.0  ;;  %v481_v47 = vmax.f32 %v465_v35, 0.0 }
 0x100   : > { %v476_v44 = vmax.f32 %v460_v38, 0.0  ;;  %v484_v45 = vmax.f32 %v468_v39, 0.0 }
 0x101   : > { %v474_v48 = vmax.f32 %v458_v40, 0.0  ;;  %v482_v49 = vmax.f32 %v466_v41, 0.0  ;;  %v771_v50 = vpop.f32.mrb[4].mxu0  ;;  %v779_v51 = vpop.f32.mrb[4].mxu1 }
 0x102   : > { %v694_v52 = vpack.c.bf16 %v476_v44, %v475_v42  ;;  %v714_v53 = vpack.c.bf16 %v484_v45, %v483_v43  ;;  %v440_v54 = vmul.f32 %v771_v50, %v650_v16  ;;  %v448_v55 = vmul.f32 %v779_v51, %v650_v16  ;;  %v380_v56 = vpop.f32.mrb[5].mxu0  ;;  %v412_v57 = vpop.f32.mrb[5].mxu1 }
 0x103   : > { %v689_v58 = vpack.c.bf16 %v474_v48, %v473_v46  ;;  %v709_v59 = vpack.c.bf16 %v482_v49, %v481_v47  ;;  %v438_v60 = vmul.f32 %v650_v16, %v380_v56  ;;  %v446_v61 = vmul.f32 %v650_v16, %v412_v57  ;;  %v772_v62 = vpop.f32.mrb[6].mxu0  ;;  %v780_v63 = vpop.f32.mrb[6].mxu1 }
 0x104   : > { %726 = vst [vmem:[%s925_s20 + $0x8] sm:$0xff] %v694_v52   ;;  %730 = vst [vmem:[%s925_s20 + $0x28] sm:$0xff] %v714_v53   ;;  %v463_v0 = vadd.f32 %v910_v18, %v440_v54  ;;  %v471_v1 = vadd.f32 %v910_v18, %v448_v55  ;;  %v441_v2 = vmul.f32 %v772_v62, %v650_v16  ;;  %v383_v4 = vpop.f32.mrb[7].mxu0  ;;  %v415_v5 = vpop.f32.mrb[7].mxu1 }
 0x105   : > { %v449_v3 = vmul.f32 %v780_v63, %v650_v16  ;;  %690 = vst [vmem:[%s925_s20] sm:$0xff] %v689_v58   ;;  %729 = vst [vmem:[%s925_s20 + $0x20] sm:$0xff] %v709_v59   ;;  %v461_v6 = vadd.f32 %v910_v18, %v438_v60  ;;  %v469_v7 = vadd.f32 %v910_v18, %v446_v61 }
 0x106   : > { %v439_v8 = vmul.f32 %v650_v16, %v383_v4  ;;  %v447_v9 = vmul.f32 %v650_v16, %v415_v5  ;;  %v464_v10 = vadd.f32 %v910_v18, %v441_v2  ;;  %v479_v14 = vmax.f32 %v463_v0, 0.0 }
 0x107   : > { %v472_v11 = vadd.f32 %v910_v18, %v449_v3  ;;  %v487_v15 = vmax.f32 %v471_v1, 0.0  ;;  %v477_v20 = vmax.f32 %v461_v6, 0.0  ;;  %v485_v21 = vmax.f32 %v469_v7, 0.0 }
 0x108   : > { %v462_v12 = vadd.f32 %v910_v18, %v439_v8  ;;  %v470_v13 = vadd.f32 %v910_v18, %v447_v9  ;;  %v480_v17 = vmax.f32 %v464_v10, 0.0 }
 0x109   : > { %v488_v19 = vmax.f32 %v472_v11, 0.0 }
 0x10a   : > { %v478_v22 = vmax.f32 %v462_v12, 0.0  ;;  %v486_v16 = vmax.f32 %v470_v13, 0.0  ;;  %v704_v23 = vpack.c.bf16 %v480_v17, %v479_v14 }
 0x10b   : > { %v724_v24 = vpack.c.bf16 %v488_v19, %v487_v15 }
 0x10c   : > { %v699_v25 = vpack.c.bf16 %v478_v22, %v477_v20  ;;  %v719_v26 = vpack.c.bf16 %v486_v16, %v485_v21  ;;  %728 = vst [vmem:[%s925_s20 + $0x18] sm:$0xff] %v704_v23  }
 0x10d   : > { %732 = vst [vmem:[%s925_s20 + $0x38] sm:$0xff] %v724_v24  }
 0x10e   : > { %727 = vst [vmem:[%s925_s20 + $0x10] sm:$0xff] %v699_v25   ;;  %731 = vst [vmem:[%s925_s20 + $0x30] sm:$0xff] %v719_v26  }
 0x10f PF: > { %s14_s15 = sadd.s32 1, %s827_s15  }
 0x110   : > { %p11_p4 = scmp.ge.s32.totalorder %s14_s15, 4  }
 0x112   :  { %13 = sbr.rel (!%p11_p4) target bundleno = 1 (0x1), region = 66 }

// kernel: wrapped_resnet101_forward.9
= control target key start
LH: loop header
LB: loop body
LE: loop exit
PB: predicated region body
PF: predicated region fallthrough
CT: control target
= control target key end

     0   :  { %s449_s1 = inlined_call_operand.vmem [shape: bf16[128,128], index: 1, kind: input, shape index: {}]   ;;  %s450_s0 = inlined_call_operand.vmem [shape: bf16[64,128], index: 0, kind: input, shape index: {}]   ;;  %s451_s2 = inlined_call_operand.vmem [shape: f32[1,128], index: 2, kind: input, shape index: {}]   ;;  %s452_s3 = inlined_call_operand.vmem [shape: f32[1,128], index: 3, kind: input, shape index: {}]   ;;  %s453_s4 = inlined_call_operand.vmem [shape: bf16[64,128], index: 4, kind: output, shape index: {}]  }
   0x1   :  { %v358_v0 = vld [vmem:[%s449_s1] sm:$0xff]   ;;  %v359_v1 = vld [vmem:[%s449_s1 + $0x8] sm:$0xff]   ;;  %v360_v2 = vld [vmem:[%s449_s1 + $0x10] sm:$0xff]  }
   0x2   :  { %318 = vmatprep.subr.bf16.mxu0 %v358_v0  ;;  %342 = vmatprep.subr.bf16.mxu1 %v358_v0  ;;  %v361_v3 = vld [vmem:[%s449_s1 + $0x18] sm:$0xff]   ;;  %v366_v4 = vld [vmem:[%s450_s0] sm:$0xff]   ;;  %v367_v5 = vld [vmem:[%s450_s0 + $0x10] sm:$0xff]  }
   0x3   :  { %319 = vmatpush3.bf16.msra.mxu0 %v358_v0  ;;  %350 = vmatpush3.bf16.msra.mxu1 %v358_v0  ;;  %v362_v6 = vld [vmem:[%s449_s1 + $0x20] sm:$0xff]   ;;  %v363_v7 = vld [vmem:[%s449_s1 + $0x28] sm:$0xff]   ;;  %v364_v8 = vld [vmem:[%s449_s1 + $0x30] sm:$0xff]  }
   0x4   :  { %320 = vmatprep.subr.bf16.mxu0 %v359_v1  ;;  %343 = vmatprep.subr.bf16.mxu1 %v359_v1  ;;  %v365_v9 = vld [vmem:[%s449_s1 + $0x38] sm:$0xff]   ;;  %v368_v10 = vld [vmem:[%s450_s0 + $0x8] sm:$0xff]   ;;  %v265_v12 = vld [vmem:[%s451_s2] ss:$0 sm:$0xff] }
   0x5   :  { %334 = vmatprep.mubr.bf16.mxu0 %v366_v4  ;;  %338 = vmatprep.mubr.bf16.mxu1 %v367_v5  ;;  %v369_v11 = vld [vmem:[%s450_s0 + $0x18] sm:$0xff]   ;;  %v266_v19 = vld [vmem:[%s452_s3] ss:$0 sm:$0xff] }
   0x7   :  { %321 = vmatpush3.bf16.msra.mxu0 %v359_v1  ;;  %351 = vmatpush3.bf16.msra.mxu1 %v359_v1 }
   0x8   :  { %322 = vmatprep.subr.bf16.mxu0 %v360_v2  ;;  %344 = vmatprep.subr.bf16.mxu1 %v360_v2 }
   0xb   :  { %323 = vmatpush3.bf16.msra.mxu0 %v360_v2  ;;  %352 = vmatpush3.bf16.msra.mxu1 %v360_v2 }
   0xc   :  { %324 = vmatprep.subr.bf16.mxu0 %v361_v3  ;;  %345 = vmatprep.subr.bf16.mxu1 %v361_v3 }
   0xf   :  { %325 = vmatpush3.bf16.msra.mxu0 %v361_v3  ;;  %353 = vmatpush3.bf16.msra.mxu1 %v361_v3 }
  0x10   :  { %326 = vmatprep.subr.bf16.mxu0 %v362_v6  ;;  %346 = vmatprep.subr.bf16.mxu1 %v362_v6 }
  0x13   :  { %327 = vmatpush3.bf16.msra.mxu0 %v362_v6  ;;  %354 = vmatpush3.bf16.msra.mxu1 %v362_v6 }
  0x14   :  { %328 = vmatprep.subr.bf16.mxu0 %v363_v7  ;;  %347 = vmatprep.subr.bf16.mxu1 %v363_v7 }
  0x17   :  { %329 = vmatpush3.bf16.msra.mxu0 %v363_v7  ;;  %355 = vmatpush3.bf16.msra.mxu1 %v363_v7 }
  0x18   :  { %330 = vmatprep.subr.bf16.mxu0 %v364_v8  ;;  %348 = vmatprep.subr.bf16.mxu1 %v364_v8 }
  0x1b   :  { %331 = vmatpush3.bf16.msra.mxu0 %v364_v8  ;;  %356 = vmatpush3.bf16.msra.mxu1 %v364_v8 }
  0x1c   :  { %332 = vmatprep.subr.bf16.mxu0 %v365_v9  ;;  %349 = vmatprep.subr.bf16.mxu1 %v365_v9 }
  0x1f   :  { %333 = vmatpush3.bf16.msra.mxu0 %v365_v9  ;;  %357 = vmatpush3.bf16.msra.mxu1 %v365_v9 }
  0x22   :  { %335 = vmatmul.mubr.bf16.vlgmr.msra.gmra.mrb[0].mxu0 %v368_v10  ;;  %339 = vmatmul.mubr.bf16.vlgmr.msra.gmra.mrb[0].mxu1 %v369_v11 }
  0xf5   :  { %v336_v13 = vpop.f32.mrb[0].mxu0  ;;  %v340_v14 = vpop.f32.mrb[0].mxu1 }
  0xf6   :  { %v188_v15 = vmul.f32 %v336_v13, %v265_v12  ;;  %v192_v16 = vmul.f32 %v340_v14, %v265_v12  ;;  %v148_v17 = vpop.f32.mrb[1].mxu0  ;;  %v164_v18 = vpop.f32.mrb[1].mxu1 }
  0xf7   :  { %v186_v20 = vmul.f32 %v265_v12, %v148_v17  ;;  %v190_v21 = vmul.f32 %v265_v12, %v164_v18  ;;  %v337_v22 = vpop.f32.mrb[2].mxu0  ;;  %v341_v23 = vpop.f32.mrb[2].mxu1 }
  0xf8   :  { %v189_v24 = vmul.f32 %v337_v22, %v265_v12  ;;  %v193_v25 = vmul.f32 %v341_v23, %v265_v12  ;;  %v151_v26 = vpop.f32.mrb[3].mxu0  ;;  %v167_v27 = vpop.f32.mrb[3].mxu1  ;;  %v203_v30 = vadd.f32 %v266_v19, %v188_v15  ;;  %v207_v31 = vadd.f32 %v266_v19, %v192_v16 }
  0xf9   :  { %v187_v28 = vmul.f32 %v265_v12, %v151_v26  ;;  %v191_v29 = vmul.f32 %v265_v12, %v167_v27  ;;  %v201_v34 = vadd.f32 %v266_v19, %v186_v20  ;;  %v205_v35 = vadd.f32 %v266_v19, %v190_v21 }
  0xfa   :  { %v204_v32 = vadd.f32 %v266_v19, %v189_v24  ;;  %v208_v33 = vadd.f32 %v266_v19, %v193_v25 }
  0xfb   :  { %v202_v36 = vadd.f32 %v266_v19, %v187_v28  ;;  %v206_v37 = vadd.f32 %v266_v19, %v191_v29 }
  0xfc   :  { %v291_v38 = vpack.c.bf16 %v204_v32, %v203_v30  ;;  %v301_v39 = vpack.c.bf16 %v208_v33, %v207_v31 }
  0xfd   :  { %v286_v40 = vpack.c.bf16 %v202_v36, %v201_v34  ;;  %v296_v41 = vpack.c.bf16 %v206_v37, %v205_v35 }
  0xfe   :  { %303 = vst [vmem:[%s453_s4 + $0x8] sm:$0xff] %v291_v38   ;;  %305 = vst [vmem:[%s453_s4 + $0x18] sm:$0xff] %v301_v39  }
  0xff   :  { %287 = vst [vmem:[%s453_s4] sm:$0xff] %v286_v40   ;;  %304 = vst [vmem:[%s453_s4 + $0x10] sm:$0xff] %v296_v41  }

// kernel: wrapped_resnet101_forward.10
= control target key start
LH: loop header
LB: loop body
LE: loop exit
PB: predicated region body
PF: predicated region fallthrough
CT: control target
= control target key end

     0   :  { %s716_s2 = inlined_call_operand.vmem [shape: bf16[128,128], index: 2, kind: input, shape index: {}]   ;;  %s717_s0 = inlined_call_operand.vmem [shape: bf16[64,128], index: 0, kind: input, shape index: {}]   ;;  %s718_s5 = inlined_call_operand.vmem [shape: bf16[128,128], index: 5, kind: input, shape index: {}]   ;;  %s719_s1 = inlined_call_operand.vmem [shape: bf16[64,128], index: 1, kind: input, shape index: {}]   ;;  %s720_s3 = inlined_call_operand.vmem [shape: f32[1,128], index: 3, kind: input, shape index: {}]   ;;  %s721_s4 = inlined_call_operand.vmem [shape: f32[1,128], index: 4, kind: input, shape index: {}]   ;;  %s722_s6 = inlined_call_operand.vmem [shape: f32[1,128], index: 6, kind: input, shape index: {}]   ;;  %s723_s7 = inlined_call_operand.vmem [shape: f32[1,128], index: 7, kind: input, shape index: {}]   ;;  %s724_s8 = inlined_call_operand.vmem [shape: f32[64,128], index: 8, kind: output, shape index: {}]  }
   0x1   :  { %v543_v0 = vld [vmem:[%s716_s2] sm:$0xff]   ;;  %v544_v1 = vld [vmem:[%s716_s2 + $0x8] sm:$0xff]   ;;  %v545_v2 = vld [vmem:[%s716_s2 + $0x10] sm:$0xff]  }
   0x2   :  { %495 = vmatprep.subr.bf16.mxu0 %v543_v0  ;;  %v546_v3 = vld [vmem:[%s716_s2 + $0x18] sm:$0xff]   ;;  %v551_v4 = vld [vmem:[%s717_s0] sm:$0xff]   ;;  %v556_v7 = vld [vmem:[%s718_s5 + $0x8] sm:$0xff]  }
   0x3   :  { %496 = vmatpush3.bf16.msra.mxu0 %v543_v0  ;;  %511 = vmatprep.mubr.bf16.mxu0 %v551_v4  ;;  %v547_v5 = vld [vmem:[%s716_s2 + $0x20] sm:$0xff]   ;;  %v548_v8 = vld [vmem:[%s716_s2 + $0x28] sm:$0xff]   ;;  %v557_v9 = vld [vmem:[%s718_s5 + $0x10] sm:$0xff]  }
   0x4   :  { %497 = vmatprep.subr.bf16.mxu0 %v544_v1  ;;  %v555_v6 = vld [vmem:[%s718_s5] sm:$0xff]   ;;  %v549_v10 = vld [vmem:[%s716_s2 + $0x30] sm:$0xff]   ;;  %v558_v11 = vld [vmem:[%s718_s5 + $0x18] sm:$0xff]  }
   0x5   :  { %519 = vmatprep.subr.bf16.mxu1 %v555_v6  ;;  %v550_v12 = vld [vmem:[%s716_s2 + $0x38] sm:$0xff]   ;;  %v559_v13 = vld [vmem:[%s718_s5 + $0x20] sm:$0xff]   ;;  %v552_v14 = vld [vmem:[%s717_s0 + $0x8] sm:$0xff]  }
   0x6   :  { %520 = vmatpush3.bf16.msra.mxu1 %v555_v6  ;;  %v553_v15 = vld [vmem:[%s717_s0 + $0x10] sm:$0xff]   ;;  %v554_v16 = vld [vmem:[%s717_s0 + $0x18] sm:$0xff]   ;;  %v560_v17 = vld [vmem:[%s718_s5 + $0x28] sm:$0xff]  }
   0x7   :  { %498 = vmatpush3.bf16.msra.mxu0 %v544_v1  ;;  %521 = vmatprep.subr.bf16.mxu1 %v556_v7  ;;  %v561_v18 = vld [vmem:[%s718_s5 + $0x30] sm:$0xff]   ;;  %v562_v19 = vld [vmem:[%s718_s5 + $0x38] sm:$0xff]   ;;  %v440_v20 = vld [vmem:[%s720_s3] ss:$0 sm:$0xff] }
   0x8   :  { %499 = vmatprep.subr.bf16.mxu0 %v545_v2  ;;  %v468_v21 = vld [vmem:[%s719_s1 + $0x8] sm:$0xff]   ;;  %v453_v22 = vld [vmem:[%s719_s1] sm:$0xff]   ;;  %v470_v41 = vld [vmem:[%s719_s1 + $0x18] sm:$0xff]  }
   0x9   :  { %v441_v24 = vld [vmem:[%s721_s4] ss:$0 sm:$0xff]  ;;  %v458_v26 = vunpack.c.l.bf16 %v468_v21  ;;  %v454_v30 = vunpack.c.l.bf16 %v453_v22  ;;  %v459_v33 = vunpack.c.h.bf16 %v468_v21  ;;  %v455_v37 = vunpack.c.h.bf16 %v453_v22  ;;  %v469_v44 = vld [vmem:[%s719_s1 + $0x10] sm:$0xff]  }
   0xa   :  { %522 = vmatpush3.bf16.msra.mxu1 %v556_v7  ;;  %v466_v50 = vunpack.c.l.bf16 %v470_v41  ;;  %v462_v53 = vunpack.c.l.bf16 %v469_v44  ;;  %v467_v59 = vunpack.c.h.bf16 %v470_v41  ;;  %v463_v0 = vunpack.c.h.bf16 %v469_v44 }
   0xb   :  { %500 = vmatpush3.bf16.msra.mxu0 %v545_v2  ;;  %523 = vmatprep.subr.bf16.mxu1 %v557_v9 }
   0xc   :  { %501 = vmatprep.subr.bf16.mxu0 %v546_v3 }
   0xe   :  { %524 = vmatpush3.bf16.msra.mxu1 %v557_v9 }
   0xf   :  { %502 = vmatpush3.bf16.msra.mxu0 %v546_v3  ;;  %525 = vmatprep.subr.bf16.mxu1 %v558_v11 }
  0x10   :  { %503 = vmatprep.subr.bf16.mxu0 %v547_v5 }
  0x12   :  { %526 = vmatpush3.bf16.msra.mxu1 %v558_v11 }
  0x13   :  { %504 = vmatpush3.bf16.msra.mxu0 %v547_v5  ;;  %527 = vmatprep.subr.bf16.mxu1 %v559_v13 }
  0x14   :  { %505 = vmatprep.subr.bf16.mxu0 %v548_v8 }
  0x16   :  { %528 = vmatpush3.bf16.msra.mxu1 %v559_v13 }
  0x17   :  { %506 = vmatpush3.bf16.msra.mxu0 %v548_v8  ;;  %529 = vmatprep.subr.bf16.mxu1 %v560_v17 }
  0x18   :  { %507 = vmatprep.subr.bf16.mxu0 %v549_v10 }
  0x1a   :  { %530 = vmatpush3.bf16.msra.mxu1 %v560_v17 }
  0x1b   :  { %508 = vmatpush3.bf16.msra.mxu0 %v549_v10  ;;  %531 = vmatprep.subr.bf16.mxu1 %v561_v18 }
  0x1c   :  { %509 = vmatprep.subr.bf16.mxu0 %v550_v12 }
  0x1e   :  { %532 = vmatpush3.bf16.msra.mxu1 %v561_v18 }
  0x1f   :  { %510 = vmatpush3.bf16.msra.mxu0 %v550_v12  ;;  %533 = vmatprep.subr.bf16.mxu1 %v562_v19 }
  0x22   :  { %512 = vmatmul.mubr.bf16.vlgmr.msra.gmra.mrb[0].mxu0 %v552_v14  ;;  %534 = vmatpush3.bf16.msra.mxu1 %v562_v19  ;;  %v450_v14 = vld [vmem:[%s722_s6] ss:$0 sm:$0xff] }
  0x23   :  { %515 = vmatprep.mubr.bf16.mxu0 %v553_v15 }
  0x2a   :  { %516 = vmatmul.mubr.bf16.gmra.mrb[4].mxu0 %v554_v16  ;;  %v451_v16 = vld [vmem:[%s723_s7] ss:$0 sm:$0xff] }
  0xf5   :  { %v513_v23 = vpop.f32.mrb[0].mxu0 }
  0xf6   :  { %v200_v25 = vmul.f32 %v513_v23, %v440_v20  ;;  %v160_v27 = vpop.f32.mrb[1].mxu0 }
  0xf7   :  { %v198_v28 = vmul.f32 %v440_v20, %v160_v27  ;;  %v514_v29 = vpop.f32.mrb[2].mxu0 }
  0xf8   :  { %v215_v31 = vadd.f32 %v441_v24, %v200_v25  ;;  %v201_v32 = vmul.f32 %v514_v29, %v440_v20  ;;  %v163_v34 = vpop.f32.mrb[3].mxu0 }
  0xf9   :  { %v213_v35 = vadd.f32 %v441_v24, %v198_v28  ;;  %v199_v36 = vmul.f32 %v440_v20, %v163_v34 }
  0xfa   :  { %v239_v38 = vadd.f32 %v458_v26, %v215_v31  ;;  %v216_v39 = vadd.f32 %v441_v24, %v201_v32 }
  0xfb   :  { %v214_v40 = vadd.f32 %v441_v24, %v199_v36  ;;  %v237_v42 = vadd.f32 %v454_v30, %v213_v35 }
  0xfc   :  { %v240_v43 = vadd.f32 %v459_v33, %v216_v39  ;;  %v247_v47 = vmax.f32 %v239_v38, 0.0 }
  0xfd   :  { %v517_v45 = vpop.f32.mrb[4].mxu0  ;;  %v238_v46 = vadd.f32 %v455_v37, %v214_v40  ;;  %v245_v55 = vmax.f32 %v237_v42, 0.0 }
  0xfe   :  { %v248_v48 = vmax.f32 %v240_v43, 0.0  ;;  %v204_v49 = vmul.f32 %v517_v45, %v440_v20  ;;  %v176_v51 = vpop.f32.mrb[5].mxu0 }
  0xff   :  { %v202_v52 = vmul.f32 %v440_v20, %v176_v51  ;;  %v518_v54 = vpop.f32.mrb[6].mxu0  ;;  %v246_v56 = vmax.f32 %v238_v46, 0.0 }
 0x100   :  { %v219_v57 = vadd.f32 %v441_v24, %v204_v49  ;;  %v205_v58 = vmul.f32 %v518_v54, %v440_v20  ;;  %v179_v60 = vpop.f32.mrb[7].mxu0  ;;  %v254_v61 = vpack.c.bf16 %v248_v48, %v247_v47 }
 0x101   :  { %v217_v62 = vadd.f32 %v441_v24, %v202_v52  ;;  %v203_v63 = vmul.f32 %v440_v20, %v179_v60  ;;  %v253_v1 = vpack.c.bf16 %v246_v56, %v245_v55 }
 0x102   :  { %v243_v2 = vadd.f32 %v466_v50, %v219_v57  ;;  %v220_v3 = vadd.f32 %v441_v24, %v205_v58 }
 0x103   :  { %v241_v4 = vadd.f32 %v462_v53, %v217_v62  ;;  %v218_v5 = vadd.f32 %v441_v24, %v203_v63  ;;  %535 = vmatprep.mubr.bf16.mxu1 %v253_v1 }
 0x104   :  { %v244_v6 = vadd.f32 %v467_v59, %v220_v3  ;;  %536 = vmatmul.mubr.bf16.vlgmr.msra.gmra.mrb[0].mxu1 %v254_v61  ;;  %v251_v8 = vmax.f32 %v243_v2, 0.0 }
 0x105   :  { %v242_v7 = vadd.f32 %v463_v0, %v218_v5  ;;  %v249_v10 = vmax.f32 %v241_v4, 0.0 }
 0x106   :  { %v252_v9 = vmax.f32 %v244_v6, 0.0 }
 0x107   :  { %v250_v11 = vmax.f32 %v242_v7, 0.0 }
 0x108   :  { %v256_v12 = vpack.c.bf16 %v252_v9, %v251_v8 }
 0x109   :  { %v255_v13 = vpack.c.bf16 %v250_v11, %v249_v10 }
 0x10b   :  { %539 = vmatprep.mubr.bf16.mxu1 %v255_v13 }
 0x10c   :  { %540 = vmatmul.mubr.bf16.gmra.mrb[4].mxu1 %v256_v12 }
 0x1d7   :  { %v537_v15 = vpop.f32.mrb[0].mxu1 }
 0x1d8   :  { %v395_v17 = vmul.f32 %v537_v15, %v450_v14  ;;  %v355_v18 = vpop.f32.mrb[1].mxu1 }
 0x1d9   :  { %v393_v19 = vmul.f32 %v450_v14, %v355_v18  ;;  %v538_v20 = vpop.f32.mrb[2].mxu1 }
 0x1da   :  { %v410_v21 = vadd.f32 %v451_v16, %v395_v17  ;;  %v396_v22 = vmul.f32 %v538_v20, %v450_v14  ;;  %v358_v23 = vpop.f32.mrb[3].mxu1 }
 0x1db   :  { %v408_v24 = vadd.f32 %v451_v16, %v393_v19  ;;  %v394_v25 = vmul.f32 %v450_v14, %v358_v23 }
 0x1dc   :  { %418 = vst [vmem:[%s724_s8 + $0x10] sm:$0xff] %v410_v21  ;;  %v411_v26 = vadd.f32 %v451_v16, %v396_v22 }
 0x1dd   :  { %416 = vst [vmem:[%s724_s8] sm:$0xff] %v408_v24  ;;  %v409_v27 = vadd.f32 %v451_v16, %v394_v25 }
 0x1de   :  { %419 = vst [vmem:[%s724_s8 + $0x18] sm:$0xff] %v411_v26 }
 0x1df   :  { %417 = vst [vmem:[%s724_s8 + $0x8] sm:$0xff] %v409_v27  ;;  %v541_v28 = vpop.f32.mrb[4].mxu1 }
 0x1e0   :  { %v399_v29 = vmul.f32 %v541_v28, %v450_v14  ;;  %v371_v30 = vpop.f32.mrb[5].mxu1 }
 0x1e1   :  { %v397_v31 = vmul.f32 %v450_v14, %v371_v30  ;;  %v542_v32 = vpop.f32.mrb[6].mxu1 }
 0x1e2   :  { %v414_v33 = vadd.f32 %v451_v16, %v399_v29  ;;  %v400_v34 = vmul.f32 %v542_v32, %v450_v14  ;;  %v374_v35 = vpop.f32.mrb[7].mxu1 }
 0x1e3   :  { %v412_v36 = vadd.f32 %v451_v16, %v397_v31  ;;  %v398_v37 = vmul.f32 %v450_v14, %v374_v35 }
 0x1e4   :  { %422 = vst [vmem:[%s724_s8 + $0x30] sm:$0xff] %v414_v33  ;;  %v415_v38 = vadd.f32 %v451_v16, %v400_v34 }
 0x1e5   :  { %420 = vst [vmem:[%s724_s8 + $0x20] sm:$0xff] %v412_v36  ;;  %v413_v39 = vadd.f32 %v451_v16, %v398_v37 }
 0x1e6   :  { %423 = vst [vmem:[%s724_s8 + $0x38] sm:$0xff] %v415_v38 }
 0x1e7   :  { %421 = vst [vmem:[%s724_s8 + $0x28] sm:$0xff] %v413_v39 }

// kernel: wrapped_resnet101_forward.8
= control target key start
LH: loop header
LB: loop body
LE: loop exit
PB: predicated region body
PF: predicated region fallthrough
CT: control target
= control target key end

     0   :  { %vm366_vm0 = vsmask.f32 3328  ;;  %vm367_vm1 = vsmask.f32 7440  ;;  %s3316_s4 = inlined_call_operand.vmem [shape: bf16[9,128,128], index: 4, kind: input, shape index: {}]   ;;  %s3317_s1 = inlined_call_operand.vmem [shape: bf16[9,9,128], index: 1, kind: input, shape index: {}]   ;;  %s3318_s3 = inlined_call_operand.vmem [shape: bf16[9,9,128], index: 3, kind: input, shape index: {}]   ;;  %s3319_s0 = inlined_call_operand.vmem [shape: bf16[9,9,128], index: 0, kind: input, shape index: {}]   ;;  %s3320_s2 = inlined_call_operand.vmem [shape: bf16[9,9,128], index: 2, kind: input, shape index: {}]   ;;  %s3321_s5 = inlined_call_operand.vmem [shape: f32[1,128], index: 5, kind: input, shape index: {}]   ;;  %s3322_s6 = inlined_call_operand.vmem [shape: f32[1,128], index: 6, kind: input, shape index: {}]   ;;  %s3323_s7 = inlined_call_operand.vmem [shape: bf16[64,128], index: 7, kind: output, shape index: {}]  }
   0x1   :  { %v2676_v0 = vld [vmem:[%s3316_s4 + $0x40] sm:$0xff]   ;;  %v2678_v2 = vld [vmem:[%s3316_s4 + $0x48] sm:$0xff]   ;;  %v2680_v4 = vld [vmem:[%s3316_s4 + $0x50] sm:$0xff]  }
   0x2   :  { %v2677_v1 = vld [vmem:[%s3316_s4 + $0x100] sm:$0xff]   ;;  %2380 = vmatprep.subr.bf16.mxu1 %v2676_v0  ;;  %v2679_v3 = vld [vmem:[%s3316_s4 + $0x108] sm:$0xff]   ;;  %v2681_v5 = vld [vmem:[%s3316_s4 + $0x110] sm:$0xff]  }
   0x3   :  { %2476 = vmatprep.subr.bf16.mxu0 %v2677_v1  ;;  %2381 = vmatpush3.bf16.msra.mxu1 %v2676_v0  ;;  %v2682_v6 = vld [vmem:[%s3316_s4 + $0x58] sm:$0xff]   ;;  %v2684_v8 = vld [vmem:[%s3316_s4 + $0x60] sm:$0xff]   ;;  %v2686_v10 = vld [vmem:[%s3316_s4 + $0x68] sm:$0xff]  }
   0x4   :  { %2477 = vmatpush3.bf16.msra.mxu0 %v2677_v1  ;;  %2382 = vmatprep.subr.bf16.mxu1 %v2678_v2  ;;  %v2683_v7 = vld [vmem:[%s3316_s4 + $0x118] sm:$0xff]   ;;  %v2685_v9 = vld [vmem:[%s3316_s4 + $0x120] sm:$0xff]   ;;  %v2687_v12 = vld [vmem:[%s3316_s4 + $0x128] sm:$0xff]  }
   0x5   :  { %2478 = vmatprep.subr.bf16.mxu0 %v2679_v3  ;;  %v2692_v11 = vld [vmem:[%s3317_s1] ss:$8 sps:$4 sm:$0xff]   ;;  %v2688_v14 = vld [vmem:[%s3316_s4 + $0x70] sm:$0xff]   ;;  %v2690_v16 = vld [vmem:[%s3316_s4 + $0x78] sm:$0xff]  }
   0x6   :  { %2396 = vmatprep.mubr.bf16.mxu1 %v2692_v11  ;;  %v2694_v13 = vld [vmem:[%s3318_s3] ss:$8 sps:$4 sm:$0xff]   ;;  %v2689_v15 = vld [vmem:[%s3316_s4 + $0x130] sm:$0xff]   ;;  %v2691_v17 = vld [vmem:[%s3316_s4 + $0x138] sm:$0xff]  }
   0x7   :  { %2383 = vmatpush3.bf16.msra.mxu1 %v2678_v2  ;;  %2492 = vmatprep.mubr.bf16.mxu0 %v2694_v13  ;;  %v2693_v18 = vld [vmem:[%s3316_s4] sm:$0xff]   ;;  %v2696_v20 = vld [vmem:[%s3317_s1 + $0x10] ss:$8 sps:$4 sm:$0xff]   ;;  %v2698_v22 = vld [vmem:[%s3316_s4 + $0x8] sm:$0xff]  }
   0x8   :  { %2479 = vmatpush3.bf16.msra.mxu0 %v2679_v3  ;;  %2384 = vmatprep.subr.bf16.mxu1 %v2680_v4  ;;  %v2695_v19 = vld [vmem:[%s3316_s4 + $0x140] sm:$0xff]   ;;  %v2697_v21 = vld [vmem:[%s3318_s3 + $0x10] ss:$8 sps:$4 sm:$0xff]   ;;  %v2699_v23 = vld [vmem:[%s3316_s4 + $0x148] sm:$0xff]  }
   0x9   :  { %2480 = vmatprep.subr.bf16.mxu0 %v2681_v5  ;;  %v2708_v24 = vld [vmem:[%s3317_s1 + $0x20] ss:$8 sps:$4 sm:$0xff]   ;;  %v2700_v26 = vld [vmem:[%s3316_s4 + $0x10] sm:$0xff]   ;;  %v2702_v28 = vld [vmem:[%s3316_s4 + $0x18] sm:$0xff]  }
   0xa   :  { %v2710_v25 = vld [vmem:[%s3318_s3 + $0x20] ss:$8 sps:$4 sm:$0xff]   ;;  %v2701_v27 = vld [vmem:[%s3316_s4 + $0x150] sm:$0xff]   ;;  %v2703_v31 = vld [vmem:[%s3316_s4 + $0x158] sm:$0xff]  }
   0xb   :  { %2385 = vmatpush3.bf16.msra.mxu1 %v2680_v4  ;;  %v2712_v29 = vld [vmem:[%s3317_s1 + $0x30] ss:$8 sps:$4 sm:$0xff]   ;;  %v2716_v32 = vld [vmem:[%s3319_s0] ss:$8 sps:$4 sm:$0xff]   ;;  %v976_v35 = vld [vmem:[%s3320_s2 + $0x4] sm:$0x1] }
   0xc   :  { %2481 = vmatpush3.bf16.msra.mxu0 %v2681_v5  ;;  %2386 = vmatprep.subr.bf16.mxu1 %v2682_v6  ;;  %v2713_v30 = vld [vmem:[%s3318_s3 + $0x30] ss:$8 sps:$4 sm:$0xff]   ;;  %v2704_v33 = vld [vmem:[%s3316_s4 + $0x20] sm:$0xff]   ;;  %v977_v36 = vld [vmem:[%s3320_s2 + $0x8] sm:$0xf]  ;;  %v1001_v40 = vshll.u32 %v976_v35, 16 }
   0xd   :  { %2482 = vmatprep.subr.bf16.mxu0 %v2683_v7  ;;  %v975_v34 = vld [vmem:[%s3320_s2] sm:$0xf]  ;;  %v978_v37 = vld [vmem:[%s3320_s2 + $0xc] sm:$0x1]  ;;  %v1006_v41 = vshrl.u32 %v977_v36, 16  ;;  %v1009_v42 = vshll.u32 %v977_v36, 16  ;;  %vm2934_vm2 = vmor %vm366_vm0, %vm367_vm1 }
   0xe   :  { %v992_v38 = vshrl.u32 %v975_v34, 16  ;;  %v995_v39 = vshll.u32 %v975_v34, 16  ;;  %v1015_v43 = vshll.u32 %v978_v37, 16  ;;  %v2705_v44 = vld [vmem:[%s3316_s4 + $0x160] sm:$0xff]   ;;  %v2706_v47 = vld [vmem:[%s3316_s4 + $0x28] sm:$0xff]   ;;  %v1003_v52 = vrot.slane %v1001_v40, 5 }
   0xf   :  { %2387 = vmatpush3.bf16.msra.mxu1 %v2682_v6  ;;  %v1008_v48 = vrot.slane %v1006_v41, 4  ;;  %v1011_v49 = vrot.slane %v1009_v42, 5  ;;  %v979_v54 = vld [vmem:[%s3320_s2 + $0x10] sm:$0xf]  ;;  %v980_v56 = vld [vmem:[%s3320_s2 + $0x14] sm:$0x1] }
  0x10   :  { %2483 = vmatpush3.bf16.msra.mxu0 %v2683_v7  ;;  %2388 = vmatprep.subr.bf16.mxu1 %v2684_v8  ;;  %v994_v45 = vrot.slane %v992_v38, 4  ;;  %v997_v46 = vrot.slane %v995_v39, 5  ;;  %v1017_v53 = vrot.slane %v1015_v43, 5  ;;  %v981_v57 = vld [vmem:[%s3320_s2 + $0x18] sm:$0xf]  ;;  %v2707_v59 = vld [vmem:[%s3316_s4 + $0x168] sm:$0xff]  }
  0x11   :  { %2484 = vmatprep.subr.bf16.mxu0 %v2685_v9  ;;  %v1012_v55 = vor.u32 %v1011_v49, %v1008_v48  ;;  %v982_v58 = vld [vmem:[%s3320_s2 + $0x1c] sm:$0x1]  ;;  %v1020_v61 = vshrl.u32 %v979_v54, 16  ;;  %v1023_v62 = vshll.u32 %v979_v54, 16  ;;  %v1029_v0 = vshll.u32 %v980_v56, 16  ;;  %v2709_v7 = vld [vmem:[%s3316_s4 + $0x30] sm:$0xff]  }
  0x12   :  { %v998_v51 = vor.u32 %v997_v46, %v994_v45  ;;  %v1034_v1 = vshrl.u32 %v981_v57, 16  ;;  %v1037_v2 = vshll.u32 %v981_v57, 16  ;;  %v1043_v6 = vshll.u32 %v982_v58, 16  ;;  %v2730_v37 = vld [vmem:[%s3319_s0 + $0x20] ss:$8 sps:$4 sm:$0xff]   ;;  %v2722_v43 = vld [vmem:[%s3316_s4 + $0x90] sm:$0xff]  }
  0x13   :  { %2389 = vmatpush3.bf16.msra.mxu1 %v2684_v8  ;;  %v1013_v63 = vrot.slane %v1012_v55, 4  ;;  %v1022_v4 = vrot.slane %v1020_v61, 4  ;;  %v1025_v5 = vrot.slane %v1023_v62, 5  ;;  %v2711_v8 = vld [vmem:[%s3316_s4 + $0x170] sm:$0xff]   ;;  %v990_v55 = vld [vmem:[%s3320_s2 + $0x3c] sm:$0x1] }
  0x14   :  { %2485 = vmatpush3.bf16.msra.mxu0 %v2685_v9  ;;  %2390 = vmatprep.subr.bf16.mxu1 %v2686_v10  ;;  %v999_v60 = vrot.slane %v998_v51, 4  ;;  %v1039_v11 = vrot.slane %v1037_v2, 5  ;;  %v2733_v48 = vld [vmem:[%s3319_s0 + $0x30] ss:$8 sps:$4 sm:$0xff]   ;;  %v988_v51 = vld [vmem:[%s3320_s2 + $0x34] sm:$0x1] }
  0x15   :  { %2486 = vmatprep.subr.bf16.mxu0 %v2687_v12  ;;  %v1018_v9 = vsel %vm2934_vm2, %v1013_v63, %v1017_v53  ;;  %v1026_v13 = vor.u32 %v1025_v5, %v1022_v4  ;;  %v987_v49 = vld [vmem:[%s3320_s2 + $0x30] sm:$0xf]  ;;  %v1085_v58 = vshll.u32 %v988_v51, 16  ;;  %v1099_v63 = vshll.u32 %v990_v55, 16  ;;  %v2725_v4 = vld [vmem:[%s3316_s4 + $0x198] sm:$0xff]  }
  0x16   :  { %v1004_v3 = vsel %vm2934_vm2, %v999_v60, %v1003_v52  ;;  %v989_v52 = vld [vmem:[%s3320_s2 + $0x38] sm:$0xf]  ;;  %v2723_v53 = vld [vmem:[%s3316_s4 + $0x190] sm:$0xff]   ;;  %v1076_v56 = vshrl.u32 %v987_v49, 16  ;;  %v1079_v57 = vshll.u32 %v987_v49, 16 }
  0x17   :  { %2391 = vmatpush3.bf16.msra.mxu1 %v2686_v10  ;;  %v1036_v10 = vrot.slane %v1034_v1, 4  ;;  %v1090_v61 = vshrl.u32 %v989_v52, 16  ;;  %v1093_v62 = vshll.u32 %v989_v52, 16 }
  0x18   :  { %2487 = vmatpush3.bf16.msra.mxu0 %v2687_v12  ;;  %2392 = vmatprep.subr.bf16.mxu1 %v2688_v14  ;;  %v2103_v12 = vcombine.low %v1004_v3, %v1018_v9  ;;  %v1078_v1 = vrot.slane %v1076_v56, 4  ;;  %v1081_v2 = vrot.slane %v1079_v57, 5  ;;  %v1087_v3 = vrot.slane %v1085_v58, 5 }
  0x19   :  { %2488 = vmatprep.subr.bf16.mxu0 %v2689_v15 }
  0x1b   :  { %2393 = vmatpush3.bf16.msra.mxu1 %v2688_v14  ;;  %v2714_v14 = vld [vmem:[%s3316_s4 + $0x38] sm:$0xff]  }
  0x1c   :  { %2489 = vmatpush3.bf16.msra.mxu0 %v2689_v15  ;;  %2394 = vmatprep.subr.bf16.mxu1 %v2690_v16  ;;  %v1040_v15 = vor.u32 %v1039_v11, %v1036_v10  ;;  %v1082_v10 = vor.u32 %v1081_v2, %v1078_v1  ;;  %v350_v11 = vld [vmem:[%s3319_s0] sm:$0xf] }
  0x1d   :  { %2490 = vmatprep.subr.bf16.mxu0 %v2691_v17 }
  0x1f   :  { %2395 = vmatpush3.bf16.msra.mxu1 %v2690_v16  ;;  %v1031_v16 = vrot.slane %v1029_v0, 5 }
  0x20   :  { %2491 = vmatpush3.bf16.msra.mxu0 %v2691_v17  ;;  %2404 = vmatprep.subr.bf16.mxu1 %v2693_v18  ;;  %v1045_v17 = vrot.slane %v1043_v6, 5  ;;  %v1092_v6 = vrot.slane %v1090_v61, 4 }
  0x21   :  { %2500 = vmatprep.subr.bf16.mxu0 %v2695_v19 }
  0x22   :  { %2397 = vmatmul.mubr.bf16.vlgmr.msra.gmra.mrb[0].mxu1 %v2696_v20  ;;  %v2715_v20 = vld [vmem:[%s3316_s4 + $0x178] sm:$0xff]  }
  0x23   :  { %2405 = vmatpush3.bf16.msra.mxu1 %v2693_v18  ;;  %2493 = vmatmul.mubr.bf16.vlgmr.msra.gmra.mrb[0].mxu0 %v2697_v21  ;;  %v1027_v18 = vrot.slane %v1026_v13, 4  ;;  %v2717_v21 = vld [vmem:[%s3316_s4 + $0x80] sm:$0xff]  }
  0x24   :  { %2501 = vmatpush3.bf16.msra.mxu0 %v2695_v19  ;;  %2406 = vmatprep.subr.bf16.mxu1 %v2698_v22  ;;  %v1041_v19 = vrot.slane %v1040_v15, 4  ;;  %v2726_v13 = vld [vmem:[%s3316_s4 + $0xa0] sm:$0xff]  }
  0x25   :  { %2502 = vmatprep.subr.bf16.mxu0 %v2699_v23  ;;  %2400 = vmatprep.mubr.bf16.mxu1 %v2708_v24  ;;  %v2718_v24 = vld [vmem:[%s3316_s4 + $0x180] sm:$0xff]  }
  0x26   :  { %2496 = vmatprep.mubr.bf16.mxu0 %v2710_v25  ;;  %v2719_v25 = vld [vmem:[%s3319_s0 + $0x10] ss:$8 sps:$4 sm:$0xff]  }
  0x27   :  { %2407 = vmatpush3.bf16.msra.mxu1 %v2698_v22  ;;  %v1032_v22 = vsel %vm2934_vm2, %v1027_v18, %v1031_v16  ;;  %v352_v16 = vld [vmem:[%s3319_s0 + $0x8] sm:$0xf]  ;;  %v370_v18 = vshrl.u32 %v350_v11, 16 }
  0x28   :  { %2503 = vmatpush3.bf16.msra.mxu0 %v2699_v23  ;;  %2408 = vmatprep.subr.bf16.mxu1 %v2700_v26  ;;  %v1046_v23 = vsel %vm2934_vm2, %v1041_v19, %v1045_v17  ;;  %v353_v17 = vld [vmem:[%s3319_s0 + $0xc] sm:$0x1]  ;;  %v373_v19 = vshll.u32 %v350_v11, 16  ;;  %v2739_v11 = vld [vmem:[%s3319_s0 + $0x18] ss:$8 sps:$4 sm:$0xff]  }
  0x29   :  { %2504 = vmatprep.subr.bf16.mxu0 %v2701_v27 }
  0x2a   :  { %2401 = vmatmul.mubr.bf16.gmra.mrb[4].mxu1 %v2712_v29  ;;  %v2721_v29 = vld [vmem:[%s3316_s4 + $0x188] sm:$0xff]  }
  0x2b   :  { %2409 = vmatpush3.bf16.msra.mxu1 %v2700_v26  ;;  %2497 = vmatmul.mubr.bf16.gmra.mrb[4].mxu0 %v2713_v30  ;;  %v2720_v26 = vld [vmem:[%s3316_s4 + $0x88] sm:$0xff]   ;;  %v984_v30 = vld [vmem:[%s3320_s2 + $0x24] sm:$0x1] }
  0x2c   :  { %2505 = vmatpush3.bf16.msra.mxu0 %v2701_v27  ;;  %2410 = vmatprep.subr.bf16.mxu1 %v2702_v28  ;;  %v983_v27 = vld [vmem:[%s3320_s2 + $0x20] sm:$0xf]  ;;  %v1057_v35 = vshll.u32 %v984_v30, 16 }
  0x2d   :  { %2506 = vmatprep.subr.bf16.mxu0 %v2703_v31  ;;  %2420 = vmatprep.mubr.bf16.mxu1 %v2716_v32  ;;  %v986_v32 = vld [vmem:[%s3320_s2 + $0x2c] sm:$0x1]  ;;  %v1051_v34 = vshll.u32 %v983_v27, 16 }
  0x2e   :  { %2516 = vmatprep.mubr.bf16.mxu0 %v2103_v12  ;;  %v1071_v39 = vshll.u32 %v986_v32, 16  ;;  %v351_v12 = vld [vmem:[%s3319_s0 + $0x4] sm:$0x1]  ;;  %v2728_v32 = vld [vmem:[%s3316_s4 + $0xa8] sm:$0xff]  }
  0x2f   :  { %2411 = vmatpush3.bf16.msra.mxu1 %v2702_v28  ;;  %v2104_v28 = vcombine.low %v1032_v22, %v1046_v23  ;;  %v1053_v41 = vrot.slane %v1051_v34, 5  ;;  %v384_v22 = vshrl.u32 %v352_v16, 16  ;;  %v387_v23 = vshll.u32 %v352_v16, 16  ;;  %v360_v16 = vld [vmem:[%s3319_s0 + $0x28] sm:$0xf] }
  0x30   :  { %2507 = vmatpush3.bf16.msra.mxu0 %v2703_v31  ;;  %2412 = vmatprep.subr.bf16.mxu1 %v2704_v33  ;;  %v985_v31 = vld [vmem:[%s3320_s2 + $0x28] sm:$0xf]  ;;  %v1073_v46 = vrot.slane %v1071_v39, 5 }
  0x31   :  { %2508 = vmatprep.subr.bf16.mxu0 %v2705_v44  ;;  %v1062_v36 = vshrl.u32 %v985_v31, 16  ;;  %v1065_v38 = vshll.u32 %v985_v31, 16  ;;  %v386_v30 = vrot.slane %v384_v22, 4  ;;  %v389_v31 = vrot.slane %v387_v23, 5 }
  0x32   :  { %v440_v22 = vshrl.u32 %v360_v16, 16  ;;  %v443_v23 = vshll.u32 %v360_v16, 16  ;;  %v2188_v16 = vld [vmem:[%s3319_s0 + $0xc] sm:$0x1] }
  0x33   :  { %2413 = vmatpush3.bf16.msra.mxu1 %v2704_v33  ;;  %v1048_v33 = vshrl.u32 %v983_v27, 16  ;;  %v1064_v42 = vrot.slane %v1062_v36, 4  ;;  %v1067_v45 = vrot.slane %v1065_v38, 5  ;;  %v393_v27 = vshll.u32 %v353_v17, 16  ;;  %v2729_v38 = vld [vmem:[%s3316_s4 + $0x1a8] sm:$0xff]  }
  0x34   :  { %2509 = vmatpush3.bf16.msra.mxu0 %v2705_v44  ;;  %2414 = vmatprep.subr.bf16.mxu1 %v2706_v47  ;;  %v1059_v44 = vrot.slane %v1057_v35, 5  ;;  %v361_v17 = vld [vmem:[%s3319_s0 + $0x2c] sm:$0x1] }
  0x35   :  { %2510 = vmatprep.subr.bf16.mxu0 %v2707_v59  ;;  %v1050_v40 = vrot.slane %v1048_v33, 4  ;;  %v1068_v54 = vor.u32 %v1067_v45, %v1064_v42  ;;  %v395_v36 = vrot.slane %v393_v27, 5 }
  0x37   :  { %2415 = vmatpush3.bf16.msra.mxu1 %v2706_v47  ;;  %v1054_v47 = vor.u32 %v1053_v41, %v1050_v40  ;;  %v1069_v0 = vrot.slane %v1068_v54, 4  ;;  %v390_v40 = vor.u32 %v389_v31, %v386_v30  ;;  %v354_v41 = vld [vmem:[%s3319_s0 + $0x10] sm:$0xf]  ;;  %v445_v31 = vrot.slane %v443_v23, 5 }
  0x38   :  { %2511 = vmatpush3.bf16.msra.mxu0 %v2707_v59  ;;  %2416 = vmatprep.subr.bf16.mxu1 %v2709_v7  ;;  %v2724_v59 = vld [vmem:[%s3316_s4 + $0x98] sm:$0xff]   ;;  %v398_v45 = vshrl.u32 %v354_v41, 16  ;;  %v362_v30 = vld [vmem:[%s3319_s0 + $0x30] sm:$0xf] }
  0x39   :  { %2512 = vmatprep.subr.bf16.mxu0 %v2711_v8  ;;  %v1055_v60 = vrot.slane %v1054_v47, 4  ;;  %v1074_v9 = vsel %vm2934_vm2, %v1069_v0, %v1073_v46  ;;  %v391_v46 = vrot.slane %v390_v40, 4  ;;  %v357_v47 = vld [vmem:[%s3319_s0 + $0x1c] sm:$0x1] }
  0x3a   :  { %v421_v58 = vshll.u32 %v357_v47, 16 }
  0x3b   :  { %2417 = vmatpush3.bf16.msra.mxu1 %v2709_v7  ;;  %v1060_v5 = vsel %vm2934_vm2, %v1055_v60, %v1059_v44  ;;  %v1095_v7 = vrot.slane %v1093_v62, 5  ;;  %v356_v44 = vld [vmem:[%s3319_s0 + $0x18] sm:$0xf]  ;;  %v396_v55 = vsel %vm2934_vm2, %v391_v46, %v395_v36  ;;  %v2732_v60 = vld [vmem:[%s3316_s4 + $0x1b0] sm:$0xff]  }
  0x3c   :  { %2513 = vmatpush3.bf16.msra.mxu0 %v2711_v8  ;;  %2418 = vmatprep.subr.bf16.mxu1 %v2714_v14  ;;  %v1101_v8 = vrot.slane %v1099_v63, 5  ;;  %v412_v51 = vshrl.u32 %v356_v44, 16  ;;  %v415_v54 = vshll.u32 %v356_v44, 16 }
  0x3d   :  { %2514 = vmatprep.subr.bf16.mxu0 %v2715_v20  ;;  %v1096_v15 = vor.u32 %v1095_v7, %v1092_v6  ;;  %v2735_v6 = vld [vmem:[%s3316_s4 + $0x1b8] sm:$0xff]   ;;  %v2736_v7 = vld [vmem:[%s3316_s4 + $0xc0] sm:$0xff]  }
  0x3e   :  { %v414_v57 = vrot.slane %v412_v51, 4  ;;  %v417_v63 = vrot.slane %v415_v54, 5  ;;  %v2744_v51 = vld [vmem:[%s3316_s4 + $0xd8] sm:$0xff]  }
  0x3f   :  { %2419 = vmatpush3.bf16.msra.mxu1 %v2714_v14  ;;  %v2105_v14 = vcombine.low %v1060_v5, %v1074_v9 }
  0x40   :  { %2515 = vmatpush3.bf16.msra.mxu0 %v2715_v20  ;;  %2428 = vmatprep.subr.bf16.mxu1 %v2717_v21  ;;  %v1083_v20 = vrot.slane %v1082_v10, 4  ;;  %v418_v1 = vor.u32 %v417_v63, %v414_v57  ;;  %v2738_v10 = vld [vmem:[%s3316_s4 + $0x1c0] sm:$0xff]  }
  0x41   :  { %2524 = vmatprep.subr.bf16.mxu0 %v2718_v24 }
  0x42   :  { %2421 = vmatmul.mubr.bf16.vlgmr.msra.gmra.mrb[0].mxu1 %v2719_v25  ;;  %v372_v25 = vrot.slane %v370_v18, 4  ;;  %v419_v5 = vrot.slane %v418_v1, 4  ;;  %v2741_v18 = vld [vmem:[%s3316_s4 + $0x1c8] sm:$0xff]   ;;  %v2746_v1 = vld [vmem:[%s3316_s4 + $0xe0] sm:$0xff]  }
  0x43   :  { %2429 = vmatpush3.bf16.msra.mxu1 %v2717_v21  ;;  %2517 = vmatmul.mubr.bf16.vlgmr.msra.gmra.mrb[0].mxu0 %v2104_v28  ;;  %v379_v21 = vshll.u32 %v351_v12, 16  ;;  %v2727_v28 = vld [vmem:[%s3316_s4 + $0x1a0] sm:$0xff]  }
  0x44   :  { %2525 = vmatpush3.bf16.msra.mxu0 %v2718_v24  ;;  %2430 = vmatprep.subr.bf16.mxu1 %v2720_v26  ;;  %v1097_v24 = vrot.slane %v1096_v15, 4  ;;  %v358_v12 = vld [vmem:[%s3319_s0 + $0x20] sm:$0xf]  ;;  %v359_v15 = vld [vmem:[%s3319_s0 + $0x24] sm:$0x1] }
  0x45   :  { %2526 = vmatprep.subr.bf16.mxu0 %v2721_v29  ;;  %2424 = vmatprep.mubr.bf16.mxu1 %v2730_v37  ;;  %v381_v35 = vrot.slane %v379_v21, 5  ;;  %v2737_v37 = vld [vmem:[%s3319_s0 + $0x8] ss:$8 sps:$4 sm:$0xff]   ;;  %v435_v21 = vshll.u32 %v359_v15, 16 }
  0x46   :  { %2520 = vmatprep.mubr.bf16.mxu0 %v2105_v14  ;;  %v1102_v33 = vsel %vm2934_vm2, %v1097_v24, %v1101_v8  ;;  %v2740_v14 = vld [vmem:[%s3316_s4 + $0xc8] sm:$0xff]   ;;  %v449_v24 = vshll.u32 %v361_v17, 16  ;;  %v2189_v17 = vld [vmem:[%s3319_s0 + $0x10] sm:$0xf] }
  0x47   :  { %2431 = vmatpush3.bf16.msra.mxu1 %v2720_v26  ;;  %v375_v26 = vrot.slane %v373_v19, 5  ;;  %v426_v19 = vshrl.u32 %v358_v12, 16  ;;  %v2187_v15 = vld [vmem:[%s3319_s0 + $0x8] sm:$0xf]  ;;  %v1633_v23 = vshll.u32 %v2189_v17, 16 }
  0x48   :  { %2527 = vmatpush3.bf16.msra.mxu0 %v2721_v29  ;;  %2432 = vmatprep.subr.bf16.mxu1 %v2722_v43  ;;  %v1088_v29 = vsel %vm2934_vm2, %v1083_v20, %v1087_v3  ;;  %v423_v3 = vrot.slane %v421_v58, 5  ;;  %v429_v20 = vshll.u32 %v358_v12, 16  ;;  %v2752_v58 = vld [vmem:[%s3319_s0 + $0x38] ss:$8 sps:$4 sm:$0xff]  }
  0x49   :  { %2528 = vmatprep.subr.bf16.mxu0 %v2723_v53  ;;  %v376_v34 = vor.u32 %v375_v26, %v372_v25  ;;  %v2106_v39 = vcombine.low %v1088_v29, %v1102_v33  ;;  %v2750_v25 = vld [vmem:[%s3319_s0 + $0x28] ss:$8 sps:$4 sm:$0xff]   ;;  %v428_v26 = vrot.slane %v426_v19, 4  ;;  %v442_v29 = vrot.slane %v440_v22, 4  ;;  %v363_v33 = vld [vmem:[%s3319_s0 + $0x34] sm:$0x1] }
  0x4a   :  { %2425 = vmatmul.mubr.bf16.gmra.mrb[4].mxu1 %v2733_v48  ;;  %v401_v48 = vshll.u32 %v354_v41, 16  ;;  %v424_v9 = vsel %vm2934_vm2, %v419_v5, %v423_v3  ;;  %v431_v27 = vrot.slane %v429_v20, 5  ;;  %v463_v40 = vshll.u32 %v363_v33, 16  ;;  %v2743_v41 = vld [vmem:[%s3316_s4 + $0x1d0] sm:$0xff]   ;;  %v2747_v5 = vld [vmem:[%s3316_s4 + $0x1e0] sm:$0xff]   ;;  %v2754_v12 = vld [vmem:[%s3316_s4 + $0xf8] sm:$0xff]  }
  0x4b   :  { %2433 = vmatpush3.bf16.msra.mxu1 %v2722_v43  ;;  %v377_v42 = vrot.slane %v376_v34, 4  ;;  %v355_v43 = vld [vmem:[%s3319_s0 + $0x14] sm:$0x1]  ;;  %2521 = vmatmul.mubr.bf16.gmra.mrb[4].mxu0 %v2106_v39  ;;  %v364_v34 = vld [vmem:[%s3319_s0 + $0x38] sm:$0xf]  ;;  %v457_v39 = vshll.u32 %v362_v30, 16 }
  0x4c   :  { %2529 = vmatpush3.bf16.msra.mxu0 %v2723_v53  ;;  %2434 = vmatprep.subr.bf16.mxu1 %v2724_v59  ;;  %v407_v49 = vshll.u32 %v355_v43, 16  ;;  %v400_v53 = vrot.slane %v398_v45, 4  ;;  %v403_v56 = vrot.slane %v401_v48, 5  ;;  %v432_v36 = vor.u32 %v431_v27, %v428_v26  ;;  %v2198_v33 = vld [vmem:[%s3319_s0 + $0x34] sm:$0x1] }
  0x4d   :  { %2530 = vmatprep.subr.bf16.mxu0 %v2725_v4  ;;  %v382_v52 = vsel %vm2934_vm2, %v377_v42, %v381_v35  ;;  %2540 = vmatprep.mubr.bf16.mxu0 %v2737_v37  ;;  %v2742_v35 = vld [vmem:[%s3316_s4 + $0xd0] sm:$0xff]   ;;  %v365_v37 = vld [vmem:[%s3319_s0 + $0x3c] sm:$0x1]  ;;  %v446_v42 = vor.u32 %v445_v31, %v442_v29  ;;  %v468_v43 = vshrl.u32 %v364_v34, 16  ;;  %v471_v44 = vshll.u32 %v364_v34, 16 }
  0x4e   :  { %v2019_v61 = vcombine.low %v382_v52, %v396_v55  ;;  %v409_v62 = vrot.slane %v407_v49, 5  ;;  %v404_v0 = vor.u32 %v403_v56, %v400_v53  ;;  %v477_v45 = vshll.u32 %v365_v37, 16  ;;  %v2197_v29 = vld [vmem:[%s3319_s0 + $0x30] sm:$0xf]  ;;  %v2759_v34 = vld [vmem:[%s3317_s1 + $0x18] ss:$8 sps:$4 sm:$0xff]  }
  0x4f   :  { %2435 = vmatpush3.bf16.msra.mxu1 %v2724_v59  ;;  %v2731_v59 = vld [vmem:[%s3316_s4 + $0xb0] sm:$0xff]   ;;  %v433_v46 = vrot.slane %v432_v36, 4  ;;  %v459_v48 = vrot.slane %v457_v39, 5  ;;  %v465_v49 = vrot.slane %v463_v40, 5  ;;  %v447_v52 = vrot.slane %v446_v42, 4  ;;  %v2761_v39 = vld [vmem:[%s3316_s4 + $0x208] sm:$0xff]  }
  0x50   :  { %2531 = vmatpush3.bf16.msra.mxu0 %v2725_v4  ;;  %2436 = vmatprep.subr.bf16.mxu1 %v2726_v13  ;;  %v405_v2 = vrot.slane %v404_v0, 4  ;;  %v2734_v4 = vld [vmem:[%s3316_s4 + $0xb8] sm:$0xff]   ;;  %v470_v53 = vrot.slane %v468_v43, 4  ;;  %v473_v54 = vrot.slane %v471_v44, 5  ;;  %v479_v55 = vrot.slane %v477_v45, 5 }
  0x51   :  { %2532 = vmatprep.subr.bf16.mxu0 %v2727_v28  ;;  %2444 = vmatprep.mubr.bf16.mxu1 %v2019_v61  ;;  %v2745_v61 = vld [vmem:[%s3316_s4 + $0x1d8] sm:$0xff]   ;;  %v1616_v19 = vshrl.u32 %v2187_v15, 16  ;;  %v1619_v20 = vshll.u32 %v2187_v15, 16  ;;  %v1630_v22 = vshrl.u32 %v2189_v17, 16  ;;  %v1689_v42 = vshll.u32 %v2197_v29, 16  ;;  %v2768_v15 = vld [vmem:[%s3316_s4 + $0x220] sm:$0xff]  }
  0x52   :  { %v410_v8 = vsel %vm2934_vm2, %v405_v2, %v409_v62  ;;  %v1695_v43 = vshll.u32 %v2198_v33, 16  ;;  %v2762_v44 = vld [vmem:[%s3320_s2 + $0x20] ss:$8 sps:$4 sm:$0xff]  }
  0x53   :  { %2437 = vmatpush3.bf16.msra.mxu1 %v2726_v13  ;;  %v2020_v13 = vcombine.low %v410_v8, %v424_v9  ;;  %v2748_v8 = vld [vmem:[%s3316_s4 + $0xe8] sm:$0xff]   ;;  %v1618_v26 = vrot.slane %v1616_v19, 4  ;;  %v1621_v27 = vrot.slane %v1619_v20, 5  ;;  %v1632_v31 = vrot.slane %v1630_v22, 4 }
  0x54   :  { %2533 = vmatpush3.bf16.msra.mxu0 %v2727_v28  ;;  %2438 = vmatprep.subr.bf16.mxu1 %v2728_v32  ;;  %v437_v28 = vrot.slane %v435_v21, 5  ;;  %v2749_v9 = vld [vmem:[%s3316_s4 + $0x1e8] sm:$0xff]   ;;  %v1625_v21 = vshll.u32 %v2188_v16, 16 }
  0x55   :  { %2534 = vmatprep.subr.bf16.mxu0 %v2729_v38  ;;  %v2769_v20 = vld [vmem:[%s3316_s4 + $0x228] sm:$0xff]  }
  0x56   :  { %v438_v56 = vsel %vm2934_vm2, %v433_v46, %v437_v28  ;;  %v2196_v28 = vld [vmem:[%s3319_s0 + $0x2c] sm:$0x1]  ;;  %v1627_v45 = vrot.slane %v1625_v21, 5  ;;  %v2200_v21 = vld [vmem:[%s3319_s0 + $0x3c] sm:$0x1] }
  0x57   :  { %2439 = vmatpush3.bf16.msra.mxu1 %v2728_v32  ;;  %v451_v32 = vrot.slane %v449_v24, 5 }
  0x58   :  { %2535 = vmatpush3.bf16.msra.mxu0 %v2729_v38  ;;  %2440 = vmatprep.subr.bf16.mxu1 %v2731_v59  ;;  %v454_v38 = vshrl.u32 %v362_v30, 16  ;;  %v2758_v30 = vld [vmem:[%s3320_s2 + $0x10] ss:$8 sps:$4 sm:$0xff]  }
  0x59   :  { %2536 = vmatprep.subr.bf16.mxu0 %v2732_v60 }
  0x5a   :  { %v456_v47 = vrot.slane %v454_v38, 4  ;;  %v1681_v38 = vshll.u32 %v2196_v28, 16 }
  0x5b   :  { %2441 = vmatpush3.bf16.msra.mxu1 %v2731_v59  ;;  %v452_v59 = vsel %vm2934_vm2, %v447_v52, %v451_v32  ;;  %v1635_v32 = vrot.slane %v1633_v23, 5 }
  0x5c   :  { %2537 = vmatpush3.bf16.msra.mxu0 %v2732_v60  ;;  %2442 = vmatprep.subr.bf16.mxu1 %v2734_v4  ;;  %v460_v57 = vor.u32 %v459_v48, %v456_v47  ;;  %v474_v60 = vor.u32 %v473_v54, %v470_v53  ;;  %v2021_v62 = vcombine.low %v438_v56, %v452_v59  ;;  %v1691_v54 = vrot.slane %v1689_v42, 5 }
  0x5d   :  { %2538 = vmatprep.subr.bf16.mxu0 %v2735_v6  ;;  %v1636_v40 = vor.u32 %v1635_v32, %v1632_v31  ;;  %v1683_v56 = vrot.slane %v1681_v38, 5  ;;  %v1697_v59 = vrot.slane %v1695_v43, 5  ;;  %v2192_v31 = vld [vmem:[%s3319_s0 + $0x1c] sm:$0x1]  ;;  %v2194_v32 = vld [vmem:[%s3319_s0 + $0x24] sm:$0x1] }
  0x5e   :  { %v461_v63 = vrot.slane %v460_v57, 4  ;;  %v475_v0 = vrot.slane %v474_v60, 4  ;;  %v2766_v57 = vld [vmem:[%s3316_s4 + $0x210] sm:$0xff]  }
  0x5f   :  { %2443 = vmatpush3.bf16.msra.mxu1 %v2734_v4  ;;  %v2757_v4 = vld [vmem:[%s3317_s1 + $0x8] ss:$8 sps:$4 sm:$0xff]   ;;  %v1637_v52 = vrot.slane %v1636_v40, 4 }
  0x60   :  { %2539 = vmatpush3.bf16.msra.mxu0 %v2735_v6  ;;  %2452 = vmatprep.subr.bf16.mxu1 %v2736_v7  ;;  %v466_v2 = vsel %vm2934_vm2, %v461_v63, %v465_v49  ;;  %v480_v3 = vsel %vm2934_vm2, %v475_v0, %v479_v55  ;;  %v2763_v49 = vld [vmem:[%s3317_s1 + $0x28] ss:$8 sps:$4 sm:$0xff]  }
  0x61   :  { %2548 = vmatprep.subr.bf16.mxu0 %v2738_v10  ;;  %v2022_v6 = vcombine.low %v466_v2, %v480_v3  ;;  %v2767_v3 = vld [vmem:[%s3316_s4 + $0x218] sm:$0xff]  }
  0x62   :  { %2445 = vmatmul.mubr.bf16.vlgmr.msra.gmra.mrb[0].mxu1 %v2020_v13  ;;  %v2755_v13 = vld [vmem:[%s3316_s4 + $0x1f8] sm:$0xff]  }
  0x63   :  { %2453 = vmatpush3.bf16.msra.mxu1 %v2736_v7  ;;  %2541 = vmatmul.mubr.bf16.vlgmr.msra.gmra.mrb[0].mxu0 %v2739_v11  ;;  %v2756_v7 = vld [vmem:[%s3320_s2] ss:$8 sps:$4 sm:$0xff]   ;;  %v2753_v11 = vld [vmem:[%s3316_s4 + $0x1f0] sm:$0xff]  }
  0x64   :  { %2549 = vmatpush3.bf16.msra.mxu0 %v2738_v10  ;;  %2454 = vmatprep.subr.bf16.mxu1 %v2740_v14  ;;  %v2751_v10 = vld [vmem:[%s3316_s4 + $0xf0] sm:$0xff]  }
  0x65   :  { %2550 = vmatprep.subr.bf16.mxu0 %v2741_v18  ;;  %2544 = vmatprep.mubr.bf16.mxu0 %v2750_v25  ;;  %v2195_v25 = vld [vmem:[%s3319_s0 + $0x28] sm:$0xf] }
  0x66   :  { %2448 = vmatprep.mubr.bf16.mxu1 %v2021_v62  ;;  %v1672_v36 = vshrl.u32 %v2195_v25, 16  ;;  %v1675_v37 = vshll.u32 %v2195_v25, 16 }
  0x67   :  { %2455 = vmatpush3.bf16.msra.mxu1 %v2740_v14  ;;  %v2760_v14 = vld [vmem:[%s3316_s4 + $0x200] sm:$0xff]  }
  0x68   :  { %2551 = vmatpush3.bf16.msra.mxu0 %v2741_v18  ;;  %2456 = vmatprep.subr.bf16.mxu1 %v2742_v35  ;;  %v2190_v18 = vld [vmem:[%s3319_s0 + $0x14] sm:$0x1]  ;;  %v1674_v47 = vrot.slane %v1672_v36, 4  ;;  %v1677_v48 = vrot.slane %v1675_v37, 5 }
  0x69   :  { %2552 = vmatprep.subr.bf16.mxu0 %v2743_v41  ;;  %v1639_v24 = vshll.u32 %v2190_v18, 16  ;;  %v2770_v37 = vld [vmem:[%s3316_s4 + $0x230] sm:$0xff]  }
  0x6a   :  { %2449 = vmatmul.mubr.bf16.gmra.mrb[4].mxu1 %v2022_v6  ;;  %v1678_v55 = vor.u32 %v1677_v48, %v1674_v47  ;;  %v2201_v6 = vld [vmem:[%s3319_s0 + $0x40] sm:$0xf] }
  0x6b   :  { %2457 = vmatpush3.bf16.msra.mxu1 %v2742_v35  ;;  %2545 = vmatmul.mubr.bf16.gmra.mrb[4].mxu0 %v2752_v58  ;;  %v1622_v35 = vor.u32 %v1621_v27, %v1618_v26  ;;  %v1641_v46 = vrot.slane %v1639_v24, 5 }
  0x6c   :  { %2553 = vmatpush3.bf16.msra.mxu0 %v2743_v41  ;;  %2458 = vmatprep.subr.bf16.mxu1 %v2744_v51  ;;  %v1686_v41 = vshrl.u32 %v2197_v29, 16  ;;  %v1679_v60 = vrot.slane %v1678_v55, 4 }
  0x6d   :  { %2554 = vmatprep.subr.bf16.mxu0 %v2745_v61  ;;  %2564 = vmatprep.mubr.bf16.mxu0 %v2757_v4  ;;  %v1642_v63 = vsel %vm2934_vm2, %v1637_v52, %v1641_v46  ;;  %v2771_v46 = vld [vmem:[%s3316_s4 + $0x238] sm:$0xff]  }
  0x6e   :  { %2468 = vmatprep.mubr.bf16.mxu1 %v2756_v7  ;;  %v1688_v53 = vrot.slane %v1686_v41, 4  ;;  %v1684_v2 = vsel %vm2934_vm2, %v1679_v60, %v1683_v56  ;;  %v1667_v41 = vshll.u32 %v2194_v32, 16 }
  0x6f   :  { %2459 = vmatpush3.bf16.msra.mxu1 %v2744_v51  ;;  %v1623_v51 = vrot.slane %v1622_v35, 4 }
  0x70   :  { %2555 = vmatpush3.bf16.msra.mxu0 %v2745_v61  ;;  %2460 = vmatprep.subr.bf16.mxu1 %v2746_v1  ;;  %v1692_v58 = vor.u32 %v1691_v54, %v1688_v53  ;;  %v2764_v61 = vld [vmem:[%s3320_s2 + $0x30] ss:$8 sps:$4 sm:$0xff]  }
  0x71   :  { %2556 = vmatprep.subr.bf16.mxu0 %v2747_v5  ;;  %v1628_v62 = vsel %vm2934_vm2, %v1623_v51, %v1627_v45  ;;  %v1669_v51 = vrot.slane %v1667_v41, 5 }
  0x72   :  { %v1693_v0 = vrot.slane %v1692_v58, 4  ;;  %v2219_v7 = vcombine.low %v1628_v62, %v1642_v63 }
  0x73   :  { %2461 = vmatpush3.bf16.msra.mxu1 %v2746_v1  ;;  %v2765_v1 = vld [vmem:[%s3317_s1 + $0x38] ss:$8 sps:$4 sm:$0xff]  }
  0x74   :  { %2557 = vmatpush3.bf16.msra.mxu0 %v2747_v5  ;;  %2462 = vmatprep.subr.bf16.mxu1 %v2748_v8  ;;  %v1698_v4 = vsel %vm2934_vm2, %v1693_v0, %v1697_v59  ;;  %v2199_v5 = vld [vmem:[%s3319_s0 + $0x38] sm:$0xf] }
  0x75   :  { %2558 = vmatprep.subr.bf16.mxu0 %v2749_v9 }
  0x77   :  { %2463 = vmatpush3.bf16.msra.mxu1 %v2748_v8  ;;  %v2191_v8 = vld [vmem:[%s3319_s0 + $0x18] sm:$0xf] }
  0x78   :  { %2559 = vmatpush3.bf16.msra.mxu0 %v2749_v9  ;;  %2464 = vmatprep.subr.bf16.mxu1 %v2751_v10  ;;  %v2193_v9 = vld [vmem:[%s3319_s0 + $0x20] sm:$0xf]  ;;  %v1644_v16 = vshrl.u32 %v2191_v8, 16  ;;  %v1647_v17 = vshll.u32 %v2191_v8, 16 }
  0x79   :  { %2560 = vmatprep.subr.bf16.mxu0 %v2753_v11  ;;  %v1658_v18 = vshrl.u32 %v2193_v9, 16  ;;  %v1661_v19 = vshll.u32 %v2193_v9, 16  ;;  %v2231_v9 = vld [vmem:[%s3321_s5] ss:$0 sm:$0xff] }
  0x7a   :  { %v1646_v26 = vrot.slane %v1644_v16, 4  ;;  %v1649_v27 = vrot.slane %v1647_v17, 5 }
  0x7b   :  { %2465 = vmatpush3.bf16.msra.mxu1 %v2751_v10  ;;  %v2221_v10 = vcombine.low %v1684_v2, %v1698_v4  ;;  %v1660_v28 = vrot.slane %v1658_v18, 4  ;;  %v1663_v29 = vrot.slane %v1661_v19, 5 }
  0x7c   :  { %2561 = vmatpush3.bf16.msra.mxu0 %v2753_v11  ;;  %2466 = vmatprep.subr.bf16.mxu1 %v2754_v12  ;;  %v1700_v11 = vshrl.u32 %v2199_v5, 16  ;;  %v1650_v38 = vor.u32 %v1649_v27, %v1646_v26 }
  0x7d   :  { %2562 = vmatprep.subr.bf16.mxu0 %v2755_v13  ;;  %v1664_v40 = vor.u32 %v1663_v29, %v1660_v28 }
  0x7e   :  { %v1702_v22 = vrot.slane %v1700_v11, 4  ;;  %v1651_v47 = vrot.slane %v1650_v38, 4 }
  0x7f   :  { %2467 = vmatpush3.bf16.msra.mxu1 %v2754_v12  ;;  %v1703_v12 = vshll.u32 %v2199_v5, 16 }
  0x80   :  { %2563 = vmatpush3.bf16.msra.mxu0 %v2755_v13  ;;  %2596 = vmatprep.subr.bf16.mxu1 %v2760_v14  ;;  %v1714_v13 = vshrl.u32 %v2201_v6, 16 }
  0x81   :  { %2572 = vmatprep.subr.bf16.mxu0 %v2760_v14  ;;  %v1705_v23 = vrot.slane %v1703_v12, 5 }
  0x82   :  { %2469 = vmatmul.mubr.bf16.vlgmr.msra.gmra.mrb[0].mxu1 %v2758_v30  ;;  %v1716_v24 = vrot.slane %v1714_v13, 4  ;;  %v2202_v30 = vld [vmem:[%s3319_s0 + $0x44] sm:$0x1] }
  0x83   :  { %2565 = vmatmul.mubr.bf16.vlgmr.msra.gmra.mrb[0].mxu0 %v2759_v34  ;;  %2604 = vmatpush3.bf16.msra.mxu1 %v2760_v14  ;;  %v1706_v33 = vor.u32 %v1705_v23, %v1702_v22  ;;  %v1709_v34 = vshll.u32 %v2200_v21, 16  ;;  %v1723_v36 = vshll.u32 %v2202_v30, 16 }
  0x84   :  { %2573 = vmatpush3.bf16.msra.mxu0 %v2760_v14  ;;  %2597 = vmatprep.subr.bf16.mxu1 %v2761_v39  ;;  %v1717_v14 = vshll.u32 %v2201_v6, 16 }
  0x85   :  { %2574 = vmatprep.subr.bf16.mxu0 %v2761_v39  ;;  %2472 = vmatprep.mubr.bf16.mxu1 %v2762_v44  ;;  %v1707_v42 = vrot.slane %v1706_v33, 4  ;;  %v1711_v43 = vrot.slane %v1709_v34, 5  ;;  %v1725_v45 = vrot.slane %v1723_v36, 5 }
  0x86   :  { %2568 = vmatprep.mubr.bf16.mxu0 %v2763_v49  ;;  %v1719_v25 = vrot.slane %v1717_v14, 5  ;;  %v1665_v49 = vrot.slane %v1664_v40, 4 }
  0x87   :  { %2605 = vmatpush3.bf16.msra.mxu1 %v2761_v39  ;;  %v1712_v52 = vsel %vm2934_vm2, %v1707_v42, %v1711_v43 }
  0x88   :  { %2575 = vmatpush3.bf16.msra.mxu0 %v2761_v39  ;;  %2598 = vmatprep.subr.bf16.mxu1 %v2766_v57  ;;  %v1720_v35 = vor.u32 %v1719_v25, %v1716_v24  ;;  %v1653_v39 = vshll.u32 %v2192_v31, 16  ;;  %v1670_v55 = vsel %vm2934_vm2, %v1665_v49, %v1669_v51 }
  0x89   :  { %2576 = vmatprep.subr.bf16.mxu0 %v2766_v57 }
  0x8a   :  { %2473 = vmatmul.mubr.bf16.gmra.mrb[4].mxu1 %v2764_v61  ;;  %v1721_v44 = vrot.slane %v1720_v35, 4  ;;  %v1655_v48 = vrot.slane %v1653_v39, 5 }
  0x8b   :  { %2569 = vmatmul.mubr.bf16.gmra.mrb[4].mxu0 %v2765_v1  ;;  %2606 = vmatpush3.bf16.msra.mxu1 %v2766_v57 }
  0x8c   :  { %2577 = vmatpush3.bf16.msra.mxu0 %v2766_v57  ;;  %2599 = vmatprep.subr.bf16.mxu1 %v2767_v3  ;;  %v1726_v53 = vsel %vm2934_vm2, %v1721_v44, %v1725_v45  ;;  %v1656_v54 = vsel %vm2934_vm2, %v1651_v47, %v1655_v48 }
  0x8d   :  { %2578 = vmatprep.subr.bf16.mxu0 %v2767_v3  ;;  %2588 = vmatprep.mubr.bf16.mxu0 %v2219_v7  ;;  %v2222_v56 = vcombine.low %v1712_v52, %v1726_v53  ;;  %v2220_v57 = vcombine.low %v1656_v54, %v1670_v55 }
  0x8e   :  { %2592 = vmatprep.mubr.bf16.mxu1 %v2221_v10 }
  0x8f   :  { %2607 = vmatpush3.bf16.msra.mxu1 %v2767_v3 }
  0x90   :  { %2579 = vmatpush3.bf16.msra.mxu0 %v2767_v3  ;;  %2600 = vmatprep.subr.bf16.mxu1 %v2768_v15 }
  0x91   :  { %2580 = vmatprep.subr.bf16.mxu0 %v2768_v15 }
  0x93   :  { %2608 = vmatpush3.bf16.msra.mxu1 %v2768_v15 }
  0x94   :  { %2581 = vmatpush3.bf16.msra.mxu0 %v2768_v15  ;;  %2601 = vmatprep.subr.bf16.mxu1 %v2769_v20  ;;  %v2232_v15 = vld [vmem:[%s3322_s6] ss:$0 sm:$0xff] }
  0x95   :  { %2582 = vmatprep.subr.bf16.mxu0 %v2769_v20 }
  0x97   :  { %2609 = vmatpush3.bf16.msra.mxu1 %v2769_v20 }
  0x98   :  { %2583 = vmatpush3.bf16.msra.mxu0 %v2769_v20  ;;  %2602 = vmatprep.subr.bf16.mxu1 %v2770_v37 }
  0x99   :  { %2584 = vmatprep.subr.bf16.mxu0 %v2770_v37 }
  0x9b   :  { %2610 = vmatpush3.bf16.msra.mxu1 %v2770_v37 }
  0x9c   :  { %2585 = vmatpush3.bf16.msra.mxu0 %v2770_v37  ;;  %2603 = vmatprep.subr.bf16.mxu1 %v2771_v46 }
  0x9d   :  { %2586 = vmatprep.subr.bf16.mxu0 %v2771_v46 }
  0x9f   :  { %2611 = vmatpush3.bf16.msra.mxu1 %v2771_v46 }
  0xa0   :  { %2587 = vmatpush3.bf16.msra.mxu0 %v2771_v46 }
  0xa2   :  { %2593 = vmatmul.mubr.bf16.vlgmr.msra.gmra.mrb[8].mxu1 %v2222_v56 }
  0xa3   :  { %2589 = vmatmul.mubr.bf16.vlgmr.msra.gmra.mrb[0].mxu0 %v2220_v57 }
 0x155   :  { %v2470_v58 = vpop.f32.mrb[0].mxu1 }
 0x156   :  { %v766_v59 = vpop.f32.mrb[1].mxu1 }
 0x157   :  { %v2471_v60 = vpop.f32.mrb[2].mxu1 }
 0x158   :  { %v769_v61 = vpop.f32.mrb[3].mxu1 }
 0x15d   :  { %v2474_v62 = vpop.f32.mrb[4].mxu1 }
 0x15e   :  { %v2570_v63 = vpop.f32.mrb[4].mxu0  ;;  %v782_v0 = vpop.f32.mrb[5].mxu1 }
 0x15f   :  { %v2616_v1 = vadd.f32 %v2570_v63, %v2474_v62  ;;  %v1576_v2 = vpop.f32.mrb[5].mxu0  ;;  %v2475_v3 = vpop.f32.mrb[6].mxu1 }
 0x160   :  { %v2618_v4 = vadd.f32 %v1576_v2, %v782_v0  ;;  %v2571_v50 = vpop.f32.mrb[6].mxu0  ;;  %v785_v5 = vpop.f32.mrb[7].mxu1 }
 0x161   :  { %v2620_v6 = vadd.f32 %v2571_v50, %v2475_v3  ;;  %v1579_v7 = vpop.f32.mrb[7].mxu0 }
 0x162   :  { %v2622_v8 = vadd.f32 %v1579_v7, %v785_v5 }
 0x175   :  { %v2594_v10 = vpop.f32.mrb[8].mxu1 }
 0x176   :  { %v2590_v11 = vpop.f32.mrb[0].mxu0  ;;  %v2617_v12 = vadd.f32 %v2616_v1, %v2594_v10  ;;  %v1858_v13 = vpop.f32.mrb[9].mxu1 }
 0x177   :  { %v2612_v14 = vadd.f32 %v2590_v11, %v2470_v58  ;;  %v1842_v16 = vpop.f32.mrb[1].mxu0  ;;  %v2619_v17 = vadd.f32 %v2618_v4, %v1858_v13  ;;  %v2595_v18 = vpop.f32.mrb[10].mxu1 }
 0x178   :  { %v1894_v19 = vmul.f32 %v2617_v12, %v2231_v9  ;;  %v2613_v20 = vadd.f32 %v1842_v16, %v766_v59  ;;  %v2591_v21 = vpop.f32.mrb[2].mxu0  ;;  %v2621_v22 = vadd.f32 %v2620_v6, %v2595_v18  ;;  %v1861_v23 = vpop.f32.mrb[11].mxu1 }
 0x179   :  { %v1890_v24 = vmul.f32 %v2612_v14, %v2231_v9  ;;  %v1892_v25 = vmul.f32 %v2619_v17, %v2231_v9  ;;  %v2614_v26 = vadd.f32 %v2591_v21, %v2471_v60  ;;  %v1845_v27 = vpop.f32.mrb[3].mxu0  ;;  %v2623_v28 = vadd.f32 %v2622_v8, %v1861_v23 }
 0x17a   :  { %v1909_v29 = vadd.f32 %v2232_v15, %v1894_v19  ;;  %v1888_v30 = vmul.f32 %v2613_v20, %v2231_v9  ;;  %v1895_v31 = vmul.f32 %v2621_v22, %v2231_v9  ;;  %v2615_v32 = vadd.f32 %v1845_v27, %v769_v61 }
 0x17b   :  { %v1905_v33 = vadd.f32 %v2232_v15, %v1890_v24  ;;  %v1907_v34 = vadd.f32 %v2232_v15, %v1892_v25  ;;  %v1891_v35 = vmul.f32 %v2614_v26, %v2231_v9  ;;  %v1893_v36 = vmul.f32 %v2623_v28, %v2231_v9 }
 0x17c   :  { %v1903_v37 = vadd.f32 %v2232_v15, %v1888_v30  ;;  %v1910_v38 = vadd.f32 %v2232_v15, %v1895_v31  ;;  %v1889_v39 = vmul.f32 %v2615_v32, %v2231_v9  ;;  %v1917_v42 = vmax.f32 %v1909_v29, 0.0 }
 0x17d   :  { %v1906_v40 = vadd.f32 %v2232_v15, %v1891_v35  ;;  %v1908_v41 = vadd.f32 %v2232_v15, %v1893_v36  ;;  %v1913_v45 = vmax.f32 %v1905_v33, 0.0  ;;  %v1915_v46 = vmax.f32 %v1907_v34, 0.0 }
 0x17e   :  { %v1918_v43 = vmax.f32 %v1910_v38, 0.0  ;;  %v1904_v44 = vadd.f32 %v2232_v15, %v1889_v39  ;;  %v1911_v49 = vmax.f32 %v1903_v37, 0.0 }
 0x17f   :  { %v1914_v47 = vmax.f32 %v1906_v40, 0.0  ;;  %v1916_v48 = vmax.f32 %v1908_v41, 0.0 }
 0x180   :  { %v2267_v51 = vpack.c.bf16 %v1918_v43, %v1917_v42  ;;  %v1912_v52 = vmax.f32 %v1904_v44, 0.0 }
 0x181   :  { %v2257_v53 = vpack.c.bf16 %v1914_v47, %v1913_v45  ;;  %v2262_v54 = vpack.c.bf16 %v1916_v48, %v1915_v46 }
 0x182   :  { %2271 = vst [vmem:[%s3323_s7 + $0x18] sm:$0xff] %v2267_v51   ;;  %v2252_v55 = vpack.c.bf16 %v1912_v52, %v1911_v49 }
 0x183   :  { %2269 = vst [vmem:[%s3323_s7 + $0x8] sm:$0xff] %v2257_v53   ;;  %2270 = vst [vmem:[%s3323_s7 + $0x10] sm:$0xff] %v2262_v54  }
 0x184   :  { %2253 = vst [vmem:[%s3323_s7] sm:$0xff] %v2252_v55  }

// kernel: wrapped_resnet101_forward.6
= control target key start
LH: loop header
LB: loop body
LE: loop exit
PB: predicated region body
PF: predicated region fallthrough
CT: control target
= control target key end

     0   :  { %vm782_vm0 = vsmask.f32 3328  ;;  %vm783_vm1 = vsmask.f32 7440  ;;  %s7886_s4 = inlined_call_operand.vmem [shape: bf16[9,128,128], index: 4, kind: input, shape index: {}]   ;;  %s7887_s1 = inlined_call_operand.vmem [shape: bf16[17,17,128], index: 1, kind: input, shape index: {}]   ;;  %s7888_s3 = inlined_call_operand.vmem [shape: bf16[17,17,128], index: 3, kind: input, shape index: {}]   ;;  %s7889_s2 = inlined_call_operand.vmem [shape: bf16[17,17,128], index: 2, kind: input, shape index: {}]   ;;  %s7890_s0 = inlined_call_operand.vmem [shape: bf16[17,17,128], index: 0, kind: input, shape index: {}]   ;;  %s7891_s5 = inlined_call_operand.vmem [shape: f32[1,128], index: 5, kind: input, shape index: {}]   ;;  %s7892_s6 = inlined_call_operand.vmem [shape: f32[1,128], index: 6, kind: input, shape index: {}]   ;;  %s7893_s7 = inlined_call_operand.vmem [shape: bf16[256,128], index: 7, kind: output, shape index: {}]  }
   0x1   :  { %v6356_v0 = vld [vmem:[%s7886_s4 + $0x40] sm:$0xff]   ;;  %v6358_v2 = vld [vmem:[%s7886_s4 + $0x48] sm:$0xff]   ;;  %v6360_v4 = vld [vmem:[%s7886_s4 + $0x50] sm:$0xff]  }
   0x2   :  { %v6357_v1 = vld [vmem:[%s7886_s4 + $0x100] sm:$0xff]   ;;  %5652 = vmatprep.subr.bf16.mxu1 %v6356_v0  ;;  %v6359_v3 = vld [vmem:[%s7886_s4 + $0x108] sm:$0xff]   ;;  %v6361_v5 = vld [vmem:[%s7886_s4 + $0x110] sm:$0xff]  }
   0x3   :  { %5844 = vmatprep.subr.bf16.mxu0 %v6357_v1  ;;  %5653 = vmatpush3.bf16.msra.mxu1 %v6356_v0  ;;  %v6362_v6 = vld [vmem:[%s7886_s4 + $0x58] sm:$0xff]   ;;  %v6364_v8 = vld [vmem:[%s7886_s4 + $0x60] sm:$0xff]   ;;  %v6366_v10 = vld [vmem:[%s7886_s4 + $0x68] sm:$0xff]  }
   0x4   :  { %5845 = vmatpush3.bf16.msra.mxu0 %v6357_v1  ;;  %5654 = vmatprep.subr.bf16.mxu1 %v6358_v2  ;;  %v6363_v7 = vld [vmem:[%s7886_s4 + $0x118] sm:$0xff]   ;;  %v6365_v9 = vld [vmem:[%s7886_s4 + $0x120] sm:$0xff]   ;;  %v6367_v11 = vld [vmem:[%s7886_s4 + $0x128] sm:$0xff]  }
   0x5   :  { %5846 = vmatprep.subr.bf16.mxu0 %v6359_v3  ;;  %v6372_v12 = vld [vmem:[%s7887_s1] sm:$0xff]   ;;  %v6368_v14 = vld [vmem:[%s7886_s4 + $0x70] sm:$0xff]   ;;  %v6370_v16 = vld [vmem:[%s7886_s4 + $0x78] sm:$0xff]  }
   0x6   :  { %v6373_v13 = vld [vmem:[%s7888_s3] sm:$0xff]   ;;  %5668 = vmatprep.mubr.bf16.mxu1 %v6372_v12  ;;  %v6369_v15 = vld [vmem:[%s7886_s4 + $0x130] sm:$0xff]   ;;  %v6371_v17 = vld [vmem:[%s7886_s4 + $0x138] sm:$0xff]  }
   0x7   :  { %5655 = vmatpush3.bf16.msra.mxu1 %v6358_v2  ;;  %5860 = vmatprep.mubr.bf16.mxu0 %v6373_v13  ;;  %v6374_v18 = vld [vmem:[%s7887_s1 + $0xc] sm:$0xff]   ;;  %v6375_v19 = vld [vmem:[%s7886_s4] sm:$0xff]   ;;  %v6379_v23 = vld [vmem:[%s7887_s1 + $0x18] sm:$0xff]  }
   0x8   :  { %5847 = vmatpush3.bf16.msra.mxu0 %v6359_v3  ;;  %5656 = vmatprep.subr.bf16.mxu1 %v6360_v4  ;;  %v6377_v20 = vld [vmem:[%s7886_s4 + $0x140] sm:$0xff]   ;;  %v6376_v21 = vld [vmem:[%s7888_s3 + $0xc] sm:$0xff]   ;;  %v6380_v24 = vld [vmem:[%s7888_s3 + $0x18] sm:$0xff]  }
   0x9   :  { %5848 = vmatprep.subr.bf16.mxu0 %v6361_v5  ;;  %v6378_v22 = vld [vmem:[%s7886_s4 + $0x148] sm:$0xff]   ;;  %v6389_v27 = vld [vmem:[%s7886_s4 + $0x10] sm:$0xff]   ;;  %v6385_v32 = vld [vmem:[%s7886_s4 + $0x158] sm:$0xff]  }
   0xa   :  { %v6382_v25 = vld [vmem:[%s7886_s4 + $0x8] sm:$0xff]   ;;  %v6384_v28 = vld [vmem:[%s7886_s4 + $0x150] sm:$0xff]   ;;  %v6396_v33 = vld [vmem:[%s7886_s4 + $0x18] sm:$0xff]  }
   0xb   :  { %5657 = vmatpush3.bf16.msra.mxu1 %v6360_v4  ;;  %v6381_v26 = vld [vmem:[%s7887_s1 + $0x24] sm:$0xff]   ;;  %v6386_v30 = vld [vmem:[%s7887_s1 + $0x30] sm:$0xff]   ;;  %v6388_v34 = vld [vmem:[%s7887_s1 + $0x3c] sm:$0xff]  }
   0xc   :  { %5849 = vmatpush3.bf16.msra.mxu0 %v6361_v5  ;;  %5658 = vmatprep.subr.bf16.mxu1 %v6362_v6  ;;  %v6383_v29 = vld [vmem:[%s7888_s3 + $0x24] sm:$0xff]   ;;  %v6387_v31 = vld [vmem:[%s7888_s3 + $0x30] sm:$0xff]   ;;  %v6390_v36 = vld [vmem:[%s7888_s3 + $0x3c] sm:$0xff]  }
   0xd   :  { %5850 = vmatprep.subr.bf16.mxu0 %v6363_v7  ;;  %v6391_v35 = vld [vmem:[%s7886_s4 + $0x160] sm:$0xff]   ;;  %v6393_v37 = vld [vmem:[%s7887_s1 + $0x48] sm:$0xff]   ;;  %v2267_v57 = vld [vmem:[%s7889_s2 + $0x10] sm:$0xf] }
   0xe   :  { %v2263_v38 = vld [vmem:[%s7889_s2] sm:$0xf]  ;;  %v2264_v39 = vld [vmem:[%s7889_s2 + $0x4] sm:$0xf]  ;;  %v2265_v40 = vld [vmem:[%s7889_s2 + $0x8] sm:$0x1] }
   0xf   :  { %5659 = vmatpush3.bf16.msra.mxu1 %v6362_v6  ;;  %v2312_v41 = vshrl.u32 %v2263_v38, 16  ;;  %v2315_v42 = vshll.u32 %v2263_v38, 16  ;;  %v2321_v43 = vshll.u32 %v2264_v39, 16  ;;  %v2325_v44 = vshrl.u32 %v2264_v39, 16  ;;  %v6392_v45 = vld [vmem:[%s7886_s4 + $0x168] sm:$0xff]   ;;  %v6402_v53 = vld [vmem:[%s7886_s4 + $0x20] sm:$0xff]   ;;  %vm6718_vm2 = vmor %vm782_vm0, %vm783_vm1 }
  0x10   :  { %5851 = vmatpush3.bf16.msra.mxu0 %v6363_v7  ;;  %5660 = vmatprep.subr.bf16.mxu1 %v6364_v8  ;;  %v6394_v46 = vld [vmem:[%s7888_s3 + $0x48] sm:$0xff]   ;;  %v2331_v47 = vshll.u32 %v2265_v40, 16  ;;  %v2268_v58 = vld [vmem:[%s7889_s2 + $0x14] sm:$0x1]  ;;  %v2345_v63 = vshll.u32 %v2267_v57, 16  ;;  %v2349_v0 = vshrl.u32 %v2267_v57, 16 }
  0x11   :  { %5852 = vmatprep.subr.bf16.mxu0 %v6365_v9  ;;  %v2314_v48 = vrot.slane %v2312_v41, 4  ;;  %v2317_v49 = vrot.slane %v2315_v42, 5  ;;  %v2323_v50 = vrot.slane %v2321_v43, 5  ;;  %v2327_v51 = vrot.slane %v2325_v44, 4  ;;  %v2266_v54 = vld [vmem:[%s7889_s2 + $0xc] sm:$0xf] }
  0x12   :  { %v2333_v52 = vrot.slane %v2331_v47, 5  ;;  %v2336_v59 = vshrl.u32 %v2266_v54, 16  ;;  %v2339_v60 = vshll.u32 %v2266_v54, 16  ;;  %v6398_v61 = vld [vmem:[%s7886_s4 + $0x170] sm:$0xff]   ;;  %v2355_v1 = vshll.u32 %v2268_v58, 16  ;;  %v6403_v44 = vld [vmem:[%s7886_s4 + $0x180] sm:$0xff]  }
  0x13   :  { %5661 = vmatpush3.bf16.msra.mxu1 %v6364_v8  ;;  %v2318_v55 = vor.u32 %v2317_v49, %v2314_v48  ;;  %v2328_v56 = vor.u32 %v2327_v51, %v2323_v50  ;;  %v6395_v2 = vld [vmem:[%s7887_s1 + $0x54] sm:$0xff]   ;;  %v6400_v8 = vld [vmem:[%s7887_s1 + $0x60] sm:$0xff]   ;;  %v2273_v38 = vld [vmem:[%s7889_s2 + $0x28] sm:$0xf] }
  0x14   :  { %5853 = vmatpush3.bf16.msra.mxu0 %v6365_v9  ;;  %5662 = vmatprep.subr.bf16.mxu1 %v6366_v10  ;;  %v2338_v5 = vrot.slane %v2336_v59, 4  ;;  %v2341_v6 = vrot.slane %v2339_v60, 5  ;;  %v6397_v7 = vld [vmem:[%s7888_s3 + $0x54] sm:$0xff]   ;;  %v2347_v9 = vrot.slane %v2345_v63, 5  ;;  %v2274_v39 = vld [vmem:[%s7889_s2 + $0x2c] sm:$0x1] }
  0x15   :  { %5854 = vmatprep.subr.bf16.mxu0 %v6367_v11  ;;  %v2319_v3 = vrot.slane %v2318_v55, 4  ;;  %v2329_v4 = vrot.slane %v2328_v56, 4  ;;  %v6401_v43 = vld [vmem:[%s7887_s1 + $0x6c] sm:$0xff]   ;;  %v2397_v47 = vshrl.u32 %v2273_v38, 16  ;;  %v2403_v48 = vshll.u32 %v2274_v39, 16 }
  0x16   :  { %v6407_v58 = vld [vmem:[%s7886_s4 + $0x188] sm:$0xff]   ;;  %v6410_v59 = vld [vmem:[%s7886_s4 + $0x30] sm:$0xff]  }
  0x17   :  { %5663 = vmatpush3.bf16.msra.mxu1 %v6366_v10  ;;  %v2351_v10 = vrot.slane %v2349_v0, 4  ;;  %v2324_v12 = vsel %vm6718_vm2, %v2319_v3, %v2323_v50  ;;  %v2334_v13 = vsel %vm6718_vm2, %v2329_v4, %v2333_v52  ;;  %v6404_v50 = vld [vmem:[%s7887_s1 + $0x78] sm:$0xff]   ;;  %v2399_v56 = vrot.slane %v2397_v47, 4  ;;  %v2275_v63 = vld [vmem:[%s7889_s2 + $0x30] sm:$0xf] }
  0x18   :  { %5855 = vmatpush3.bf16.msra.mxu0 %v6367_v11  ;;  %5664 = vmatprep.subr.bf16.mxu1 %v6368_v14  ;;  %v2357_v11 = vrot.slane %v2355_v1, 5  ;;  %v2405_v57 = vrot.slane %v2403_v48, 5  ;;  %v2276_v0 = vld [vmem:[%s7889_s2 + $0x34] sm:$0xf]  ;;  %v2277_v1 = vld [vmem:[%s7889_s2 + $0x38] sm:$0x1] }
  0x19   :  { %5856 = vmatprep.subr.bf16.mxu0 %v6369_v15  ;;  %v2408_v4 = vshrl.u32 %v2275_v63, 16 }
  0x1b   :  { %5665 = vmatpush3.bf16.msra.mxu1 %v6368_v14  ;;  %v2342_v14 = vor.u32 %v2341_v6, %v2338_v5  ;;  %v2411_v5 = vshll.u32 %v2275_v63, 16 }
  0x1c   :  { %5857 = vmatpush3.bf16.msra.mxu0 %v6369_v15  ;;  %5666 = vmatprep.subr.bf16.mxu1 %v6370_v16  ;;  %v2269_v15 = vld [vmem:[%s7889_s2 + $0x18] sm:$0xf] }
  0x1d   :  { %5858 = vmatprep.subr.bf16.mxu0 %v6371_v17 }
  0x1f   :  { %5667 = vmatpush3.bf16.msra.mxu1 %v6370_v16  ;;  %v2270_v16 = vld [vmem:[%s7889_s2 + $0x1c] sm:$0xf] }
  0x20   :  { %5859 = vmatpush3.bf16.msra.mxu0 %v6371_v17  ;;  %5700 = vmatprep.subr.bf16.mxu1 %v6375_v19  ;;  %v5019_v17 = vcombine.low %v2324_v12, %v2334_v13  ;;  %v2413_v12 = vrot.slane %v2411_v5, 5  ;;  %v6405_v13 = vld [vmem:[%s7887_s1 + $0x84] sm:$0xff]   ;;  %v2286_v5 = vld [vmem:[%s7889_s2 + $0x5c] sm:$0x1] }
  0x21   :  { %5892 = vmatprep.subr.bf16.mxu0 %v6377_v20 }
  0x22   :  { %5669 = vmatmul.mubr.bf16.vlgmr.msra.gmra.mrb[0].mxu1 %v6374_v18  ;;  %v2352_v18 = vor.u32 %v2351_v10, %v2347_v9 }
  0x23   :  { %5861 = vmatmul.mubr.bf16.vlgmr.msra.gmra.mrb[0].mxu0 %v6376_v21  ;;  %5701 = vmatpush3.bf16.msra.mxu1 %v6375_v19  ;;  %v2271_v19 = vld [vmem:[%s7889_s2 + $0x20] sm:$0x1]  ;;  %v2363_v21 = vshll.u32 %v2269_v15, 16 }
  0x24   :  { %5893 = vmatpush3.bf16.msra.mxu0 %v6377_v20  ;;  %5672 = vmatprep.mubr.bf16.mxu1 %v6379_v23  ;;  %v2360_v20 = vshrl.u32 %v2269_v15, 16  ;;  %v2369_v23 = vshll.u32 %v2270_v16, 16 }
  0x25   :  { %5894 = vmatprep.subr.bf16.mxu0 %v6378_v22  ;;  %5864 = vmatprep.mubr.bf16.mxu0 %v6380_v24  ;;  %v2373_v24 = vshrl.u32 %v2270_v16, 16 }
  0x26   :  { %5702 = vmatprep.subr.bf16.mxu1 %v6382_v25 }
  0x27   :  { %5703 = vmatpush3.bf16.msra.mxu1 %v6382_v25  ;;  %v2379_v25 = vshll.u32 %v2271_v19, 16  ;;  %v6411_v19 = vld [vmem:[%s7886_s4 + $0x190] sm:$0xff]  }
  0x28   :  { %5895 = vmatpush3.bf16.msra.mxu0 %v6378_v22  ;;  %5704 = vmatprep.subr.bf16.mxu1 %v6389_v27  ;;  %v2343_v22 = vrot.slane %v2342_v14, 4 }
  0x29   :  { %5896 = vmatprep.subr.bf16.mxu0 %v6384_v28 }
  0x2a   :  { %5673 = vmatmul.mubr.bf16.gmra.mrb[4].mxu1 %v6381_v26  ;;  %v6399_v26 = vld [vmem:[%s7886_s4 + $0x178] sm:$0xff]  }
  0x2b   :  { %5865 = vmatmul.mubr.bf16.gmra.mrb[4].mxu0 %v6383_v29  ;;  %5676 = vmatprep.mubr.bf16.mxu1 %v6386_v30  ;;  %v2365_v29 = vrot.slane %v2363_v21, 5  ;;  %v2371_v30 = vrot.slane %v2369_v23, 5  ;;  %v6408_v21 = vld [vmem:[%s7887_s1 + $0x90] sm:$0xff]   ;;  %v2279_v23 = vld [vmem:[%s7889_s2 + $0x40] sm:$0xf] }
  0x2c   :  { %5897 = vmatpush3.bf16.msra.mxu0 %v6384_v28  ;;  %5868 = vmatprep.mubr.bf16.mxu0 %v6387_v31  ;;  %v2362_v28 = vrot.slane %v2360_v20, 4  ;;  %v2375_v31 = vrot.slane %v2373_v24, 4  ;;  %v2280_v24 = vld [vmem:[%s7889_s2 + $0x44] sm:$0x1] }
  0x2d   :  { %5898 = vmatprep.subr.bf16.mxu0 %v6385_v32  ;;  %5705 = vmatpush3.bf16.msra.mxu1 %v6389_v27  ;;  %v2353_v27 = vrot.slane %v2352_v18, 4  ;;  %v2278_v18 = vld [vmem:[%s7889_s2 + $0x3c] sm:$0xf] }
  0x2e   :  { %5706 = vmatprep.subr.bf16.mxu1 %v6396_v33  ;;  %v2376_v40 = vor.u32 %v2375_v31, %v2371_v30 }
  0x30   :  { %5899 = vmatpush3.bf16.msra.mxu0 %v6385_v32  ;;  %v2381_v32 = vrot.slane %v2379_v25, 5  ;;  %v2377_v51 = vrot.slane %v2376_v40, 4  ;;  %v2432_v25 = vshrl.u32 %v2278_v18, 16 }
  0x31   :  { %5900 = vmatprep.subr.bf16.mxu0 %v6391_v35  ;;  %5707 = vmatpush3.bf16.msra.mxu1 %v6396_v33  ;;  %v6406_v33 = vld [vmem:[%s7886_s4 + $0x28] sm:$0xff]  }
  0x32   :  { %5677 = vmatmul.mubr.bf16.gmra.mrb[8].mxu1 %v6388_v34  ;;  %5708 = vmatprep.subr.bf16.mxu1 %v6402_v53  ;;  %v2348_v34 = vsel %vm6718_vm2, %v2343_v22, %v2347_v9  ;;  %v2382_v60 = vsel %vm6718_vm2, %v2377_v51, %v2381_v32  ;;  %v2427_v9 = vshll.u32 %v2277_v1, 16  ;;  %v2434_v32 = vrot.slane %v2432_v25, 4  ;;  %v2289_v25 = vld [vmem:[%s7889_s2 + $0x68] sm:$0x1] }
  0x33   :  { %5869 = vmatmul.mubr.bf16.gmra.mrb[8].mxu0 %v6390_v36  ;;  %5680 = vmatprep.mubr.bf16.mxu1 %v6393_v37  ;;  %v2366_v36 = vor.u32 %v2365_v29, %v2362_v28  ;;  %v2272_v37 = vld [vmem:[%s7889_s2 + $0x24] sm:$0xf]  ;;  %v2441_v29 = vshll.u32 %v2279_v23, 16 }
  0x34   :  { %5901 = vmatpush3.bf16.msra.mxu0 %v6391_v35  ;;  %5872 = vmatprep.mubr.bf16.mxu0 %v6394_v46  ;;  %v2358_v35 = vsel %vm6718_vm2, %v2353_v27, %v2357_v11  ;;  %v2384_v41 = vshrl.u32 %v2272_v37, 16  ;;  %v2387_v42 = vshll.u32 %v2272_v37, 16  ;;  %v2393_v46 = vshll.u32 %v2273_v38, 16 }
  0x35   :  { %5902 = vmatprep.subr.bf16.mxu0 %v6392_v45  ;;  %5709 = vmatpush3.bf16.msra.mxu1 %v6402_v53  ;;  %v5020_v49 = vcombine.low %v2348_v34, %v2358_v35  ;;  %v2410_v11 = vrot.slane %v2408_v4, 4  ;;  %v2451_v34 = vshll.u32 %v2280_v24, 16  ;;  %v2285_v4 = vld [vmem:[%s7889_s2 + $0x58] sm:$0xf] }
  0x36   :  { %5710 = vmatprep.subr.bf16.mxu1 %v6406_v33  ;;  %v2386_v52 = vrot.slane %v2384_v41, 4  ;;  %v2389_v53 = vrot.slane %v2387_v42, 5  ;;  %v2395_v55 = vrot.slane %v2393_v46, 5  ;;  %v2281_v41 = vld [vmem:[%s7889_s2 + $0x48] sm:$0xf] }
  0x37   :  { %v2414_v22 = vor.u32 %v2413_v12, %v2410_v11  ;;  %v2453_v40 = vrot.slane %v2451_v34, 5  ;;  %v2282_v42 = vld [vmem:[%s7889_s2 + $0x4c] sm:$0xf]  ;;  %v2283_v46 = vld [vmem:[%s7889_s2 + $0x50] sm:$0x1]  ;;  %v2456_v47 = vshrl.u32 %v2281_v41, 16 }
  0x38   :  { %5903 = vmatpush3.bf16.msra.mxu0 %v6392_v45  ;;  %v2367_v45 = vrot.slane %v2366_v36, 4  ;;  %v2400_v3 = vor.u32 %v2399_v56, %v2395_v55  ;;  %v2443_v36 = vrot.slane %v2441_v29, 5  ;;  %v2459_v48 = vshll.u32 %v2281_v41, 16  ;;  %v6413_v29 = vld [vmem:[%s7887_s1 + $0xb4] sm:$0xff]   ;;  %v6419_v41 = vld [vmem:[%s7886_s4 + $0x1a0] sm:$0xff]  }
  0x39   :  { %5904 = vmatprep.subr.bf16.mxu0 %v6398_v61  ;;  %5711 = vmatpush3.bf16.msra.mxu1 %v6406_v33  ;;  %v2415_v31 = vrot.slane %v2414_v22, 4  ;;  %v2465_v51 = vshll.u32 %v2282_v42, 16  ;;  %v2458_v56 = vrot.slane %v2456_v47, 4  ;;  %v2288_v22 = vld [vmem:[%s7889_s2 + $0x64] sm:$0xf] }
  0x3a   :  { %5681 = vmatmul.mubr.bf16.gmra.mrb[12].mxu1 %v6395_v2  ;;  %v2372_v54 = vsel %vm6718_vm2, %v2367_v45, %v2371_v30  ;;  %5712 = vmatprep.subr.bf16.mxu1 %v6410_v59  ;;  %v2401_v10 = vrot.slane %v2400_v3, 4  ;;  %v2445_v30 = vshrl.u32 %v2279_v23, 16  ;;  %v2291_v47 = vld [vmem:[%s7889_s2 + $0x70] sm:$0xf] }
  0x3b   :  { %5873 = vmatmul.mubr.bf16.gmra.mrb[12].mxu0 %v6397_v7  ;;  %5684 = vmatprep.mubr.bf16.mxu1 %v6400_v8  ;;  %v5021_v2 = vcombine.low %v2372_v54, %v2382_v60  ;;  %v2417_v7 = vshll.u32 %v2276_v0, 16  ;;  %v2421_v8 = vshrl.u32 %v2276_v0, 16  ;;  %v6409_v54 = vld [vmem:[%s7887_s1 + $0x9c] sm:$0xff]   ;;  %v6412_v60 = vld [vmem:[%s7887_s1 + $0xa8] sm:$0xff]   ;;  %v2284_v0 = vld [vmem:[%s7889_s2 + $0x54] sm:$0xf] }
  0x3c   :  { %5905 = vmatpush3.bf16.msra.mxu0 %v6398_v61  ;;  %5908 = vmatprep.mubr.bf16.mxu0 %v5019_v17  ;;  %v2390_v61 = vor.u32 %v2389_v53, %v2386_v52  ;;  %v2429_v17 = vrot.slane %v2427_v9, 5  ;;  %v2406_v20 = vsel %vm6718_vm2, %v2401_v10, %v2405_v57  ;;  %v2447_v37 = vrot.slane %v2445_v30, 4  ;;  %v6415_v53 = vld [vmem:[%s7886_s4 + $0x198] sm:$0xff]  }
  0x3d   :  { %5906 = vmatprep.subr.bf16.mxu0 %v6399_v26  ;;  %v2419_v15 = vrot.slane %v2417_v7, 5  ;;  %v2423_v16 = vrot.slane %v2421_v8, 4  ;;  %5713 = vmatpush3.bf16.msra.mxu1 %v6410_v59  ;;  %v2469_v52 = vshrl.u32 %v2282_v42, 16  ;;  %v2461_v57 = vrot.slane %v2459_v48, 5 }
  0x3e   :  { %v2391_v6 = vrot.slane %v2390_v61, 4  ;;  %v2448_v45 = vor.u32 %v2447_v37, %v2443_v36  ;;  %v2467_v61 = vrot.slane %v2465_v51, 5  ;;  %v2483_v9 = vshll.u32 %v2284_v0, 16 }
  0x3f   :  { %v2424_v28 = vor.u32 %v2423_v16, %v2419_v15  ;;  %v2420_v38 = vsel %vm6718_vm2, %v2415_v31, %v2419_v15  ;;  %v2471_v63 = vrot.slane %v2469_v52, 4  ;;  %v2489_v10 = vshll.u32 %v2285_v4, 16 }
  0x40   :  { %5907 = vmatpush3.bf16.msra.mxu0 %v6399_v26  ;;  %v2396_v14 = vsel %vm6718_vm2, %v2391_v6, %v2395_v55  ;;  %v2435_v26 = vshll.u32 %v2278_v18, 16  ;;  %v2449_v55 = vrot.slane %v2448_v45, 4  ;;  %v2480_v6 = vshrl.u32 %v2284_v0, 16 }
  0x41   :  { %5940 = vmatprep.subr.bf16.mxu0 %v6403_v44  ;;  %v5022_v27 = vcombine.low %v2396_v14, %v2406_v20  ;;  %v2425_v35 = vrot.slane %v2424_v28, 4  ;;  %v2472_v8 = vor.u32 %v2471_v63, %v2467_v61  ;;  %v2499_v14 = vshll.u32 %v2286_v5, 16 }
  0x42   :  { %5685 = vmatmul.mubr.bf16.gmra.mrb[16].mxu1 %v6401_v43  ;;  %v2437_v33 = vrot.slane %v2435_v26, 5  ;;  %v6414_v43 = vld [vmem:[%s7886_s4 + $0x38] sm:$0xff]   ;;  %v2454_v1 = vsel %vm6718_vm2, %v2449_v55, %v2453_v40  ;;  %v2482_v12 = vrot.slane %v2480_v6, 4  ;;  %v2485_v16 = vrot.slane %v2483_v9, 5 }
  0x43   :  { %5909 = vmatmul.mubr.bf16.vlgmr.msra.gmra.mrb[0].mxu0 %v5020_v49  ;;  %5688 = vmatprep.mubr.bf16.mxu1 %v6404_v50  ;;  %v2473_v15 = vrot.slane %v2472_v8, 4  ;;  %v2501_v20 = vrot.slane %v2499_v14, 5  ;;  %v2513_v31 = vshll.u32 %v2288_v22, 16  ;;  %v2523_v37 = vshll.u32 %v2289_v25, 16  ;;  %v2294_v6 = vld [vmem:[%s7889_s2 + $0x7c] sm:$0xf] }
  0x44   :  { %5941 = vmatpush3.bf16.msra.mxu0 %v6403_v44  ;;  %5912 = vmatprep.mubr.bf16.mxu0 %v5021_v2  ;;  %v2438_v39 = vor.u32 %v2437_v33, %v2434_v32  ;;  %v2430_v44 = vsel %vm6718_vm2, %v2425_v35, %v2429_v17  ;;  %v2462_v2 = vor.u32 %v2461_v57, %v2458_v56  ;;  %v2491_v17 = vrot.slane %v2489_v10, 5  ;;  %v6870_v33 = vld [vmem:[%s7886_s4 + $0x80] sm:$0xff]  }
  0x45   :  { %5942 = vmatprep.subr.bf16.mxu0 %v6407_v58  ;;  %v5023_v49 = vcombine.low %v2420_v38, %v2430_v44  ;;  %5714 = vmatprep.subr.bf16.mxu1 %v6414_v43  ;;  %v2486_v24 = vor.u32 %v2485_v16, %v2482_v12  ;;  %v2517_v32 = vshrl.u32 %v2288_v22, 16  ;;  %v2525_v45 = vrot.slane %v2523_v37, 5  ;;  %v2296_v25 = vld [vmem:[%s7889_s2 + $0x84] sm:$0xf]  ;;  %v6423_v37 = vld [vmem:[%s7886_s4 + $0x1a8] sm:$0xff]  }
  0x46   :  { %v2439_v50 = vrot.slane %v2438_v39, 4  ;;  %5715 = vmatpush3.bf16.msra.mxu1 %v6414_v43  ;;  %v2463_v11 = vrot.slane %v2462_v2, 4  ;;  %v2515_v39 = vrot.slane %v2513_v31, 5  ;;  %v6416_v43 = vld [vmem:[%s7890_s0] sm:$0xff]   ;;  %v2537_v55 = vshll.u32 %v2291_v47, 16 }
  0x47   :  { %v2487_v34 = vrot.slane %v2486_v24, 4  ;;  %v2519_v40 = vrot.slane %v2517_v32, 4  ;;  %5748 = vmatprep.subr.bf16.mxu1 %v6870_v33  ;;  %v2541_v56 = vshrl.u32 %v2291_v47, 16  ;;  %v2565_v16 = vshrl.u32 %v2294_v6, 16 }
  0x48   :  { %5943 = vmatpush3.bf16.msra.mxu0 %v6407_v58  ;;  %v2475_v58 = vshll.u32 %v2283_v46, 16  ;;  %v2444_v59 = vsel %vm6718_vm2, %v2439_v50, %v2443_v36  ;;  %v2468_v18 = vsel %vm6718_vm2, %v2463_v11, %v2467_v61  ;;  %v2290_v46 = vld [vmem:[%s7889_s2 + $0x6c] sm:$0xf]  ;;  %v2292_v50 = vld [vmem:[%s7889_s2 + $0x74] sm:$0x1]  ;;  %v2539_v63 = vrot.slane %v2537_v55, 5 }
  0x49   :  { %5944 = vmatprep.subr.bf16.mxu0 %v6411_v19  ;;  %v5024_v7 = vcombine.low %v2444_v59, %v2454_v1  ;;  %v2492_v42 = vsel %vm6718_vm2, %v2487_v34, %v2491_v17  ;;  %v2528_v51 = vshrl.u32 %v2290_v46, 16  ;;  %v2531_v52 = vshll.u32 %v2290_v46, 16  ;;  %v2293_v1 = vld [vmem:[%s7889_s2 + $0x78] sm:$0xf] }
  0x4a   :  { %5689 = vmatmul.mubr.bf16.gmra.mrb[20].mxu1 %v6405_v13  ;;  %v2477_v3 = vrot.slane %v2475_v58, 5  ;;  %v2493_v13 = vshrl.u32 %v2285_v4, 16  ;;  %v2543_v0 = vrot.slane %v2541_v56, 4  ;;  %v2552_v8 = vshrl.u32 %v2293_v1, 16  ;;  %v6420_v11 = vld [vmem:[%s7890_s0 + $0x18] sm:$0xff]  }
  0x4b   :  { %5913 = vmatmul.mubr.bf16.gmra.mrb[4].mxu0 %v5022_v27  ;;  %5692 = vmatprep.mubr.bf16.mxu1 %v6408_v21  ;;  %v2287_v21 = vld [vmem:[%s7889_s2 + $0x60] sm:$0xf]  ;;  %v2530_v58 = vrot.slane %v2528_v51, 4  ;;  %v2533_v59 = vrot.slane %v2531_v52, 5  ;;  %v2555_v12 = vshll.u32 %v2293_v1, 16  ;;  %v2579_v31 = vshll.u32 %v2296_v25, 16 }
  0x4c   :  { %5945 = vmatpush3.bf16.msra.mxu0 %v6411_v19  ;;  %5916 = vmatprep.mubr.bf16.mxu0 %v5023_v49  ;;  %v2495_v19 = vrot.slane %v2493_v13, 4  ;;  %v2478_v23 = vsel %vm6718_vm2, %v2473_v15, %v2477_v3  ;;  %v2504_v26 = vshrl.u32 %v2287_v21, 16  ;;  %v2507_v27 = vshll.u32 %v2287_v21, 16  ;;  %v6417_v3 = vld [vmem:[%s7890_s0 + $0xc] sm:$0xff]  }
  0x4d   :  { %5946 = vmatprep.subr.bf16.mxu0 %v6415_v53  ;;  %v5025_v28 = vcombine.low %v2468_v18, %v2478_v23  ;;  %v2520_v49 = vor.u32 %v2519_v40, %v2515_v39  ;;  %v2534_v4 = vor.u32 %v2533_v59, %v2530_v58  ;;  %v2544_v10 = vor.u32 %v2543_v0, %v2539_v63  ;;  %v6422_v21 = vld [vmem:[%s7886_s4 + $0x88] sm:$0xff]   ;;  %v6426_v51 = vld [vmem:[%s7886_s4 + $0x90] sm:$0xff]  }
  0x4e   :  { %v2496_v30 = vor.u32 %v2495_v19, %v2491_v17  ;;  %v2506_v35 = vrot.slane %v2504_v26, 4  ;;  %v2509_v36 = vrot.slane %v2507_v27, 5  ;;  %v2561_v13 = vshll.u32 %v2294_v6, 16  ;;  %v2297_v26 = vld [vmem:[%s7889_s2 + $0x88] sm:$0xf] }
  0x4f   :  { %v2521_v57 = vrot.slane %v2520_v49, 4  ;;  %v2535_v14 = vrot.slane %v2534_v4, 4  ;;  %v2554_v15 = vrot.slane %v2552_v8, 4  ;;  %v2545_v18 = vrot.slane %v2544_v10, 4  ;;  %v2299_v49 = vld [vmem:[%s7889_s2 + $0x90] sm:$0xf] }
  0x50   :  { %5947 = vmatpush3.bf16.msra.mxu0 %v6415_v53  ;;  %v2497_v38 = vrot.slane %v2496_v30, 4  ;;  %v2510_v44 = vor.u32 %v2509_v36, %v2506_v35  ;;  %v2557_v19 = vrot.slane %v2555_v12, 5  ;;  %v2567_v23 = vrot.slane %v2565_v16, 4  ;;  %v2302_v6 = vld [vmem:[%s7889_s2 + $0x9c] sm:$0xf] }
  0x51   :  { %5948 = vmatprep.subr.bf16.mxu0 %v6419_v41  ;;  %v2526_v2 = vsel %vm6718_vm2, %v2521_v57, %v2525_v45  ;;  %v2540_v22 = vsel %vm6718_vm2, %v2535_v14, %v2539_v63  ;;  %v2576_v30 = vshrl.u32 %v2296_v25, 16  ;;  %v2585_v35 = vshll.u32 %v2297_v26, 16  ;;  %v2303_v10 = vld [vmem:[%s7889_s2 + $0xa0] sm:$0xf]  ;;  %v6428_v25 = vld [vmem:[%s7890_s0 + $0x48] sm:$0xff]  }
  0x52   :  { %5693 = vmatmul.mubr.bf16.gmra.mrb[24].mxu1 %v6409_v54  ;;  %v2502_v48 = vsel %vm6718_vm2, %v2497_v38, %v2501_v20  ;;  %v2511_v54 = vrot.slane %v2510_v44, 4  ;;  %v2563_v20 = vrot.slane %v2561_v13, 5  ;;  %v2589_v36 = vshrl.u32 %v2297_v26, 16 }
  0x53   :  { %5917 = vmatmul.mubr.bf16.gmra.mrb[8].mxu0 %v5024_v7  ;;  %5696 = vmatprep.mubr.bf16.mxu1 %v6412_v60  ;;  %v5026_v53 = vcombine.low %v2492_v42, %v2502_v48  ;;  %v2547_v60 = vshll.u32 %v2292_v50, 16  ;;  %v2295_v7 = vld [vmem:[%s7889_s2 + $0x80] sm:$0x1]  ;;  %v2581_v40 = vrot.slane %v2579_v31, 5  ;;  %v2587_v44 = vrot.slane %v2585_v35, 5 }
  0x54   :  { %5920 = vmatprep.mubr.bf16.mxu0 %v5025_v28  ;;  %5949 = vmatpush3.bf16.msra.mxu0 %v6419_v41  ;;  %v2516_v61 = vsel %vm6718_vm2, %v2511_v54, %v2515_v39  ;;  %v2571_v17 = vshll.u32 %v2295_v7, 16  ;;  %v2558_v28 = vor.u32 %v2557_v19, %v2554_v15  ;;  %v2568_v34 = vor.u32 %v2567_v23, %v2563_v20  ;;  %v2300_v50 = vld [vmem:[%s7889_s2 + $0x94] sm:$0xf]  ;;  %v2301_v54 = vld [vmem:[%s7889_s2 + $0x98] sm:$0x1] }
  0x55   :  { %v2549_v5 = vrot.slane %v2547_v60, 5  ;;  %v5027_v9 = vcombine.low %v2516_v61, %v2526_v2  ;;  %v2578_v39 = vrot.slane %v2576_v30, 4  ;;  %v2591_v45 = vrot.slane %v2589_v36, 4  ;;  %5950 = vmatprep.subr.bf16.mxu0 %v6423_v37  ;;  %v6427_v61 = vld [vmem:[%s7886_s4 + $0x1b0] sm:$0xff]   ;;  %v2306_v30 = vld [vmem:[%s7889_s2 + $0xac] sm:$0xf] }
  0x56   :  { %v2573_v24 = vrot.slane %v2571_v17, 5  ;;  %v2559_v38 = vrot.slane %v2558_v28, 4  ;;  %v2569_v42 = vrot.slane %v2568_v34, 4  ;;  %v2600_v55 = vshrl.u32 %v2299_v49, 16  ;;  %v2307_v34 = vld [vmem:[%s7889_s2 + $0xb0] sm:$0x1] }
  0x57   :  { %v2550_v27 = vsel %vm6718_vm2, %v2545_v18, %v2549_v5  ;;  %v2582_v47 = vor.u32 %v2581_v40, %v2578_v39  ;;  %v2603_v56 = vshll.u32 %v2299_v49, 16  ;;  %v2609_v59 = vshll.u32 %v2300_v50, 16  ;;  %v6425_v18 = vld [vmem:[%s7890_s0 + $0x3c] sm:$0xff]  }
  0x58   :  { %v5028_v32 = vcombine.low %v2540_v22, %v2550_v27  ;;  %v2564_v46 = vsel %vm6718_vm2, %v2559_v38, %v2563_v20  ;;  %v2574_v52 = vsel %vm6718_vm2, %v2569_v42, %v2573_v24  ;;  %5951 = vmatpush3.bf16.msra.mxu0 %v6423_v37  ;;  %v2613_v60 = vshrl.u32 %v2300_v50, 16 }
  0x59   :  { %v5029_v57 = vcombine.low %v2564_v46, %v2574_v52  ;;  %v2583_v58 = vrot.slane %v2582_v47, 4  ;;  %v2602_v0 = vrot.slane %v2600_v55, 4  ;;  %v2605_v1 = vrot.slane %v2603_v56, 5  ;;  %5952 = vmatprep.subr.bf16.mxu0 %v6427_v61  ;;  %v2308_v52 = vld [vmem:[%s7889_s2 + $0xb4] sm:$0xf] }
  0x5a   :  { %5697 = vmatmul.mubr.bf16.gmra.mrb[28].mxu1 %v6413_v29  ;;  %v2298_v29 = vld [vmem:[%s7889_s2 + $0x8c] sm:$0x1]  ;;  %v2619_v2 = vshll.u32 %v2301_v54, 16  ;;  %v2611_v4 = vrot.slane %v2609_v59, 5  ;;  %v2615_v5 = vrot.slane %v2613_v60, 4  ;;  %v2624_v12 = vshrl.u32 %v2302_v6, 16 }
  0x5b   :  { %5921 = vmatmul.mubr.bf16.gmra.mrb[12].mxu0 %v5026_v53  ;;  %5716 = vmatprep.mubr.bf16.mxu1 %v6416_v43  ;;  %v2595_v41 = vshll.u32 %v2298_v29, 16  ;;  %v6421_v43 = vld [vmem:[%s7890_s0 + $0x24] sm:$0xff]   ;;  %v2592_v53 = vor.u32 %v2591_v45, %v2587_v44  ;;  %v2606_v8 = vor.u32 %v2605_v1, %v2602_v0  ;;  %v2627_v15 = vshll.u32 %v2302_v6, 16  ;;  %v6429_v56 = vld [vmem:[%s7890_s0 + $0x54] sm:$0xff]  }
  0x5c   :  { %5924 = vmatprep.mubr.bf16.mxu0 %v5027_v9  ;;  %v2621_v9 = vrot.slane %v2619_v2, 5  ;;  %5953 = vmatpush3.bf16.msra.mxu0 %v6427_v61  ;;  %v2616_v14 = vor.u32 %v2615_v5, %v2611_v4  ;;  %v2633_v16 = vshll.u32 %v2303_v10, 16  ;;  %v2626_v19 = vrot.slane %v2624_v12, 4  ;;  %v2305_v29 = vld [vmem:[%s7889_s2 + $0xa8] sm:$0xf]  ;;  %v6432_v1 = vld [vmem:[%s7890_s0 + $0x60] sm:$0xff]  }
  0x5d   :  { %v2597_v48 = vrot.slane %v2595_v41, 5  ;;  %v2593_v63 = vrot.slane %v2592_v53, 4  ;;  %v2607_v17 = vrot.slane %v2606_v8, 4  ;;  %v2637_v20 = vshrl.u32 %v2303_v10, 16  ;;  %v6430_v41 = vld [vmem:[%s7886_s4 + $0x98] sm:$0xff]  }
  0x5e   :  { %v2617_v22 = vrot.slane %v2616_v14, 4  ;;  %v2629_v23 = vrot.slane %v2627_v15, 5  ;;  %v2635_v24 = vrot.slane %v2633_v16, 5  ;;  %v2648_v35 = vshrl.u32 %v2305_v29, 16  ;;  %v2309_v53 = vld [vmem:[%s7889_s2 + $0xb8] sm:$0xf] }
  0x5f   :  { %v2598_v7 = vsel %vm6718_vm2, %v2593_v63, %v2597_v48  ;;  %v2612_v26 = vsel %vm6718_vm2, %v2607_v17, %v2611_v4  ;;  %v2639_v27 = vrot.slane %v2637_v20, 4  ;;  %v2651_v36 = vshll.u32 %v2305_v29, 16  ;;  %v6435_v15 = vld [vmem:[%s7886_s4 + $0xa0] sm:$0xff]   ;;  %v6433_v20 = vld [vmem:[%s7890_s0 + $0xc] sm:$0xff]  }
  0x60   :  { %v2622_v31 = vsel %vm6718_vm2, %v2617_v22, %v2621_v9  ;;  %v2657_v39 = vshll.u32 %v2306_v30, 16  ;;  %v2661_v40 = vshrl.u32 %v2306_v30, 16  ;;  %v2667_v45 = vshll.u32 %v2307_v34, 16  ;;  %v6434_v22 = vld [vmem:[%s7890_s0 + $0x6c] sm:$0xff]   ;;  %v6445_v34 = vld [vmem:[%s7890_s0 + $0x3c] sm:$0xff]  }
  0x61   :  { %v5031_v37 = vcombine.low %v2612_v26, %v2622_v31  ;;  %v2640_v38 = vor.u32 %v2639_v27, %v2635_v24  ;;  %v2675_v59 = vshll.u32 %v2308_v52, 16  ;;  %v2681_v63 = vshll.u32 %v2309_v53, 16  ;;  %v6439_v26 = vld [vmem:[%s7890_s0 + $0x24] sm:$0xff]   ;;  %v6447_v29 = vld [vmem:[%s7886_s4 + $0xb0] sm:$0xff]  }
  0x62   :  { %5717 = vmatmul.mubr.bf16.vlgmr.msra.gmra.mrb[0].mxu1 %v6417_v3  ;;  %v2588_v3 = vsel %vm6718_vm2, %v2583_v58, %v2587_v44  ;;  %v2653_v44 = vrot.slane %v2651_v36, 5  ;;  %v2659_v47 = vrot.slane %v2657_v39, 5  ;;  %v2663_v48 = vrot.slane %v2661_v40, 4  ;;  %v6440_v27 = vld [vmem:[%s7890_s0 + $0x84] sm:$0xff]   ;;  %v6444_v30 = vld [vmem:[%s7890_s0 + $0x90] sm:$0xff]   ;;  %v6453_v36 = vld [vmem:[%s7886_s4 + $0xb8] sm:$0xff]  }
  0x63   :  { %5749 = vmatpush3.bf16.msra.mxu1 %v6870_v33  ;;  %5720 = vmatprep.mubr.bf16.mxu1 %v6420_v11  ;;  %v6424_v33 = vld [vmem:[%s7890_s0 + $0x30] sm:$0xff]   ;;  %v2304_v11 = vld [vmem:[%s7889_s2 + $0xa4] sm:$0x1]  ;;  %v5030_v13 = vcombine.low %v2588_v3, %v2598_v7  ;;  %v2641_v46 = vrot.slane %v2640_v38, 4  ;;  %v2672_v58 = vshrl.u32 %v2308_v52, 16  ;;  %v2685_v0 = vshrl.u32 %v2309_v53, 16 }
  0x64   :  { %5925 = vmatmul.mubr.bf16.gmra.mrb[16].mxu0 %v5028_v32  ;;  %5750 = vmatprep.subr.bf16.mxu1 %v6422_v21  ;;  %v2630_v32 = vor.u32 %v2629_v23, %v2626_v19  ;;  %v2664_v55 = vor.u32 %v2663_v48, %v2659_v47  ;;  %v2677_v4 = vrot.slane %v2675_v59, 5  ;;  %v2683_v7 = vrot.slane %v2681_v63, 5  ;;  %v6438_v23 = vld [vmem:[%s7890_s0 + $0x78] sm:$0xff]   ;;  %v6442_v31 = vld [vmem:[%s7890_s0 + $0x30] sm:$0xff]   ;;  %v734_v39 = vld [vmem:[%s7890_s0] sm:$0xf] }
  0x65   :  { %5928 = vmatprep.mubr.bf16.mxu0 %v5029_v57  ;;  %v2310_v57 = vld [vmem:[%s7889_s2 + $0xbc] sm:$0x1]  ;;  %v2674_v3 = vrot.slane %v2672_v58, 4  ;;  %v2687_v8 = vrot.slane %v2685_v0, 4  ;;  %v735_v40 = vld [vmem:[%s7890_s0 + $0x4] sm:$0xf] }
  0x66   :  { %v2631_v42 = vrot.slane %v2630_v32, 4  ;;  %v2665_v2 = vrot.slane %v2664_v55, 4  ;;  %v2691_v5 = vshll.u32 %v2310_v57, 16  ;;  %v6449_v32 = vld [vmem:[%s7886_s4 + $0x1d0] sm:$0xff]   ;;  %v6455_v38 = vld [vmem:[%s7886_s4 + $0x1d8] sm:$0xff]  }
  0x67   :  { %5751 = vmatpush3.bf16.msra.mxu1 %v6422_v21  ;;  %v2643_v21 = vshll.u32 %v2304_v11, 16  ;;  %v2678_v10 = vor.u32 %v2677_v4, %v2674_v3  ;;  %v738_v53 = vld [vmem:[%s7890_s0 + $0x10] sm:$0xf] }
  0x68   :  { %5752 = vmatprep.subr.bf16.mxu1 %v6426_v51  ;;  %v2636_v49 = vsel %vm6718_vm2, %v2631_v42, %v2635_v24  ;;  %v2693_v11 = vrot.slane %v2691_v5, 5  ;;  %v6441_v24 = vld [vmem:[%s7886_s4 + $0xa8] sm:$0xff]   ;;  %v786_v42 = vshrl.u32 %v734_v39, 16  ;;  %v823_v63 = vshrl.u32 %v738_v53, 16 }
  0x69   :  { %v2645_v28 = vrot.slane %v2643_v21, 5  ;;  %v2679_v14 = vrot.slane %v2678_v10, 4 }
  0x6a   :  { %5721 = vmatmul.mubr.bf16.gmra.mrb[4].mxu1 %v6421_v43  ;;  %v2650_v43 = vrot.slane %v2648_v35, 4  ;;  %v6446_v35 = vld [vmem:[%s7890_s0 + $0x9c] sm:$0xff]  }
  0x6b   :  { %5724 = vmatprep.mubr.bf16.mxu1 %v6424_v33  ;;  %5753 = vmatpush3.bf16.msra.mxu1 %v6426_v51  ;;  %v6431_v33 = vld [vmem:[%s7886_s4 + $0x1b8] sm:$0xff]   ;;  %v2669_v51 = vrot.slane %v2667_v45, 5  ;;  %v2646_v54 = vsel %vm6718_vm2, %v2641_v46, %v2645_v28  ;;  %v2684_v17 = vsel %vm6718_vm2, %v2679_v14, %v2683_v7  ;;  %v6443_v28 = vld [vmem:[%s7886_s4 + $0x1c8] sm:$0xff]   ;;  %v799_v45 = vshrl.u32 %v735_v40, 16 }
  0x6c   :  { %5929 = vmatmul.mubr.bf16.gmra.mrb[20].mxu0 %v5030_v13  ;;  %v2654_v50 = vor.u32 %v2653_v44, %v2650_v43  ;;  %5754 = vmatprep.subr.bf16.mxu1 %v6430_v41  ;;  %v5032_v60 = vcombine.low %v2636_v49, %v2646_v54  ;;  %v2688_v13 = vor.u32 %v2687_v8, %v2683_v7  ;;  %v789_v43 = vshll.u32 %v734_v39, 16  ;;  %v739_v54 = vld [vmem:[%s7890_s0 + $0x14] sm:$0x1]  ;;  %v741_v14 = vld [vmem:[%s7890_s0 + $0x1c] sm:$0xf] }
  0x6d   :  { %5932 = vmatprep.mubr.bf16.mxu0 %v5031_v37  ;;  %5954 = vmatprep.subr.bf16.mxu0 %v6431_v33  ;;  %v2670_v9 = vsel %vm6718_vm2, %v2665_v2, %v2669_v51  ;;  %v6450_v37 = vld [vmem:[%s7890_s0 + $0xa8] sm:$0xff]   ;;  %v795_v44 = vshll.u32 %v735_v40, 16  ;;  %v801_v49 = vrot.slane %v799_v45, 4  ;;  %v829_v0 = vshll.u32 %v739_v54, 16 }
  0x6e   :  { %v2655_v61 = vrot.slane %v2654_v50, 4  ;;  %5955 = vmatpush3.bf16.msra.mxu0 %v6431_v33  ;;  %v2689_v16 = vrot.slane %v2688_v13, 4  ;;  %v791_v48 = vrot.slane %v789_v43, 5  ;;  %v737_v50 = vld [vmem:[%s7890_s0 + $0xc] sm:$0xf]  ;;  %v825_v7 = vrot.slane %v823_v63, 4 }
  0x6f   :  { %5755 = vmatpush3.bf16.msra.mxu1 %v6430_v41  ;;  %v736_v41 = vld [vmem:[%s7890_s0 + $0x8] sm:$0x1]  ;;  %v797_v33 = vrot.slane %v795_v44, 5  ;;  %v810_v55 = vshrl.u32 %v737_v50, 16  ;;  %v813_v59 = vshll.u32 %v737_v50, 16  ;;  %v831_v8 = vrot.slane %v829_v0, 5 }
  0x70   :  { %v2660_v6 = vsel %vm6718_vm2, %v2655_v61, %v2659_v47  ;;  %5756 = vmatprep.subr.bf16.mxu1 %v6435_v15  ;;  %v2694_v19 = vsel %vm6718_vm2, %v2689_v16, %v2693_v11  ;;  %v805_v46 = vshll.u32 %v736_v41, 16  ;;  %v788_v47 = vrot.slane %v786_v42, 4  ;;  %v6448_v51 = vld [vmem:[%s7890_s0 + $0x48] sm:$0xff]   ;;  %v740_v13 = vld [vmem:[%s7890_s0 + $0x18] sm:$0xf] }
  0x71   :  { %v5033_v12 = vcombine.low %v2660_v6, %v2670_v9  ;;  %v5034_v21 = vcombine.low %v2684_v17, %v2694_v19  ;;  %v802_v58 = vor.u32 %v801_v49, %v797_v33  ;;  %v812_v61 = vrot.slane %v810_v55, 4  ;;  %v6452_v6 = vld [vmem:[%s7890_s0 + $0xb4] sm:$0xff]   ;;  %v6459_v9 = vld [vmem:[%s7886_s4 + $0x1e0] sm:$0xff]   ;;  %v6463_v55 = vld [vmem:[%s7886_s4 + $0x1e8] sm:$0xff]  }
  0x72   :  { %5725 = vmatmul.mubr.bf16.gmra.mrb[8].mxu1 %v6425_v18  ;;  %v6437_v18 = vld [vmem:[%s7886_s4 + $0x1c0] sm:$0xff]   ;;  %v807_v52 = vrot.slane %v805_v46, 5  ;;  %v792_v57 = vor.u32 %v791_v48, %v788_v47  ;;  %v815_v4 = vrot.slane %v813_v59, 5  ;;  %v837_v19 = vshll.u32 %v740_v13, 16  ;;  %v747_v59 = vld [vmem:[%s7890_s0 + $0x34] sm:$0xf] }
  0x73   :  { %5728 = vmatprep.mubr.bf16.mxu1 %v6428_v25  ;;  %5757 = vmatpush3.bf16.msra.mxu1 %v6435_v15  ;;  %v6436_v25 = vld [vmem:[%s7890_s0 + $0x18] sm:$0xff]   ;;  %v803_v3 = vrot.slane %v802_v58, 4  ;;  %v742_v17 = vld [vmem:[%s7890_s0 + $0x20] sm:$0x1] }
  0x74   :  { %5933 = vmatmul.mubr.bf16.gmra.mrb[24].mxu0 %v5032_v60  ;;  %5988 = vmatprep.subr.bf16.mxu0 %v6437_v18  ;;  %v819_v60 = vshll.u32 %v738_v53, 16  ;;  %v793_v2 = vrot.slane %v792_v57, 4  ;;  %v6458_v0 = vld [vmem:[%s7890_s0 + $0x78] sm:$0xff]  }
  0x75   :  { %5936 = vmatprep.mubr.bf16.mxu0 %v5033_v12  ;;  %5758 = vmatprep.subr.bf16.mxu1 %v6441_v24  ;;  %v808_v11 = vsel %vm6718_vm2, %v803_v3, %v807_v52  ;;  %v816_v12 = vor.u32 %v815_v4, %v812_v61  ;;  %v891_v4 = vshll.u32 %v747_v59, 16 }
  0x76   :  { %v821_v5 = vrot.slane %v819_v60, 5  ;;  %v798_v10 = vsel %vm6718_vm2, %v793_v2, %v797_v33  ;;  %v748_v60 = vld [vmem:[%s7890_s0 + $0x38] sm:$0x1] }
  0x77   :  { %5759 = vmatpush3.bf16.msra.mxu1 %v6441_v24  ;;  %v4899_v15 = vcombine.low %v798_v10, %v808_v11  ;;  %v6454_v24 = vld [vmem:[%s7890_s0 + $0x60] sm:$0xff]   ;;  %v901_v10 = vshll.u32 %v748_v60, 16  ;;  %v756_v60 = vld [vmem:[%s7890_s0 + $0x58] sm:$0xf] }
  0x78   :  { %5760 = vmatprep.subr.bf16.mxu1 %v6447_v29  ;;  %v826_v16 = vor.u32 %v825_v7, %v821_v5 }
  0x7a   :  { %5729 = vmatmul.mubr.bf16.gmra.mrb[12].mxu1 %v6429_v56  ;;  %v6451_v56 = vld [vmem:[%s7890_s0 + $0x54] sm:$0xff]  }
  0x7b   :  { %5732 = vmatprep.mubr.bf16.mxu1 %v6432_v1  ;;  %5761 = vmatpush3.bf16.msra.mxu1 %v6447_v29  ;;  %v7105_v1 = vld [vmem:[%s7886_s4 + $0xc0] sm:$0xff]   ;;  %v6456_v29 = vld [vmem:[%s7890_s0 + $0x6c] sm:$0xff]  }
  0x7c   :  { %5937 = vmatmul.mubr.bf16.gmra.mrb[28].mxu0 %v5034_v21  ;;  %5762 = vmatprep.subr.bf16.mxu1 %v6453_v36  ;;  %v843_v21 = vshll.u32 %v741_v14, 16 }
  0x7d   :  { %5956 = vmatprep.mubr.bf16.mxu0 %v6433_v20  ;;  %v817_v20 = vrot.slane %v816_v12, 4  ;;  %v893_v12 = vrot.slane %v891_v4, 5 }
  0x7f   :  { %5763 = vmatpush3.bf16.msra.mxu1 %v6453_v36 }
  0x80   :  { %5796 = vmatprep.subr.bf16.mxu1 %v7105_v1 }
  0x82   :  { %5733 = vmatmul.mubr.bf16.gmra.mrb[16].mxu1 %v6434_v22  ;;  %v847_v22 = vshrl.u32 %v741_v14, 16  ;;  %v750_v14 = vld [vmem:[%s7890_s0 + $0x40] sm:$0xf] }
  0x83   :  { %5736 = vmatprep.mubr.bf16.mxu1 %v6438_v23  ;;  %v853_v23 = vshll.u32 %v742_v17, 16  ;;  %v903_v17 = vrot.slane %v901_v10, 5 }
  0x84   :  { %5957 = vmatmul.mubr.bf16.vlgmr.msra.gmra.mrb[0].mxu0 %v6436_v25  ;;  %v827_v25 = vrot.slane %v826_v16, 4 }
  0x85   :  { %5989 = vmatpush3.bf16.msra.mxu0 %v6437_v18  ;;  %5960 = vmatprep.mubr.bf16.mxu0 %v6439_v26  ;;  %v834_v18 = vshrl.u32 %v740_v13, 16 }
  0x86   :  { %5990 = vmatprep.subr.bf16.mxu0 %v6443_v28  ;;  %v832_v36 = vsel %vm6718_vm2, %v827_v25, %v831_v8 }
  0x87   :  { %v836_v26 = vrot.slane %v834_v18, 4  ;;  %v751_v18 = vld [vmem:[%s7890_s0 + $0x44] sm:$0x1] }
  0x89   :  { %5991 = vmatpush3.bf16.msra.mxu0 %v6443_v28  ;;  %v743_v28 = vld [vmem:[%s7890_s0 + $0x24] sm:$0xf] }
  0x8a   :  { %5737 = vmatmul.mubr.bf16.gmra.mrb[20].mxu1 %v6440_v27  ;;  %5992 = vmatprep.subr.bf16.mxu0 %v6449_v32  ;;  %v839_v27 = vrot.slane %v837_v19, 5  ;;  %v858_v39 = vshrl.u32 %v743_v28, 16  ;;  %v861_v40 = vshll.u32 %v743_v28, 16  ;;  %v925_v28 = vshll.u32 %v751_v18, 16 }
  0x8b   :  { %5740 = vmatprep.mubr.bf16.mxu1 %v6444_v30  ;;  %v822_v30 = vsel %vm6718_vm2, %v817_v20, %v821_v5  ;;  %v895_v5 = vshrl.u32 %v747_v59, 16 }
  0x8c   :  { %5961 = vmatmul.mubr.bf16.gmra.mrb[4].mxu0 %v6442_v31  ;;  %v845_v31 = vrot.slane %v843_v21, 5  ;;  %v4900_v41 = vcombine.low %v822_v30, %v832_v36  ;;  %v860_v46 = vrot.slane %v858_v39, 4  ;;  %v863_v47 = vrot.slane %v861_v40, 5  ;;  %v752_v39 = vld [vmem:[%s7890_s0 + $0x48] sm:$0xf] }
  0x8d   :  { %5964 = vmatprep.mubr.bf16.mxu0 %v6445_v34  ;;  %5993 = vmatpush3.bf16.msra.mxu0 %v6449_v32  ;;  %v849_v32 = vrot.slane %v847_v22, 4  ;;  %v855_v34 = vrot.slane %v853_v23, 5  ;;  %v897_v13 = vrot.slane %v895_v5, 4  ;;  %v915_v23 = vshll.u32 %v750_v14, 16  ;;  %v753_v40 = vld [vmem:[%s7890_s0 + $0x4c] sm:$0xf] }
  0x8e   :  { %5994 = vmatprep.subr.bf16.mxu0 %v6455_v38  ;;  %v864_v53 = vor.u32 %v863_v47, %v860_v46  ;;  %v927_v36 = vrot.slane %v925_v28, 5  ;;  %v6462_v46 = vld [vmem:[%s7890_s0 + $0x90] sm:$0xff]  }
  0x8f   :  { %v850_v42 = vor.u32 %v849_v32, %v845_v31  ;;  %v898_v21 = vor.u32 %v897_v13, %v893_v12  ;;  %v6467_v32 = vld [vmem:[%s7886_s4 + $0x1f0] sm:$0xff]   ;;  %v6466_v13 = vld [vmem:[%s7890_s0 + $0xa8] sm:$0xff]  }
  0x90   :  { %v865_v3 = vrot.slane %v864_v53, 4  ;;  %v6468_v28 = vld [vmem:[%s7890_s0 + $0xb4] sm:$0xff]  }
  0x91   :  { %5995 = vmatpush3.bf16.msra.mxu0 %v6455_v38  ;;  %v745_v38 = vld [vmem:[%s7890_s0 + $0x2c] sm:$0x1]  ;;  %v851_v33 = vrot.slane %v850_v42, 4 }
  0x92   :  { %5741 = vmatmul.mubr.bf16.gmra.mrb[24].mxu1 %v6446_v35  ;;  %5996 = vmatprep.subr.bf16.mxu0 %v6459_v9  ;;  %v744_v35 = vld [vmem:[%s7890_s0 + $0x28] sm:$0xf]  ;;  %v877_v48 = vshll.u32 %v745_v38, 16 }
  0x93   :  { %5744 = vmatprep.mubr.bf16.mxu1 %v6450_v37  ;;  %v840_v37 = vor.u32 %v839_v27, %v836_v26  ;;  %v867_v43 = vshll.u32 %v744_v35, 16  ;;  %v871_v44 = vshrl.u32 %v744_v35, 16  ;;  %v856_v57 = vsel %vm6718_vm2, %v851_v33, %v855_v34 }
  0x94   :  { %5965 = vmatmul.mubr.bf16.gmra.mrb[8].mxu0 %v6448_v51  ;;  %v6461_v51 = vld [vmem:[%s7886_s4 + $0xc8] sm:$0xff]   ;;  %v879_v54 = vrot.slane %v877_v48, 5  ;;  %v919_v27 = vshrl.u32 %v750_v14, 16  ;;  %v939_v48 = vshll.u32 %v753_v40, 16  ;;  %v943_v33 = vshrl.u32 %v753_v40, 16 }
  0x95   :  { %5968 = vmatprep.mubr.bf16.mxu0 %v6451_v56  ;;  %5997 = vmatpush3.bf16.msra.mxu0 %v6459_v9  ;;  %v841_v45 = vrot.slane %v840_v37, 4  ;;  %v869_v49 = vrot.slane %v867_v43, 5  ;;  %v873_v50 = vrot.slane %v871_v44, 4  ;;  %v746_v56 = vld [vmem:[%s7890_s0 + $0x30] sm:$0xf]  ;;  %v930_v44 = vshrl.u32 %v752_v39, 16 }
  0x96   :  { %v882_v61 = vshrl.u32 %v746_v56, 16  ;;  %v885_v63 = vshll.u32 %v746_v56, 16  ;;  %5998 = vmatprep.subr.bf16.mxu0 %v6463_v55  ;;  %v921_v35 = vrot.slane %v919_v27, 4  ;;  %v761_v40 = vld [vmem:[%s7890_s0 + $0x6c] sm:$0xf] }
  0x97   :  { %v846_v52 = vsel %vm6718_vm2, %v841_v45, %v845_v31  ;;  %v874_v58 = vor.u32 %v873_v50, %v869_v49  ;;  %v870_v11 = vsel %vm6718_vm2, %v865_v3, %v869_v49  ;;  %v917_v31 = vrot.slane %v915_v23, 5  ;;  %v6469_v50 = vld [vmem:[%s7886_s4 + $0xd8] sm:$0xff]   ;;  %v759_v23 = vld [vmem:[%s7890_s0 + $0x64] sm:$0xf] }
  0x98   :  { %v4901_v2 = vcombine.low %v846_v52, %v856_v57  ;;  %v884_v8 = vrot.slane %v882_v61, 4  ;;  %v887_v9 = vrot.slane %v885_v63, 5  ;;  %v933_v45 = vshll.u32 %v752_v39, 16  ;;  %v6471_v61 = vld [vmem:[%s7886_s4 + $0x1f8] sm:$0xff]  }
  0x99   :  { %v875_v7 = vrot.slane %v874_v58, 4  ;;  %5999 = vmatpush3.bf16.msra.mxu0 %v6463_v55  ;;  %v922_v43 = vor.u32 %v921_v35, %v917_v31  ;;  %v932_v53 = vrot.slane %v930_v44, 4  ;;  %v755_v55 = vld [vmem:[%s7890_s0 + $0x54] sm:$0xf]  ;;  %v941_v57 = vrot.slane %v939_v48, 5 }
  0x9a   :  { %5745 = vmatmul.mubr.bf16.gmra.mrb[28].mxu1 %v6452_v6  ;;  %v6460_v6 = vld [vmem:[%s7890_s0 + $0x84] sm:$0xff]   ;;  %v888_v16 = vor.u32 %v887_v9, %v884_v8  ;;  %6000 = vmatprep.subr.bf16.mxu0 %v6467_v32  ;;  %v945_v58 = vrot.slane %v943_v33, 4  ;;  %v954_v3 = vshrl.u32 %v755_v55, 16  ;;  %v957_v4 = vshll.u32 %v755_v55, 16 }
  0x9b   :  { %5764 = vmatprep.mubr.bf16.mxu1 %v4899_v15  ;;  %v880_v15 = vsel %vm6718_vm2, %v875_v7, %v879_v54  ;;  %v923_v52 = vrot.slane %v922_v43, 4  ;;  %v935_v54 = vrot.slane %v933_v45, 5  ;;  %v963_v7 = vshll.u32 %v756_v60, 16  ;;  %v763_v45 = vld [vmem:[%s7890_s0 + $0x74] sm:$0x1] }
  0x9c   :  { %5969 = vmatmul.mubr.bf16.gmra.mrb[12].mxu0 %v6454_v24  ;;  %v4902_v20 = vcombine.low %v870_v11, %v880_v15  ;;  %v6465_v24 = vld [vmem:[%s7886_s4 + $0xd0] sm:$0xff]   ;;  %v889_v25 = vrot.slane %v888_v16, 4  ;;  %v967_v8 = vshrl.u32 %v756_v60, 16  ;;  %v956_v10 = vrot.slane %v954_v3, 4 }
  0x9d   :  { %5972 = vmatprep.mubr.bf16.mxu0 %v6456_v29  ;;  %v899_v29 = vrot.slane %v898_v21, 4  ;;  %6001 = vmatpush3.bf16.msra.mxu0 %v6467_v32  ;;  %v928_v63 = vsel %vm6718_vm2, %v923_v52, %v927_v36  ;;  %v959_v11 = vrot.slane %v957_v4, 5  ;;  %v965_v14 = vrot.slane %v963_v7, 5  ;;  %v765_v4 = vld [vmem:[%s7890_s0 + $0x7c] sm:$0xf] }
  0x9e   :  { %v894_v34 = vsel %vm6718_vm2, %v889_v25, %v893_v12  ;;  %6002 = vmatprep.subr.bf16.mxu0 %v6471_v61  ;;  %v969_v15 = vrot.slane %v967_v8, 4  ;;  %v1005_v33 = vshll.u32 %v761_v40, 16 }
  0x9f   :  { %v904_v37 = vsel %vm6718_vm2, %v899_v29, %v903_v17  ;;  %v960_v17 = vor.u32 %v959_v11, %v956_v10  ;;  %v1035_v10 = vshll.u32 %v765_v4, 16  ;;  %v1039_v11 = vshrl.u32 %v765_v4, 16 }
  0xa0   :  { %v4903_v42 = vcombine.low %v894_v34, %v904_v37 }
  0xa1   :  { %6003 = vmatpush3.bf16.msra.mxu0 %v6471_v61  ;;  %v961_v29 = vrot.slane %v960_v17, 4  ;;  %v1037_v17 = vrot.slane %v1035_v10, 5  ;;  %v775_v10 = vld [vmem:[%s7890_s0 + $0xa4] sm:$0x1] }
  0xa2   :  { %5765 = vmatmul.mubr.bf16.vlgmr.msra.gmra.mrb[0].mxu1 %v4900_v41  ;;  %v754_v41 = vld [vmem:[%s7890_s0 + $0x50] sm:$0x1] }
  0xa3   :  { %5797 = vmatpush3.bf16.msra.mxu1 %v7105_v1  ;;  %5768 = vmatprep.mubr.bf16.mxu1 %v4901_v2  ;;  %v749_v1 = vld [vmem:[%s7890_s0 + $0x3c] sm:$0xf]  ;;  %v949_v49 = vshll.u32 %v754_v41, 16  ;;  %v966_v37 = vsel %vm6718_vm2, %v961_v29, %v965_v14  ;;  %v762_v41 = vld [vmem:[%s7890_s0 + $0x70] sm:$0xf] }
  0xa4   :  { %5798 = vmatprep.subr.bf16.mxu1 %v6461_v51  ;;  %v906_v19 = vshrl.u32 %v749_v1, 16  ;;  %v909_v22 = vshll.u32 %v749_v1, 16  ;;  %5973 = vmatmul.mubr.bf16.gmra.mrb[16].mxu0 %v6458_v0  ;;  %v936_v0 = vor.u32 %v935_v54, %v932_v53  ;;  %v757_v2 = vld [vmem:[%s7890_s0 + $0x5c] sm:$0x1]  ;;  %v1015_v53 = vshrl.u32 %v762_v41, 16 }
  0xa5   :  { %5976 = vmatprep.mubr.bf16.mxu0 %v6460_v6  ;;  %v951_v59 = vrot.slane %v949_v49, 5  ;;  %v946_v6 = vor.u32 %v945_v58, %v941_v57  ;;  %v973_v12 = vshll.u32 %v757_v2, 16  ;;  %v1011_v49 = vshll.u32 %v762_v41, 16 }
  0xa6   :  { %v908_v26 = vrot.slane %v906_v19, 4  ;;  %v911_v30 = vrot.slane %v909_v22, 5  ;;  %v937_v9 = vrot.slane %v936_v0, 4  ;;  %v758_v19 = vld [vmem:[%s7890_s0 + $0x60] sm:$0xf]  ;;  %v970_v22 = vor.u32 %v969_v15, %v965_v14  ;;  %v6477_v15 = vld [vmem:[%s7886_s4 + $0xe8] sm:$0xff]  }
  0xa7   :  { %5799 = vmatpush3.bf16.msra.mxu1 %v6461_v51  ;;  %v6464_v51 = vld [vmem:[%s7890_s0 + $0x9c] sm:$0xff]   ;;  %v947_v1 = vrot.slane %v946_v6, 4  ;;  %v975_v18 = vrot.slane %v973_v12, 5  ;;  %v978_v25 = vshrl.u32 %v758_v19, 16  ;;  %v1021_v54 = vshll.u32 %v763_v45, 16 }
  0xa8   :  { %5800 = vmatprep.subr.bf16.mxu1 %v6465_v24  ;;  %v912_v38 = vor.u32 %v911_v30, %v908_v26  ;;  %v942_v16 = vsel %vm6718_vm2, %v937_v9, %v941_v57  ;;  %v981_v26 = vshll.u32 %v758_v19, 16  ;;  %v987_v30 = vshll.u32 %v759_v23, 16  ;;  %v764_v0 = vld [vmem:[%s7890_s0 + $0x78] sm:$0xf]  ;;  %v767_v19 = vld [vmem:[%s7890_s0 + $0x84] sm:$0xf] }
  0xa9   :  { %v952_v21 = vsel %vm6718_vm2, %v947_v1, %v951_v59  ;;  %v971_v32 = vrot.slane %v970_v22, 4  ;;  %v980_v34 = vrot.slane %v978_v25, 4  ;;  %v1007_v57 = vrot.slane %v1005_v33, 5  ;;  %v7273_v59 = vld [vmem:[%s7886_s4 + $0x200] sm:$0xff]   ;;  %v6481_v33 = vld [vmem:[%s7886_s4 + $0xf0] sm:$0xff]  }
  0xaa   :  { %5769 = vmatmul.mubr.bf16.gmra.mrb[4].mxu1 %v4902_v20  ;;  %v913_v47 = vrot.slane %v912_v38, 4  ;;  %v6473_v20 = vld [vmem:[%s7886_s4 + $0xe0] sm:$0xff]   ;;  %v4905_v27 = vcombine.low %v942_v16, %v952_v21  ;;  %v983_v35 = vrot.slane %v981_v26, 5  ;;  %v989_v38 = vrot.slane %v987_v30, 5  ;;  %6036 = vmatprep.subr.bf16.mxu0 %v7273_v59 }
  0xab   :  { %5801 = vmatpush3.bf16.msra.mxu1 %v6465_v24  ;;  %5772 = vmatprep.mubr.bf16.mxu1 %v4903_v42  ;;  %v760_v24 = vld [vmem:[%s7890_s0 + $0x68] sm:$0x1]  ;;  %v976_v42 = vsel %vm6718_vm2, %v971_v32, %v975_v18  ;;  %v1013_v58 = vrot.slane %v1011_v49, 5  ;;  %v1017_v61 = vrot.slane %v1015_v53, 4  ;;  %v1026_v6 = vshrl.u32 %v764_v0, 16 }
  0xac   :  { %v918_v56 = vsel %vm6718_vm2, %v913_v47, %v917_v31  ;;  %5802 = vmatprep.subr.bf16.mxu1 %v6469_v50  ;;  %5977 = vmatmul.mubr.bf16.gmra.mrb[20].mxu0 %v6462_v46  ;;  %v991_v31 = vshrl.u32 %v759_v23, 16  ;;  %v997_v36 = vshll.u32 %v760_v24, 16  ;;  %v984_v43 = vor.u32 %v983_v35, %v980_v34  ;;  %v768_v23 = vld [vmem:[%s7890_s0 + $0x88] sm:$0xf]  ;;  %v769_v24 = vld [vmem:[%s7890_s0 + $0x8c] sm:$0x1] }
  0xad   :  { %v4904_v5 = vcombine.low %v918_v56, %v928_v63  ;;  %5980 = vmatprep.mubr.bf16.mxu0 %v6464_v51  ;;  %v1002_v46 = vshrl.u32 %v761_v40, 16  ;;  %v4906_v47 = vcombine.low %v966_v37, %v976_v42  ;;  %v6472_v56 = vld [vmem:[%s7887_s1 + $0xc] sm:$0xff]   ;;  %v1023_v63 = vrot.slane %v1021_v54, 5  ;;  %v6476_v37 = vld [vmem:[%s7887_s1 + $0x24] sm:$0xff]  }
  0xae   :  { %v993_v39 = vrot.slane %v991_v31, 4  ;;  %v999_v44 = vrot.slane %v997_v36, 5  ;;  %v985_v51 = vrot.slane %v984_v43, 4  ;;  %v1029_v7 = vshll.u32 %v764_v0, 16  ;;  %v6474_v31 = vld [vmem:[%s7887_s1 + $0x18] sm:$0xff]   ;;  %v6479_v43 = vld [vmem:[%s7886_s4 + $0x208] sm:$0xff]  }
  0xaf   :  { %5803 = vmatpush3.bf16.msra.mxu1 %v6469_v50  ;;  %v6470_v50 = vld [vmem:[%s7890_s0 + $0xc0] sm:$0xff]   ;;  %v1004_v52 = vrot.slane %v1002_v46, 4  ;;  %v1018_v9 = vor.u32 %v1017_v61, %v1013_v58  ;;  %v1041_v18 = vrot.slane %v1039_v11, 4  ;;  %v1050_v25 = vshrl.u32 %v767_v19, 16 }
  0xb0   :  { %5804 = vmatprep.subr.bf16.mxu1 %v6473_v20  ;;  %v994_v48 = vor.u32 %v993_v39, %v989_v38  ;;  %v990_v60 = vsel %vm6718_vm2, %v985_v51, %v989_v38  ;;  %v1031_v1 = vrot.slane %v1029_v7, 5  ;;  %v1059_v29 = vshll.u32 %v768_v23, 16  ;;  %v772_v51 = vld [vmem:[%s7890_s0 + $0x98] sm:$0x1] }
  0xb1   :  { %v1008_v3 = vor.u32 %v1007_v57, %v1004_v52  ;;  %v1019_v16 = vrot.slane %v1018_v9, 4  ;;  %v1052_v34 = vrot.slane %v1050_v25, 4  ;;  %v1063_v35 = vshrl.u32 %v768_v23, 16  ;;  %v6480_v9 = vld [vmem:[%s7887_s1 + $0x3c] sm:$0xff]  }
  0xb2   :  { %5773 = vmatmul.mubr.bf16.gmra.mrb[8].mxu1 %v4904_v5  ;;  %v995_v55 = vrot.slane %v994_v48, 4  ;;  %v766_v5 = vld [vmem:[%s7890_s0 + $0x80] sm:$0x1]  ;;  %v1061_v39 = vrot.slane %v1059_v29, 5  ;;  %v1069_v40 = vshll.u32 %v769_v24, 16  ;;  %v1093_v57 = vshll.u32 %v772_v51, 16 }
  0xb3   :  { %5805 = vmatpush3.bf16.msra.mxu1 %v6473_v20  ;;  %5776 = vmatprep.mubr.bf16.mxu1 %v4905_v27  ;;  %v1009_v12 = vrot.slane %v1008_v3, 4  ;;  %v1045_v14 = vshll.u32 %v766_v5, 16  ;;  %v1024_v26 = vsel %vm6718_vm2, %v1019_v16, %v1023_v63  ;;  %v1042_v27 = vor.u32 %v1041_v18, %v1037_v17  ;;  %v771_v48 = vld [vmem:[%s7890_s0 + $0x94] sm:$0xf]  ;;  %v773_v63 = vld [vmem:[%s7890_s0 + $0x9c] sm:$0xf] }
  0xb4   :  { %5981 = vmatmul.mubr.bf16.gmra.mrb[24].mxu0 %v6466_v13  ;;  %v1000_v2 = vsel %vm6718_vm2, %v995_v55, %v999_v44  ;;  %v1028_v13 = vrot.slane %v1026_v6, 4  ;;  %5806 = vmatprep.subr.bf16.mxu1 %v6477_v15  ;;  %v1065_v42 = vrot.slane %v1063_v35, 4  ;;  %v1071_v46 = vrot.slane %v1069_v40, 5  ;;  %v774_v5 = vld [vmem:[%s7890_s0 + $0xa0] sm:$0xf]  ;;  %v6483_v6 = vld [vmem:[%s7886_s4 + $0x210] sm:$0xff]  }
  0xb5   :  { %5984 = vmatprep.mubr.bf16.mxu0 %v6468_v28  ;;  %v4907_v8 = vcombine.low %v990_v60, %v1000_v2  ;;  %v1014_v20 = vsel %vm6718_vm2, %v1009_v12, %v1013_v58  ;;  %v1047_v22 = vrot.slane %v1045_v14, 5  ;;  %v1053_v28 = vshll.u32 %v767_v19, 16  ;;  %v6478_v2 = vld [vmem:[%s7887_s1 + $0x30] sm:$0xff]   ;;  %v6482_v40 = vld [vmem:[%s7887_s1 + $0x48] sm:$0xff]  }
  0xb6   :  { %v1032_v21 = vor.u32 %v1031_v1, %v1028_v13  ;;  %v4908_v30 = vcombine.low %v1014_v20, %v1024_v26  ;;  %v1043_v36 = vrot.slane %v1042_v27, 4  ;;  %v1083_v55 = vshll.u32 %v771_v48, 16  ;;  %v776_v26 = vld [vmem:[%s7890_s0 + $0xa8] sm:$0xf]  ;;  %v6485_v27 = vld [vmem:[%s7886_s4 + $0xf8] sm:$0xff]  }
  0xb7   :  { %5807 = vmatpush3.bf16.msra.mxu1 %v6477_v15  ;;  %v1055_v38 = vrot.slane %v1053_v28, 5  ;;  %v1098_v11 = vshrl.u32 %v773_v63, 16  ;;  %v1101_v12 = vshll.u32 %v773_v63, 16  ;;  %v1107_v14 = vshll.u32 %v774_v5, 16 }
  0xb8   :  { %v1033_v32 = vrot.slane %v1032_v21, 4  ;;  %v1048_v44 = vsel %vm6718_vm2, %v1043_v36, %v1047_v22  ;;  %5808 = vmatprep.subr.bf16.mxu1 %v6481_v33  ;;  %v1085_v3 = vrot.slane %v1083_v55, 5  ;;  %v1111_v15 = vshrl.u32 %v774_v5, 16 }
  0xb9   :  { %v1056_v45 = vor.u32 %v1055_v38, %v1052_v34  ;;  %v1103_v18 = vrot.slane %v1101_v12, 5  ;;  %v1117_v19 = vshll.u32 %v775_v10, 16  ;;  %v1109_v21 = vrot.slane %v1107_v14, 5  ;;  %v6489_v14 = vld [vmem:[%s7887_s1 + $0x6c] sm:$0xff]  }
  0xba   :  { %5777 = vmatmul.mubr.bf16.gmra.mrb[12].mxu1 %v4906_v47  ;;  %v1038_v41 = vsel %vm6718_vm2, %v1033_v32, %v1037_v17  ;;  %v770_v47 = vld [vmem:[%s7890_s0 + $0x90] sm:$0xf]  ;;  %v1100_v17 = vrot.slane %v1098_v11, 4  ;;  %v1113_v22 = vrot.slane %v1111_v15, 4  ;;  %v1122_v32 = vshrl.u32 %v776_v26, 16 }
  0xbb   :  { %5780 = vmatprep.mubr.bf16.mxu1 %v4907_v8  ;;  %v4909_v49 = vcombine.low %v1038_v41, %v1048_v44  ;;  %v1074_v52 = vshrl.u32 %v770_v47, 16  ;;  %v1077_v53 = vshll.u32 %v770_v47, 16  ;;  %v1057_v54 = vrot.slane %v1056_v45, 4  ;;  %5809 = vmatpush3.bf16.msra.mxu1 %v6481_v33  ;;  %v6484_v47 = vld [vmem:[%s7887_s1 + $0x54] sm:$0xff]  }
  0xbc   :  { %5985 = vmatmul.mubr.bf16.gmra.mrb[28].mxu0 %v6470_v50  ;;  %v1066_v50 = vor.u32 %v1065_v42, %v1061_v39  ;;  %v1104_v24 = vor.u32 %v1103_v18, %v1100_v17  ;;  %v1119_v25 = vrot.slane %v1117_v19, 5  ;;  %v1114_v29 = vor.u32 %v1113_v22, %v1109_v21  ;;  %5810 = vmatprep.subr.bf16.mxu1 %v6485_v27  ;;  %v780_v33 = vld [vmem:[%s7890_s0 + $0xb8] sm:$0xf]  ;;  %v6488_v18 = vld [vmem:[%s7889_s2] sm:$0xff]  }
  0xbd   :  { %6004 = vmatprep.mubr.bf16.mxu0 %v6472_v56  ;;  %v1087_v56 = vshrl.u32 %v771_v48, 16  ;;  %v1076_v60 = vrot.slane %v1074_v52, 4  ;;  %v1079_v61 = vrot.slane %v1077_v53, 5  ;;  %v1062_v0 = vsel %vm6718_vm2, %v1057_v54, %v1061_v39  ;;  %v779_v48 = vld [vmem:[%s7890_s0 + $0xb4] sm:$0xf]  ;;  %v6524_v54 = vld [vmem:[%s7886_s4 + $0x100] sm:$0xff]  }
  0xbe   :  { %v1067_v58 = vrot.slane %v1066_v50, 4  ;;  %v1125_v34 = vshll.u32 %v776_v26, 16  ;;  %v1105_v36 = vrot.slane %v1104_v24, 4  ;;  %v1115_v39 = vrot.slane %v1114_v29, 4  ;;  %v781_v52 = vld [vmem:[%s7890_s0 + $0xbc] sm:$0x1] }
  0xbf   :  { %v1089_v4 = vrot.slane %v1087_v56, 4  ;;  %v1080_v8 = vor.u32 %v1079_v61, %v1076_v60  ;;  %v1124_v41 = vrot.slane %v1122_v32, 4  ;;  %5811 = vmatpush3.bf16.msra.mxu1 %v6485_v27  ;;  %v1146_v53 = vshrl.u32 %v779_v48, 16  ;;  %v6491_v22 = vld [vmem:[%s7887_s1 + $0x78] sm:$0xff]   ;;  %v6495_v26 = vld [vmem:[%s7889_s2 + $0x24] sm:$0xff]   ;;  %v6498_v29 = vld [vmem:[%s7889_s2 + $0x30] sm:$0xff]  }
  0xc0   :  { %v1072_v7 = vsel %vm6718_vm2, %v1067_v58, %v1071_v46  ;;  %v1127_v42 = vrot.slane %v1125_v34, 5  ;;  %v1110_v44 = vsel %vm6718_vm2, %v1105_v36, %v1109_v21  ;;  %6084 = vmatprep.subr.bf16.mxu1 %v6524_v54  ;;  %v1155_v58 = vshll.u32 %v780_v33, 16  ;;  %v6490_v21 = vld [vmem:[%s7889_s2 + $0xc] sm:$0xff]   ;;  %v6493_v24 = vld [vmem:[%s7889_s2 + $0x18] sm:$0xff]  }
  0xc1   :  { %v4910_v13 = vcombine.low %v1062_v0, %v1072_v7  ;;  %v1090_v1 = vor.u32 %v1089_v4, %v1085_v3  ;;  %v1081_v16 = vrot.slane %v1080_v8, 4  ;;  %v1148_v61 = vrot.slane %v1146_v53, 4  ;;  %v6525_v27 = vld [vmem:[%s7886_s4 + $0x108] sm:$0xff]   ;;  %v5188_v34 = vld [vmem:[%s7890_s0 + $0x10] sm:$0xf] }
  0xc2   :  { %5781 = vmatmul.mubr.bf16.gmra.mrb[16].mxu1 %v4908_v30  ;;  %v777_v30 = vld [vmem:[%s7890_s0 + $0xac] sm:$0xf]  ;;  %v1128_v50 = vor.u32 %v1127_v42, %v1124_v41  ;;  %v1159_v63 = vshrl.u32 %v780_v33, 16  ;;  %v1165_v0 = vshll.u32 %v781_v52, 16  ;;  %v1157_v4 = vrot.slane %v1155_v58, 5 }
  0xc3   :  { %5784 = vmatprep.mubr.bf16.mxu1 %v4909_v49  ;;  %v1091_v20 = vrot.slane %v1090_v1, 4  ;;  %v1086_v23 = vsel %vm6718_vm2, %v1081_v16, %v1085_v3  ;;  %v1135_v38 = vshrl.u32 %v777_v30, 16  ;;  %v1120_v49 = vsel %vm6718_vm2, %v1115_v39, %v1119_v25  ;;  %v6492_v16 = vld [vmem:[%s7886_s4 + $0x220] sm:$0xff]   ;;  %v6502_v25 = vld [vmem:[%s7886_s4 + $0x230] sm:$0xff]   ;;  %v5187_v32 = vld [vmem:[%s7890_s0 + $0xc] sm:$0xf] }
  0xc4   :  { %6005 = vmatmul.mubr.bf16.vlgmr.msra.gmra.mrb[0].mxu0 %v6474_v31  ;;  %v778_v31 = vld [vmem:[%s7890_s0 + $0xb0] sm:$0x1]  ;;  %v4912_v55 = vcombine.low %v1110_v44, %v1120_v49  ;;  %v1129_v60 = vrot.slane %v1128_v50, 4  ;;  %v1167_v11 = vrot.slane %v1165_v0, 5  ;;  %v3840_v36 = vshrl.u32 %v5187_v32, 16  ;;  %v6501_v49 = vld [vmem:[%s7887_s1 + $0xa8] sm:$0xff]  }
  0xc5   :  { %6037 = vmatpush3.bf16.msra.mxu0 %v7273_v59  ;;  %6008 = vmatprep.mubr.bf16.mxu0 %v6476_v37  ;;  %v1095_v59 = vrot.slane %v1093_v57, 5  ;;  %v1131_v37 = vshll.u32 %v777_v30, 16  ;;  %v1137_v46 = vrot.slane %v1135_v38, 4  ;;  %v1149_v57 = vshll.u32 %v779_v48, 16  ;;  %v6507_v30 = vld [vmem:[%s7886_s4 + $0x238] sm:$0xff]   ;;  %v6526_v38 = vld [vmem:[%s7886_s4 + $0x110] sm:$0xff]  }
  0xc6   :  { %6038 = vmatprep.subr.bf16.mxu0 %v6479_v43  ;;  %v3849_v39 = vshll.u32 %v5188_v34, 16  ;;  %v3842_v42 = vrot.slane %v3840_v36, 4  ;;  %v5190_v44 = vld [vmem:[%s7890_s0 + $0x18] sm:$0xf]  ;;  %v5191_v48 = vld [vmem:[%s7890_s0 + $0x1c] sm:$0xf] }
  0xc7   :  { %v1096_v28 = vsel %vm6718_vm2, %v1091_v20, %v1095_v59  ;;  %v1133_v45 = vrot.slane %v1131_v37, 5  ;;  %v1151_v3 = vrot.slane %v1149_v57, 5  ;;  %v6487_v59 = vld [vmem:[%s7886_s4 + $0x218] sm:$0xff]   ;;  %v6497_v20 = vld [vmem:[%s7886_s4 + $0x228] sm:$0xff]   ;;  %v3843_v37 = vshll.u32 %v5187_v32, 16 }
  0xc8   :  { %v4911_v35 = vcombine.low %v1086_v23, %v1096_v28  ;;  %v6494_v23 = vld [vmem:[%s7887_s1 + $0x84] sm:$0xff]   ;;  %v6496_v28 = vld [vmem:[%s7887_s1 + $0x90] sm:$0xff]   ;;  %v3864_v33 = vshrl.u32 %v5190_v44, 16  ;;  %v3867_v52 = vshll.u32 %v5190_v44, 16  ;;  %v3873_v53 = vshll.u32 %v5191_v48, 16  ;;  %v6527_v57 = vld [vmem:[%s7886_s4 + $0x118] sm:$0xff]  }
  0xc9   :  { %6039 = vmatpush3.bf16.msra.mxu0 %v6479_v43  ;;  %v1141_v43 = vshll.u32 %v778_v31, 16  ;;  %v1138_v56 = vor.u32 %v1137_v46, %v1133_v45  ;;  %v1134_v5 = vsel %vm6718_vm2, %v1129_v60, %v1133_v45  ;;  %v1152_v8 = vor.u32 %v1151_v3, %v1148_v61  ;;  %v6499_v31 = vld [vmem:[%s7887_s1 + $0x9c] sm:$0xff]   ;;  %v6505_v32 = vld [vmem:[%s7889_s2 + $0x54] sm:$0xff]  }
  0xca   :  { %5785 = vmatmul.mubr.bf16.gmra.mrb[20].mxu1 %v4910_v13  ;;  %6040 = vmatprep.subr.bf16.mxu0 %v6483_v6  ;;  %v6486_v13 = vld [vmem:[%s7887_s1 + $0x60] sm:$0xff]   ;;  %v3851_v45 = vrot.slane %v3849_v39, 5  ;;  %v3866_v60 = vrot.slane %v3864_v33, 4  ;;  %v3869_v0 = vrot.slane %v3867_v52, 5  ;;  %v6529_v39 = vld [vmem:[%s7886_s4 + $0x128] sm:$0xff]  }
  0xcb   :  { %5788 = vmatprep.mubr.bf16.mxu1 %v4911_v35  ;;  %v1143_v51 = vrot.slane %v1141_v43, 5  ;;  %v1153_v12 = vrot.slane %v1152_v8, 4  ;;  %v5189_v35 = vld [vmem:[%s7890_s0 + $0x14] sm:$0x1]  ;;  %v3845_v43 = vrot.slane %v3843_v37, 5  ;;  %v6503_v8 = vld [vmem:[%s7889_s2 + $0x48] sm:$0xff]  }
  0xcc   :  { %6009 = vmatmul.mubr.bf16.gmra.mrb[4].mxu0 %v6478_v2  ;;  %v1139_v2 = vrot.slane %v1138_v56, 4  ;;  %v3859_v41 = vshll.u32 %v5189_v35, 16  ;;  %v6504_v56 = vld [vmem:[%s7887_s1 + $0xb4] sm:$0xff]  }
  0xcd   :  { %6012 = vmatprep.mubr.bf16.mxu0 %v6480_v9  ;;  %6041 = vmatpush3.bf16.msra.mxu0 %v6483_v6  ;;  %v1161_v6 = vrot.slane %v1159_v63, 4  ;;  %v1158_v15 = vsel %vm6718_vm2, %v1153_v12, %v1157_v4  ;;  %v3846_v50 = vor.u32 %v3845_v43, %v3842_v42 }
  0xce   :  { %v1144_v7 = vsel %vm6718_vm2, %v1139_v2, %v1143_v51  ;;  %6042 = vmatprep.subr.bf16.mxu0 %v6487_v59  ;;  %v5192_v51 = vld [vmem:[%s7890_s0 + $0x20] sm:$0x1]  ;;  %v3875_v2 = vrot.slane %v3873_v53, 5 }
  0xcf   :  { %v4913_v9 = vcombine.low %v1134_v5, %v1144_v7  ;;  %v1162_v10 = vor.u32 %v1161_v6, %v1157_v4  ;;  %v3883_v61 = vshll.u32 %v5192_v51, 16  ;;  %v3847_v63 = vrot.slane %v3846_v50, 4  ;;  %v5193_v4 = vld [vmem:[%s7890_s0 + $0x24] sm:$0xf]  ;;  %v5194_v6 = vld [vmem:[%s7890_s0 + $0x28] sm:$0xf] }
  0xd0   :  { %v5195_v7 = vld [vmem:[%s7890_s0 + $0x2c] sm:$0x1]  ;;  %v3888_v12 = vshrl.u32 %v5193_v4, 16  ;;  %v6508_v50 = vld [vmem:[%s7889_s2 + $0x60] sm:$0xff]  }
  0xd1   :  { %6043 = vmatpush3.bf16.msra.mxu0 %v6487_v59  ;;  %v1163_v1 = vrot.slane %v1162_v10, 4  ;;  %v3885_v5 = vrot.slane %v3883_v61, 5  ;;  %v3870_v10 = vor.u32 %v3869_v0, %v3866_v60  ;;  %v6530_v60 = vld [vmem:[%s7886_s4 + $0x130] sm:$0xff]   ;;  %v5202_v61 = vld [vmem:[%s7890_s0 + $0x48] sm:$0xf] }
  0xd2   :  { %5789 = vmatmul.mubr.bf16.gmra.mrb[24].mxu1 %v4912_v55  ;;  %6044 = vmatprep.subr.bf16.mxu0 %v6492_v16  ;;  %v6500_v55 = vld [vmem:[%s7889_s2 + $0x3c] sm:$0xff]  }
  0xd3   :  { %5792 = vmatprep.mubr.bf16.mxu1 %v4913_v9  ;;  %v1168_v17 = vsel %vm6718_vm2, %v1163_v1, %v1167_v11  ;;  %v3852_v9 = vsel %vm6718_vm2, %v3847_v63, %v3851_v45  ;;  %v6528_v1 = vld [vmem:[%s7886_s4 + $0x120] sm:$0xff]  }
  0xd4   :  { %6013 = vmatmul.mubr.bf16.gmra.mrb[8].mxu0 %v6482_v40  ;;  %v4914_v19 = vcombine.low %v1158_v15, %v1168_v17  ;;  %v3853_v40 = vshrl.u32 %v5188_v34, 16  ;;  %v3897_v15 = vshll.u32 %v5194_v6, 16  ;;  %v5196_v17 = vld [vmem:[%s7890_s0 + $0x30] sm:$0xf]  ;;  %v6506_v34 = vld [vmem:[%s7887_s1 + $0xc0] sm:$0xff]  }
  0xd5   :  { %6016 = vmatprep.mubr.bf16.mxu0 %v6484_v47  ;;  %6045 = vmatpush3.bf16.msra.mxu0 %v6492_v16  ;;  %v3861_v47 = vrot.slane %v3859_v41, 5  ;;  %v3901_v16 = vshrl.u32 %v5194_v6, 16 }
  0xd6   :  { %6046 = vmatprep.subr.bf16.mxu0 %v6497_v20  ;;  %v3855_v46 = vrot.slane %v3853_v40, 4  ;;  %v5199_v40 = vld [vmem:[%s7890_s0 + $0x3c] sm:$0xf] }
  0xd8   :  { %v3856_v58 = vor.u32 %v3855_v46, %v3851_v45  ;;  %v5200_v45 = vld [vmem:[%s7890_s0 + $0x40] sm:$0xf]  ;;  %v5201_v46 = vld [vmem:[%s7890_s0 + $0x44] sm:$0x1] }
  0xd9   :  { %6047 = vmatpush3.bf16.msra.mxu0 %v6497_v20  ;;  %v3955_v6 = vshll.u32 %v5201_v46, 16 }
  0xda   :  { %5793 = vmatmul.mubr.bf16.gmra.mrb[28].mxu1 %v4914_v19  ;;  %6048 = vmatprep.subr.bf16.mxu0 %v6502_v25  ;;  %v3857_v59 = vrot.slane %v3856_v58, 4  ;;  %v3871_v19 = vrot.slane %v3870_v10, 4 }
  0xdb   :  { %5812 = vmatprep.mubr.bf16.mxu1 %v6488_v18 }
  0xdc   :  { %6017 = vmatmul.mubr.bf16.gmra.mrb[12].mxu0 %v6486_v13  ;;  %v3862_v13 = vsel %vm6718_vm2, %v3857_v59, %v3861_v47  ;;  %v3945_v59 = vshll.u32 %v5200_v45, 16 }
  0xdd   :  { %6020 = vmatprep.mubr.bf16.mxu0 %v6489_v14  ;;  %6049 = vmatpush3.bf16.msra.mxu0 %v6502_v25  ;;  %v3891_v14 = vshll.u32 %v5193_v4, 16  ;;  %v5251_v18 = vcombine.low %v3852_v9, %v3862_v13  ;;  %v3903_v25 = vrot.slane %v3901_v16, 4  ;;  %v5203_v4 = vld [vmem:[%s7890_s0 + $0x4c] sm:$0xf] }
  0xde   :  { %6050 = vmatprep.subr.bf16.mxu0 %v6507_v30  ;;  %v6509_v13 = vld [vmem:[%s7889_s2 + $0x6c] sm:$0xff]  }
  0xe1   :  { %6051 = vmatpush3.bf16.msra.mxu0 %v6507_v30  ;;  %v3912_v30 = vshrl.u32 %v5196_v17, 16 }
  0xe2   :  { %5813 = vmatmul.mubr.bf16.vlgmr.msra.gmra.mrb[0].mxu1 %v6490_v21  ;;  %v3890_v21 = vrot.slane %v3888_v12, 4  ;;  %v3963_v12 = vshll.u32 %v5202_v61, 16 }
  0xe3   :  { %6092 = vmatpush3.bf16.msra.mxu1 %v6524_v54  ;;  %5816 = vmatprep.mubr.bf16.mxu1 %v6493_v24  ;;  %v3877_v54 = vshrl.u32 %v5191_v48, 16  ;;  %v3899_v24 = vrot.slane %v3897_v15, 5  ;;  %v3914_v41 = vrot.slane %v3912_v30, 4  ;;  %v3957_v15 = vrot.slane %v3955_v6, 5  ;;  %v6512_v6 = vld [vmem:[%s7889_s2 + $0x90] sm:$0xff]  }
  0xe4   :  { %6021 = vmatmul.mubr.bf16.gmra.mrb[16].mxu0 %v6491_v22  ;;  %6085 = vmatprep.subr.bf16.mxu1 %v6525_v27  ;;  %v5197_v22 = vld [vmem:[%s7890_s0 + $0x34] sm:$0xf] }
  0xe5   :  { %6024 = vmatprep.mubr.bf16.mxu0 %v6494_v23  ;;  %v3879_v3 = vrot.slane %v3877_v54, 4  ;;  %v3893_v23 = vrot.slane %v3891_v14, 5  ;;  %v3904_v37 = vor.u32 %v3903_v25, %v3899_v24  ;;  %v3921_v43 = vshll.u32 %v5197_v22, 16 }
  0xe6   :  { %v3925_v44 = vshrl.u32 %v5197_v22, 16  ;;  %v3939_v54 = vshll.u32 %v5199_v40, 16  ;;  %v3965_v22 = vrot.slane %v3963_v12, 5 }
  0xe7   :  { %6093 = vmatpush3.bf16.msra.mxu1 %v6525_v27  ;;  %v3880_v11 = vor.u32 %v3879_v3, %v3875_v2  ;;  %v5198_v27 = vld [vmem:[%s7890_s0 + $0x38] sm:$0x1]  ;;  %v3894_v36 = vor.u32 %v3893_v23, %v3890_v21  ;;  %v3905_v48 = vrot.slane %v3904_v37, 4  ;;  %v3923_v52 = vrot.slane %v3921_v43, 5 }
  0xe8   :  { %6086 = vmatprep.subr.bf16.mxu1 %v6526_v38  ;;  %v3931_v33 = vshll.u32 %v5198_v27, 16  ;;  %v3927_v53 = vrot.slane %v3925_v44, 4  ;;  %v3941_v3 = vrot.slane %v3939_v54, 5  ;;  %v3969_v23 = vshll.u32 %v5203_v4, 16 }
  0xe9   :  { %v3881_v20 = vrot.slane %v3880_v11, 4  ;;  %v3895_v47 = vrot.slane %v3894_v36, 4  ;;  %v5204_v11 = vld [vmem:[%s7890_s0 + $0x50] sm:$0x1]  ;;  %v5208_v36 = vld [vmem:[%s7890_s0 + $0x60] sm:$0xf] }
  0xea   :  { %5817 = vmatmul.mubr.bf16.gmra.mrb[4].mxu1 %v6495_v26  ;;  %v3907_v26 = vshll.u32 %v5195_v7, 16  ;;  %v3960_v7 = vshrl.u32 %v5202_v61, 16  ;;  %v3979_v27 = vshll.u32 %v5204_v11, 16 }
  0xeb   :  { %5820 = vmatprep.mubr.bf16.mxu1 %v6498_v29  ;;  %6094 = vmatpush3.bf16.msra.mxu1 %v6526_v38  ;;  %v3886_v29 = vsel %vm6718_vm2, %v3881_v20, %v3885_v5  ;;  %v3949_v5 = vshrl.u32 %v5200_v45, 16 }
  0xec   :  { %6025 = vmatmul.mubr.bf16.gmra.mrb[20].mxu0 %v6496_v28  ;;  %6087 = vmatprep.subr.bf16.mxu1 %v6527_v57  ;;  %v3876_v28 = vsel %vm6718_vm2, %v3871_v19, %v3875_v2  ;;  %v3909_v38 = vrot.slane %v3907_v26, 5  ;;  %v3928_v2 = vor.u32 %v3927_v53, %v3923_v52  ;;  %v3962_v16 = vrot.slane %v3960_v7, 4  ;;  %v6510_v19 = vld [vmem:[%s7889_s2 + $0x78] sm:$0xff]  }
  0xed   :  { %6028 = vmatprep.mubr.bf16.mxu0 %v6499_v31  ;;  %v3915_v31 = vshll.u32 %v5196_v17, 16  ;;  %v7521_v35 = vcombine.low %v3876_v28, %v3886_v29  ;;  %v3951_v14 = vrot.slane %v3949_v5, 4  ;;  %v5205_v17 = vld [vmem:[%s7890_s0 + $0x54] sm:$0xf]  ;;  %v3973_v26 = vshrl.u32 %v5203_v4, 16 }
  0xee   :  { %v3929_v9 = vrot.slane %v3928_v2, 4  ;;  %v5206_v28 = vld [vmem:[%s7890_s0 + $0x58] sm:$0xf]  ;;  %v3966_v30 = vor.u32 %v3965_v22, %v3962_v16  ;;  %v5212_v5 = vld [vmem:[%s7890_s0 + $0x70] sm:$0xf] }
  0xef   :  { %6095 = vmatpush3.bf16.msra.mxu1 %v6527_v57  ;;  %v3917_v42 = vrot.slane %v3915_v31, 5  ;;  %v3933_v57 = vrot.slane %v3931_v33, 5  ;;  %v3971_v31 = vrot.slane %v3969_v23, 5  ;;  %v3993_v43 = vshll.u32 %v5206_v28, 16  ;;  %v5209_v33 = vld [vmem:[%s7890_s0 + $0x64] sm:$0xf] }
  0xf0   :  { %6088 = vmatprep.subr.bf16.mxu1 %v6528_v1  ;;  %v3997_v44 = vshrl.u32 %v5206_v28, 16  ;;  %v4021_v61 = vshrl.u32 %v5209_v33, 16  ;;  %v4045_v22 = vshrl.u32 %v5212_v5, 16  ;;  %v5215_v23 = vld [vmem:[%s7890_s0 + $0x7c] sm:$0xf] }
  0xf1   :  { %v3918_v51 = vor.u32 %v3917_v42, %v3914_v41  ;;  %v3934_v20 = vsel %vm6718_vm2, %v3929_v9, %v3933_v57  ;;  %v3967_v41 = vrot.slane %v3966_v30, 4  ;;  %v5216_v28 = vld [vmem:[%s7890_s0 + $0x80] sm:$0x1] }
  0xf2   :  { %5821 = vmatmul.mubr.bf16.gmra.mrb[8].mxu1 %v6500_v55  ;;  %v3900_v55 = vsel %vm6718_vm2, %v3895_v47, %v3899_v24  ;;  %v4047_v30 = vrot.slane %v4045_v22, 4 }
  0xf3   :  { %5824 = vmatprep.mubr.bf16.mxu1 %v6503_v8  ;;  %6096 = vmatpush3.bf16.msra.mxu1 %v6528_v1  ;;  %v3919_v0 = vrot.slane %v3918_v51, 4  ;;  %v3947_v1 = vrot.slane %v3945_v59, 5  ;;  %v3999_v51 = vrot.slane %v3997_v44, 4 }
  0xf4   :  { %6029 = vmatmul.mubr.bf16.gmra.mrb[24].mxu0 %v6501_v49  ;;  %6089 = vmatprep.subr.bf16.mxu1 %v6529_v39  ;;  %v3936_v49 = vshrl.u32 %v5199_v40, 16  ;;  %v3987_v40 = vshll.u32 %v5205_v17, 16 }
  0xf5   :  { %6032 = vmatprep.mubr.bf16.mxu0 %v6504_v56  ;;  %v3910_v56 = vsel %vm6718_vm2, %v3905_v48, %v3909_v38  ;;  %v3924_v8 = vsel %vm6718_vm2, %v3919_v0, %v3923_v52  ;;  %v3952_v25 = vor.u32 %v3951_v14, %v3947_v1  ;;  %v3975_v38 = vrot.slane %v3973_v26, 4  ;;  %v5210_v52 = vld [vmem:[%s7890_s0 + $0x68] sm:$0x1]  ;;  %v5214_v14 = vld [vmem:[%s7890_s0 + $0x78] sm:$0xf] }
  0xf6   :  { %v3938_v58 = vrot.slane %v3936_v49, 4  ;;  %v5253_v63 = vcombine.low %v3900_v55, %v3910_v56  ;;  %v5254_v24 = vcombine.low %v3924_v8, %v3934_v20  ;;  %v3989_v47 = vrot.slane %v3987_v40, 5  ;;  %v6511_v0 = vld [vmem:[%s7889_s2 + $0x84] sm:$0xff]  }
  0xf7   :  { %6097 = vmatpush3.bf16.msra.mxu1 %v6529_v39  ;;  %v3953_v37 = vrot.slane %v3952_v25, 4  ;;  %v3981_v39 = vrot.slane %v3979_v27, 5  ;;  %v3976_v46 = vor.u32 %v3975_v38, %v3971_v31  ;;  %v4008_v56 = vshrl.u32 %v5208_v36, 16  ;;  %v5218_v40 = vld [vmem:[%s7890_s0 + $0x88] sm:$0xf] }
  0xf8   :  { %6090 = vmatprep.subr.bf16.mxu1 %v6530_v60  ;;  %v3942_v10 = vor.u32 %v3941_v3, %v3938_v58  ;;  %v4011_v58 = vshll.u32 %v5208_v36, 16  ;;  %v4027_v59 = vshll.u32 %v5210_v52, 16  ;;  %v4065_v38 = vshll.u32 %v5215_v23, 16  ;;  %v5219_v52 = vld [vmem:[%s7890_s0 + $0x8c] sm:$0x1] }
  0xf9   :  { %v3958_v45 = vsel %vm6718_vm2, %v3953_v37, %v3957_v15  ;;  %v3977_v53 = vrot.slane %v3976_v46, 4  ;;  %v4010_v4 = vrot.slane %v4008_v56, 4  ;;  %v6514_v46 = vld [vmem:[%s7889_s2 + $0xa8] sm:$0xff]  }
  0xfa   :  { %5825 = vmatmul.mubr.bf16.gmra.mrb[12].mxu1 %v6505_v32  ;;  %v3943_v21 = vrot.slane %v3942_v10, 4  ;;  %v5207_v32 = vld [vmem:[%s7890_s0 + $0x5c] sm:$0x1]  ;;  %v4013_v8 = vrot.slane %v4011_v58, 5  ;;  %v5213_v10 = vld [vmem:[%s7890_s0 + $0x74] sm:$0x1] }
  0xfb   :  { %5828 = vmatprep.mubr.bf16.mxu1 %v6508_v50  ;;  %6098 = vmatpush3.bf16.msra.mxu1 %v6530_v60  ;;  %v4003_v48 = vshll.u32 %v5207_v32, 16  ;;  %v3995_v50 = vrot.slane %v3993_v43, 5  ;;  %v4017_v60 = vshll.u32 %v5209_v33, 16  ;;  %v3982_v2 = vsel %vm6718_vm2, %v3977_v53, %v3981_v39  ;;  %v5217_v39 = vld [vmem:[%s7890_s0 + $0x84] sm:$0xf] }
  0xfc   :  { %6033 = vmatmul.mubr.bf16.gmra.mrb[28].mxu0 %v6506_v34  ;;  %v3948_v29 = vsel %vm6718_vm2, %v3943_v21, %v3947_v1  ;;  %v3984_v34 = vshrl.u32 %v5205_v17, 16  ;;  %v4014_v15 = vor.u32 %v4013_v8, %v4010_v4  ;;  %v4029_v16 = vrot.slane %v4027_v59, 5  ;;  %v5220_v58 = vld [vmem:[%s7890_s0 + $0x90] sm:$0xf] }
  0xfd   :  { %6052 = vmatprep.mubr.bf16.mxu0 %v5251_v18  ;;  %v6531_v18 = vld [vmem:[%s7886_s4 + $0x138] sm:$0xff]   ;;  %v5255_v49 = vcombine.low %v3948_v29, %v3958_v45  ;;  %v4005_v55 = vrot.slane %v4003_v48, 5  ;;  %v4000_v57 = vor.u32 %v3999_v51, %v3995_v50  ;;  %v4019_v9 = vrot.slane %v4017_v60, 5 }
  0xfe   :  { %6091 = vmatprep.subr.bf16.mxu1 %v6531_v18  ;;  %v3986_v42 = vrot.slane %v3984_v34, 4  ;;  %v4015_v25 = vrot.slane %v4014_v15, 4  ;;  %v4051_v27 = vshll.u32 %v5213_v10, 16  ;;  %v4059_v32 = vshll.u32 %v5214_v14, 16  ;;  %v5223_v15 = vld [vmem:[%s7890_s0 + $0x9c] sm:$0xf] }
  0xff   :  { %6099 = vmatpush3.bf16.msra.mxu1 %v6531_v18  ;;  %v4001_v7 = vrot.slane %v4000_v57, 4  ;;  %v4041_v18 = vshll.u32 %v5212_v5, 16  ;;  %v7638_v33 = vrot.slane %v4065_v38, 5  ;;  %v4075_v51 = vshll.u32 %v5216_v28, 16 }
 0x100   :  { %v3990_v54 = vor.u32 %v3989_v47, %v3986_v42  ;;  %v4020_v36 = vsel %vm6718_vm2, %v4015_v25, %v4019_v9  ;;  %v4053_v43 = vrot.slane %v4051_v27, 5  ;;  %v4061_v45 = vrot.slane %v4059_v32, 5  ;;  %v5225_v32 = vld [vmem:[%s7890_s0 + $0xa4] sm:$0x1] }
 0x101   :  { %v4080_v53 = vshrl.u32 %v5217_v39, 16  ;;  %v4083_v56 = vshll.u32 %v5217_v39, 16  ;;  %v4089_v57 = vshll.u32 %v5218_v40, 16  ;;  %v4077_v59 = vrot.slane %v4075_v51, 5 }
 0x102   :  { %5829 = vmatmul.mubr.bf16.gmra.mrb[16].mxu1 %v6509_v13  ;;  %v3991_v3 = vrot.slane %v3990_v54, 4  ;;  %v4023_v13 = vrot.slane %v4021_v61, 4  ;;  %v4099_v8 = vshll.u32 %v5219_v52, 16  ;;  %v4104_v10 = vshrl.u32 %v5220_v58, 16 }
 0x103   :  { %5832 = vmatprep.mubr.bf16.mxu1 %v6510_v19  ;;  %v4006_v19 = vsel %vm6718_vm2, %v4001_v7, %v4005_v55  ;;  %v4085_v5 = vrot.slane %v4083_v56, 5  ;;  %v4093_v7 = vshrl.u32 %v5218_v40, 16 }
 0x104   :  { %6053 = vmatmul.mubr.bf16.vlgmr.msra.gmra.mrb[0].mxu0 %v7521_v35  ;;  %v3972_v35 = vsel %vm6718_vm2, %v3967_v41, %v3971_v31  ;;  %v3996_v12 = vsel %vm6718_vm2, %v3991_v3, %v3995_v50  ;;  %v4024_v20 = vor.u32 %v4023_v13, %v4019_v9  ;;  %v4056_v31 = vshrl.u32 %v5214_v14, 16  ;;  %v6513_v41 = vld [vmem:[%s7889_s2 + $0x9c] sm:$0xff]   ;;  %v5222_v9 = vld [vmem:[%s7890_s0 + $0x98] sm:$0x1] }
 0x105   :  { %6056 = vmatprep.mubr.bf16.mxu0 %v5253_v63  ;;  %v5211_v63 = vld [vmem:[%s7890_s0 + $0x6c] sm:$0xf]  ;;  %v5256_v11 = vcombine.low %v3972_v35, %v3982_v2  ;;  %v5257_v34 = vcombine.low %v3996_v12, %v4006_v19  ;;  %v5221_v2 = vld [vmem:[%s7890_s0 + $0x94] sm:$0xf]  ;;  %v4106_v19 = vrot.slane %v4104_v10, 4 }
 0x106   :  { %v4032_v1 = vshrl.u32 %v5211_v63, 16  ;;  %v4035_v17 = vshll.u32 %v5211_v63, 16  ;;  %v4025_v29 = vrot.slane %v4024_v20, 4  ;;  %v4058_v44 = vrot.slane %v4056_v31, 4 }
 0x107   :  { %v4113_v14 = vshll.u32 %v5221_v2, 16  ;;  %v4117_v20 = vshrl.u32 %v5221_v2, 16 }
 0x108   :  { %v4034_v21 = vrot.slane %v4032_v1, 4  ;;  %v4037_v26 = vrot.slane %v4035_v17, 5  ;;  %v4030_v47 = vsel %vm6718_vm2, %v4025_v29, %v4029_v16  ;;  %v4062_v50 = vor.u32 %v4061_v45, %v4058_v44  ;;  %v6516_v16 = vld [vmem:[%s7888_s3 + $0x60] sm:$0xff]  }
 0x109   :  { %v5258_v60 = vcombine.low %v4020_v36, %v4030_v47  ;;  %v4107_v1 = vshll.u32 %v5220_v58, 16  ;;  %v4119_v28 = vrot.slane %v4117_v20, 4  ;;  %v4123_v29 = vshll.u32 %v5222_v9, 16 }
 0x10a   :  { %5833 = vmatmul.mubr.bf16.gmra.mrb[20].mxu1 %v6511_v0  ;;  %v4038_v37 = vor.u32 %v4037_v26, %v4034_v21  ;;  %v4063_v63 = vrot.slane %v4062_v50, 4  ;;  %v4082_v0 = vrot.slane %v4080_v53, 4  ;;  %v5224_v21 = vld [vmem:[%s7890_s0 + $0xa0] sm:$0xf]  ;;  %v4115_v26 = vrot.slane %v4113_v14, 5 }
 0x10b   :  { %5836 = vmatprep.mubr.bf16.mxu1 %v6512_v6  ;;  %v4091_v6 = vrot.slane %v4089_v57, 5  ;;  %v4109_v25 = vrot.slane %v4107_v1, 5  ;;  %v4131_v36 = vshll.u32 %v5223_v15, 16  ;;  %v4125_v40 = vrot.slane %v4123_v29, 5  ;;  %v5228_v53 = vld [vmem:[%s7890_s0 + $0xb0] sm:$0x1] }
 0x10c   :  { %6057 = vmatmul.mubr.bf16.gmra.mrb[4].mxu0 %v5254_v24  ;;  %v4043_v24 = vrot.slane %v4041_v18, 5  ;;  %v4039_v48 = vrot.slane %v4038_v37, 4  ;;  %v4086_v13 = vor.u32 %v4085_v5, %v4082_v0  ;;  %v4068_v17 = vsel %vm6718_vm2, %v4063_v63, %v7638_v33  ;;  %v5226_v37 = vld [vmem:[%s7890_s0 + $0xa8] sm:$0xf]  ;;  %v5231_v14 = vld [vmem:[%s7890_s0 + $0xbc] sm:$0x1] }
 0x10d   :  { %6060 = vmatprep.mubr.bf16.mxu0 %v5255_v49  ;;  %v4069_v49 = vshrl.u32 %v5215_v23, 16  ;;  %v4095_v18 = vrot.slane %v4093_v7, 4  ;;  %v4101_v23 = vrot.slane %v4099_v8, 5  ;;  %v4110_v31 = vor.u32 %v4109_v25, %v4106_v19  ;;  %v5230_v7 = vld [vmem:[%s7890_s0 + $0xb8] sm:$0xf] }
 0x10e   :  { %v4048_v42 = vor.u32 %v4047_v30, %v4043_v24  ;;  %v4044_v54 = vsel %vm6718_vm2, %v4039_v48, %v4043_v24  ;;  %v4087_v22 = vrot.slane %v4086_v13, 4  ;;  %v4120_v39 = vor.u32 %v4119_v28, %v4115_v26 }
 0x10f   :  { %v4071_v55 = vrot.slane %v4069_v49, 4  ;;  %v4096_v27 = vor.u32 %v4095_v18, %v4091_v6  ;;  %v4133_v44 = vrot.slane %v4131_v36, 5  ;;  %v4141_v45 = vshrl.u32 %v5224_v21, 16  ;;  %v5227_v49 = vld [vmem:[%s7890_s0 + $0xac] sm:$0xf] }
 0x110   :  { %v4049_v35 = vrot.slane %v4048_v42, 4  ;;  %v4092_v30 = vsel %vm6718_vm2, %v4087_v22, %v4091_v6  ;;  %v4111_v42 = vrot.slane %v4110_v31, 4  ;;  %v4121_v47 = vrot.slane %v4120_v39, 4 }
 0x111   :  { %v4072_v4 = vor.u32 %v4071_v55, %v7638_v33  ;;  %v4097_v38 = vrot.slane %v4096_v27, 4  ;;  %v4147_v33 = vshll.u32 %v5225_v32, 16  ;;  %v4143_v52 = vrot.slane %v4141_v45, 4 }
 0x112   :  { %5837 = vmatmul.mubr.bf16.gmra.mrb[24].mxu1 %v6513_v41  ;;  %v4054_v61 = vsel %vm6718_vm2, %v4049_v35, %v4053_v43  ;;  %v4137_v41 = vshll.u32 %v5224_v21, 16  ;;  %v4116_v55 = vsel %vm6718_vm2, %v4111_v42, %v4115_v26  ;;  %v4126_v56 = vsel %vm6718_vm2, %v4121_v47, %v4125_v40  ;;  %v5233_v26 = vld [vmem:[%s7890_s0 + $0xc4] sm:$0xf]  ;;  %v5234_v40 = vld [vmem:[%s7890_s0 + $0xc8] sm:$0x1] }
 0x113   :  { %5840 = vmatprep.mubr.bf16.mxu1 %v6514_v46  ;;  %v5259_v3 = vcombine.low %v4044_v54, %v4054_v61  ;;  %v4073_v12 = vrot.slane %v4072_v4, 4  ;;  %v4102_v46 = vsel %vm6718_vm2, %v4097_v38, %v4101_v23  ;;  %v6517_v54 = vld [vmem:[%s7888_s3 + $0x6c] sm:$0xff]   ;;  %v4152_v57 = vshrl.u32 %v5226_v37, 16  ;;  %v6518_v61 = vld [vmem:[%s7888_s3 + $0x78] sm:$0xff]  }
 0x114   :  { %6061 = vmatmul.mubr.bf16.gmra.mrb[8].mxu0 %v5256_v11  ;;  %v6515_v11 = vld [vmem:[%s7889_s2 + $0xb4] sm:$0xff]   ;;  %v4139_v48 = vrot.slane %v4137_v41, 5  ;;  %v5261_v50 = vcombine.low %v4092_v30, %v4102_v46  ;;  %v4155_v58 = vshll.u32 %v5226_v37, 16  ;;  %v4149_v2 = vrot.slane %v4147_v33, 5  ;;  %v6519_v30 = vld [vmem:[%s7888_s3 + $0x84] sm:$0xff]  }
 0x115   :  { %6064 = vmatprep.mubr.bf16.mxu0 %v5257_v34  ;;  %v4078_v24 = vsel %vm6718_vm2, %v4073_v12, %v4077_v59  ;;  %v4128_v34 = vshrl.u32 %v5223_v15, 16  ;;  %v4154_v4 = vrot.slane %v4152_v57, 4  ;;  %v4165_v5 = vshrl.u32 %v5227_v49, 16  ;;  %v6520_v37 = vld [vmem:[%s7888_s3 + $0x90] sm:$0xff]  }
 0x116   :  { %v5260_v35 = vcombine.low %v4068_v17, %v4078_v24  ;;  %v4144_v0 = vor.u32 %v4143_v52, %v4139_v48  ;;  %v4157_v59 = vrot.slane %v4155_v58, 5  ;;  %v4171_v6 = vshll.u32 %v5228_v53, 16 }
 0x117   :  { %v4130_v43 = vrot.slane %v4128_v34, 4  ;;  %v5262_v8 = vcombine.low %v4116_v55, %v4126_v56  ;;  %v4167_v1 = vrot.slane %v4165_v5, 4  ;;  %v4185_v19 = vshll.u32 %v5230_v7, 16  ;;  %v6521_v55 = vld [vmem:[%s7888_s3 + $0x9c] sm:$0xff]  }
 0x118   :  { %v4145_v9 = vrot.slane %v4144_v0, 4  ;;  %v4158_v13 = vor.u32 %v4157_v59, %v4154_v4  ;;  %v4189_v20 = vshrl.u32 %v5230_v7, 16  ;;  %v4173_v23 = vrot.slane %v4171_v6, 5 }
 0x119   :  { %v4134_v51 = vor.u32 %v4133_v44, %v4130_v43  ;;  %v4187_v24 = vrot.slane %v4185_v19, 5  ;;  %v4195_v28 = vshll.u32 %v5231_v14, 16  ;;  %v4209_v42 = vshll.u32 %v5233_v26, 16 }
 0x11a   :  { %5841 = vmatmul.mubr.bf16.gmra.mrb[28].mxu1 %v6515_v11  ;;  %v4150_v17 = vsel %vm6718_vm2, %v4145_v9, %v4149_v2  ;;  %v4159_v21 = vrot.slane %v4158_v13, 4  ;;  %v4191_v27 = vrot.slane %v4189_v20, 4  ;;  %v4213_v45 = vshrl.u32 %v5233_v26, 16 }
 0x11b   :  { %5876 = vmatprep.mubr.bf16.mxu1 %v6516_v16  ;;  %v4135_v63 = vrot.slane %v4134_v51, 4  ;;  %v5232_v16 = vld [vmem:[%s7890_s0 + $0xc0] sm:$0xf]  ;;  %v4197_v39 = vrot.slane %v4195_v28, 5 }
 0x11c   :  { %6065 = vmatmul.mubr.bf16.gmra.mrb[12].mxu0 %v5258_v60  ;;  %v5229_v60 = vld [vmem:[%s7890_s0 + $0xb4] sm:$0xf]  ;;  %v4200_v29 = vshrl.u32 %v5232_v16, 16  ;;  %v4203_v36 = vshll.u32 %v5232_v16, 16  ;;  %v4192_v38 = vor.u32 %v4191_v27, %v4187_v24 }
 0x11d   :  { %6068 = vmatprep.mubr.bf16.mxu0 %v5259_v3  ;;  %v4161_v3 = vshll.u32 %v5227_v49, 16  ;;  %v4176_v11 = vshrl.u32 %v5229_v60, 16  ;;  %v4140_v12 = vsel %vm6718_vm2, %v4135_v63, %v4139_v48  ;;  %v4179_v15 = vshll.u32 %v5229_v60, 16 }
 0x11e   :  { %v5263_v31 = vcombine.low %v4140_v12, %v4150_v17  ;;  %v4202_v41 = vrot.slane %v4200_v29, 4  ;;  %v4205_v44 = vrot.slane %v4203_v36, 5  ;;  %v4193_v47 = vrot.slane %v4192_v38, 4 }
 0x11f   :  { %v4163_v10 = vrot.slane %v4161_v3, 5  ;;  %v4178_v18 = vrot.slane %v4176_v11, 4  ;;  %v4181_v25 = vrot.slane %v4179_v15, 5  ;;  %v4211_v48 = vrot.slane %v4209_v42, 5  ;;  %v6523_v3 = vld [vmem:[%s7888_s3 + $0xb4] sm:$0xff]  }
 0x120   :  { %v4206_v49 = vor.u32 %v4205_v44, %v4202_v41  ;;  %v4198_v52 = vsel %vm6718_vm2, %v4193_v47, %v4197_v39 }
 0x121   :  { %v4168_v22 = vor.u32 %v4167_v1, %v4163_v10  ;;  %v4182_v34 = vor.u32 %v4181_v25, %v4178_v18  ;;  %v4164_v46 = vsel %vm6718_vm2, %v4159_v21, %v4163_v10  ;;  %v7762_v18 = vld [vmem:[%s7891_s5] ss:$0 sm:$0xff] }
 0x122   :  { %5877 = vmatmul.mubr.bf16.vlgmr.msra.gmra.mrb[16].mxu1 %v6517_v54  ;;  %v4207_v57 = vrot.slane %v4206_v49, 4  ;;  %v7767_v21 = vld [vmem:[%s7892_s6] ss:$0 sm:$0xff] }
 0x123   :  { %5880 = vmatprep.mubr.bf16.mxu1 %v6518_v61  ;;  %v4169_v32 = vrot.slane %v4168_v22, 4  ;;  %v4183_v43 = vrot.slane %v4182_v34, 4  ;;  %v6522_v61 = vld [vmem:[%s7888_s3 + $0xa8] sm:$0xff]  }
 0x124   :  { %6069 = vmatmul.mubr.bf16.gmra.mrb[16].mxu0 %v5260_v35  ;;  %v4215_v35 = vrot.slane %v4213_v45, 4  ;;  %v4212_v63 = vsel %vm6718_vm2, %v4207_v57, %v4211_v48 }
 0x125   :  { %6072 = vmatprep.mubr.bf16.mxu0 %v5261_v50  ;;  %v4174_v33 = vsel %vm6718_vm2, %v4169_v32, %v4173_v23  ;;  %v4219_v50 = vshll.u32 %v5234_v40, 16  ;;  %v4188_v51 = vsel %vm6718_vm2, %v4183_v43, %v4187_v24 }
 0x126   :  { %v4216_v53 = vor.u32 %v4215_v35, %v4211_v48  ;;  %v5264_v54 = vcombine.low %v4164_v46, %v4174_v33  ;;  %v5265_v56 = vcombine.low %v4188_v51, %v4198_v52 }
 0x127   :  { %v4221_v60 = vrot.slane %v4219_v50, 5 }
 0x128   :  { %v4217_v58 = vrot.slane %v4216_v53, 4 }
 0x12a   :  { %5881 = vmatmul.mubr.bf16.gmra.mrb[20].mxu1 %v6519_v30  ;;  %v4222_v0 = vsel %vm6718_vm2, %v4217_v58, %v4221_v60 }
 0x12b   :  { %5884 = vmatprep.mubr.bf16.mxu1 %v6520_v37  ;;  %v5266_v2 = vcombine.low %v4212_v63, %v4222_v0 }
 0x12c   :  { %6073 = vmatmul.mubr.bf16.gmra.mrb[20].mxu0 %v5262_v8 }
 0x12d   :  { %6076 = vmatprep.mubr.bf16.mxu0 %v5263_v31 }
 0x132   :  { %5885 = vmatmul.mubr.bf16.gmra.mrb[24].mxu1 %v6521_v55 }
 0x133   :  { %5888 = vmatprep.mubr.bf16.mxu1 %v6522_v61 }
 0x134   :  { %6077 = vmatmul.mubr.bf16.gmra.mrb[24].mxu0 %v5264_v54 }
 0x135   :  { %6080 = vmatprep.mubr.bf16.mxu0 %v5265_v56 }
 0x13a   :  { %5889 = vmatmul.mubr.bf16.gmra.mrb[28].mxu1 %v6523_v3 }
 0x13c   :  { %6081 = vmatmul.mubr.bf16.gmra.mrb[28].mxu0 %v5266_v2 }
 0x1b5   :  { %v5814_v4 = vpop.f32.mrb[0].mxu1 }
 0x1b6   :  { %v1718_v59 = vpop.f32.mrb[1].mxu1 }
 0x1b7   :  { %v5815_v5 = vpop.f32.mrb[2].mxu1 }
 0x1b8   :  { %v1721_v6 = vpop.f32.mrb[3].mxu1 }
 0x1bd   :  { %v5818_v7 = vpop.f32.mrb[4].mxu1 }
 0x1be   :  { %v1734_v8 = vpop.f32.mrb[5].mxu1 }
 0x1bf   :  { %v5819_v9 = vpop.f32.mrb[6].mxu1 }
 0x1c0   :  { %v1737_v10 = vpop.f32.mrb[7].mxu1 }
 0x1c5   :  { %v5822_v11 = vpop.f32.mrb[8].mxu1 }
 0x1c6   :  { %v1750_v12 = vpop.f32.mrb[9].mxu1 }
 0x1c7   :  { %v5823_v62 = vpop.f32.mrb[10].mxu1 }
 0x1c8   :  { %v7749_v13 = vpop.f32.mrb[11].mxu1 }
 0x1cd   :  { %v7751_v1 = vpop.f32.mrb[12].mxu1 }
 0x1ce   :  { %v7753_v14 = vpop.f32.mrb[13].mxu1 }
 0x1cf   :  { %v7755_v15 = vpop.f32.mrb[14].mxu1 }
 0x1d0   :  { %v7757_v16 = vpop.f32.mrb[15].mxu1 }
 0x1d7   :  { %v6054_v17 = vpop.f32.mrb[0].mxu0 }
 0x1d8   :  { %v6100_v19 = vadd.f32 %v6054_v17, %v5814_v4  ;;  %v4386_v20 = vpop.f32.mrb[1].mxu0 }
 0x1d9   :  { %v6101_v22 = vadd.f32 %v4386_v20, %v1718_v59  ;;  %v6055_v23 = vpop.f32.mrb[2].mxu0 }
 0x1da   :  { %v4554_v25 = vmul.f32 %v6100_v19, %v7762_v18  ;;  %v6102_v26 = vadd.f32 %v6055_v23, %v5815_v5  ;;  %v4389_v24 = vpop.f32.mrb[3].mxu0 }
 0x1db   :  { %v4552_v27 = vmul.f32 %v6101_v22, %v7762_v18  ;;  %v6103_v28 = vadd.f32 %v4389_v24, %v1721_v6 }
 0x1dc   :  { %v4593_v29 = vadd.f32 %v7767_v21, %v4554_v25  ;;  %v4555_v30 = vmul.f32 %v6102_v26, %v7762_v18 }
 0x1dd   :  { %v4591_v31 = vadd.f32 %v7767_v21, %v4552_v27  ;;  %v4553_v32 = vmul.f32 %v6103_v28, %v7762_v18 }
 0x1de   :  { %v4594_v34 = vadd.f32 %v7767_v21, %v4555_v30  ;;  %v4625_v38 = vmax.f32 %v4593_v29, 0.0 }
 0x1df   :  { %v4592_v36 = vadd.f32 %v7767_v21, %v4553_v32  ;;  %v6058_v37 = vpop.f32.mrb[4].mxu0  ;;  %v4623_v42 = vmax.f32 %v4591_v31, 0.0 }
 0x1e0   :  { %v4626_v39 = vmax.f32 %v4594_v34, 0.0  ;;  %v6104_v40 = vadd.f32 %v6058_v37, %v5818_v7  ;;  %v4402_v41 = vpop.f32.mrb[5].mxu0 }
 0x1e1   :  { %v4624_v43 = vmax.f32 %v4592_v36, 0.0  ;;  %v6105_v44 = vadd.f32 %v4402_v41, %v1734_v8  ;;  %v6059_v45 = vpop.f32.mrb[6].mxu0 }
 0x1e2   :  { %v5349_v46 = vpack.c.bf16 %v4626_v39, %v4625_v38  ;;  %v4558_v47 = vmul.f32 %v6104_v40, %v7762_v18  ;;  %v6106_v48 = vadd.f32 %v6059_v45, %v5819_v9  ;;  %v4405_v33 = vpop.f32.mrb[7].mxu0 }
 0x1e3   :  { %v5344_v49 = vpack.c.bf16 %v4624_v43, %v4623_v42  ;;  %v4556_v35 = vmul.f32 %v6105_v44, %v7762_v18  ;;  %v6107_v50 = vadd.f32 %v4405_v33, %v1737_v10 }
 0x1e4   :  { %5421 = vst [vmem:[%s7893_s7 + $0x8] sm:$0xff] %v5349_v46   ;;  %v4597_v51 = vadd.f32 %v7767_v21, %v4558_v47  ;;  %v4559_v52 = vmul.f32 %v6106_v48, %v7762_v18 }
 0x1e5   :  { %5345 = vst [vmem:[%s7893_s7] sm:$0xff] %v5344_v49   ;;  %v4595_v53 = vadd.f32 %v7767_v21, %v4556_v35  ;;  %v4557_v54 = vmul.f32 %v6107_v50, %v7762_v18 }
 0x1e6   :  { %v4598_v55 = vadd.f32 %v7767_v21, %v4559_v52  ;;  %v4629_v58 = vmax.f32 %v4597_v51, 0.0 }
 0x1e7   :  { %v4596_v56 = vadd.f32 %v7767_v21, %v4557_v54  ;;  %v6062_v57 = vpop.f32.mrb[8].mxu0  ;;  %v4627_v0 = vmax.f32 %v4595_v53, 0.0 }
 0x1e8   :  { %v4630_v60 = vmax.f32 %v4598_v55, 0.0  ;;  %v6108_v61 = vadd.f32 %v6062_v57, %v5822_v11  ;;  %v4418_v63 = vpop.f32.mrb[9].mxu0 }
 0x1e9   :  { %v4628_v2 = vmax.f32 %v4596_v56, 0.0  ;;  %v6109_v3 = vadd.f32 %v4418_v63, %v1750_v12  ;;  %v6063_v4 = vpop.f32.mrb[10].mxu0 }
 0x1ea   :  { %v5359_v59 = vpack.c.bf16 %v4630_v60, %v4629_v58  ;;  %v4562_v5 = vmul.f32 %v6108_v61, %v7762_v18  ;;  %v6110_v6 = vadd.f32 %v6063_v4, %v5823_v62  ;;  %v4421_v7 = vpop.f32.mrb[11].mxu0 }
 0x1eb   :  { %v5354_v8 = vpack.c.bf16 %v4628_v2, %v4627_v0  ;;  %v4560_v9 = vmul.f32 %v6109_v3, %v7762_v18  ;;  %v6111_v10 = vadd.f32 %v4421_v7, %v7749_v13 }
 0x1ec   :  { %5423 = vst [vmem:[%s7893_s7 + $0x18] sm:$0xff] %v5359_v59   ;;  %v4601_v11 = vadd.f32 %v7767_v21, %v4562_v5  ;;  %v4563_v17 = vmul.f32 %v6110_v6, %v7762_v18 }
 0x1ed   :  { %5422 = vst [vmem:[%s7893_s7 + $0x10] sm:$0xff] %v5354_v8   ;;  %v4599_v12 = vadd.f32 %v7767_v21, %v4560_v9  ;;  %v4561_v62 = vmul.f32 %v6111_v10, %v7762_v18 }
 0x1ee   :  { %v4602_v19 = vadd.f32 %v7767_v21, %v4563_v17  ;;  %v4633_v22 = vmax.f32 %v4601_v11, 0.0 }
 0x1ef   :  { %v4600_v13 = vadd.f32 %v7767_v21, %v4561_v62  ;;  %v6066_v20 = vpop.f32.mrb[12].mxu0  ;;  %v4631_v24 = vmax.f32 %v4599_v12, 0.0 }
 0x1f0   :  { %v4634_v23 = vmax.f32 %v4602_v19, 0.0  ;;  %v6112_v25 = vadd.f32 %v6066_v20, %v7751_v1  ;;  %v4434_v26 = vpop.f32.mrb[13].mxu0 }
 0x1f1   :  { %v4632_v27 = vmax.f32 %v4600_v13, 0.0  ;;  %v6113_v28 = vadd.f32 %v4434_v26, %v7753_v14  ;;  %v6067_v29 = vpop.f32.mrb[14].mxu0 }
 0x1f2   :  { %v5369_v30 = vpack.c.bf16 %v4634_v23, %v4633_v22  ;;  %v4566_v31 = vmul.f32 %v6112_v25, %v7762_v18  ;;  %v6114_v32 = vadd.f32 %v6067_v29, %v7755_v15  ;;  %v4437_v34 = vpop.f32.mrb[15].mxu0 }
 0x1f3   :  { %v5364_v36 = vpack.c.bf16 %v4632_v27, %v4631_v24  ;;  %v4564_v37 = vmul.f32 %v6113_v28, %v7762_v18  ;;  %v6115_v38 = vadd.f32 %v4437_v34, %v7757_v16 }
 0x1f4   :  { %5425 = vst [vmem:[%s7893_s7 + $0x28] sm:$0xff] %v5369_v30   ;;  %v4605_v1 = vadd.f32 %v7767_v21, %v4566_v31  ;;  %v4567_v14 = vmul.f32 %v6114_v32, %v7762_v18 }
 0x1f5   :  { %5424 = vst [vmem:[%s7893_s7 + $0x20] sm:$0xff] %v5364_v36   ;;  %v4603_v15 = vadd.f32 %v7767_v21, %v4564_v37  ;;  %v4565_v39 = vmul.f32 %v6115_v38, %v7762_v18  ;;  %v5878_v44 = vpop.f32.mrb[16].mxu1 }
 0x1f6   :  { %v4606_v40 = vadd.f32 %v7767_v21, %v4567_v14  ;;  %v4637_v42 = vmax.f32 %v4605_v1, 0.0  ;;  %v2168_v33 = vpop.f32.mrb[17].mxu1 }
 0x1f7   :  { %v4604_v16 = vadd.f32 %v7767_v21, %v4565_v39  ;;  %v6070_v41 = vpop.f32.mrb[16].mxu0  ;;  %v4635_v46 = vmax.f32 %v4603_v15, 0.0  ;;  %v5879_v51 = vpop.f32.mrb[18].mxu1 }
 0x1f8   :  { %v4638_v43 = vmax.f32 %v4606_v40, 0.0  ;;  %v4450_v45 = vpop.f32.mrb[17].mxu0  ;;  %v6116_v48 = vadd.f32 %v6070_v41, %v5878_v44  ;;  %v2171_v56 = vpop.f32.mrb[19].mxu1 }
 0x1f9   :  { %v4636_v47 = vmax.f32 %v4604_v16, 0.0  ;;  %v6071_v49 = vpop.f32.mrb[18].mxu0  ;;  %v6117_v50 = vadd.f32 %v4450_v45, %v2168_v33 }
 0x1fa   :  { %v5379_v35 = vpack.c.bf16 %v4638_v43, %v4637_v42  ;;  %v4453_v52 = vpop.f32.mrb[19].mxu0  ;;  %v4570_v54 = vmul.f32 %v6116_v48, %v7762_v18  ;;  %v6118_v55 = vadd.f32 %v6071_v49, %v5879_v51 }
 0x1fb   :  { %v5374_v53 = vpack.c.bf16 %v4636_v47, %v4635_v46  ;;  %v4568_v57 = vmul.f32 %v6117_v50, %v7762_v18  ;;  %v6119_v58 = vadd.f32 %v4453_v52, %v2171_v56 }
 0x1fc   :  { %5427 = vst [vmem:[%s7893_s7 + $0x38] sm:$0xff] %v5379_v35   ;;  %v4609_v60 = vadd.f32 %v7767_v21, %v4570_v54  ;;  %v4571_v61 = vmul.f32 %v6118_v55, %v7762_v18 }
 0x1fd   :  { %5426 = vst [vmem:[%s7893_s7 + $0x30] sm:$0xff] %v5374_v53   ;;  %v4607_v63 = vadd.f32 %v7767_v21, %v4568_v57  ;;  %v4569_v0 = vmul.f32 %v6119_v58, %v7762_v18  ;;  %v5882_v59 = vpop.f32.mrb[20].mxu1 }
 0x1fe   :  { %v4610_v2 = vadd.f32 %v7767_v21, %v4571_v61  ;;  %v4641_v6 = vmax.f32 %v4609_v60, 0.0  ;;  %v2184_v9 = vpop.f32.mrb[21].mxu1 }
 0x1ff   :  { %v6074_v3 = vpop.f32.mrb[20].mxu0  ;;  %v4608_v4 = vadd.f32 %v7767_v21, %v4569_v0  ;;  %v4639_v11 = vmax.f32 %v4607_v63, 0.0  ;;  %v5883_v62 = vpop.f32.mrb[22].mxu1 }
 0x200   :  { %v4466_v5 = vpop.f32.mrb[21].mxu0  ;;  %v4642_v7 = vmax.f32 %v4610_v2, 0.0  ;;  %v6120_v8 = vadd.f32 %v6074_v3, %v5882_v59  ;;  %v2187_v23 = vpop.f32.mrb[23].mxu1 }
 0x201   :  { %v6075_v10 = vpop.f32.mrb[22].mxu0  ;;  %v4640_v17 = vmax.f32 %v4608_v4, 0.0  ;;  %v6121_v12 = vadd.f32 %v4466_v5, %v2184_v9 }
 0x202   :  { %v4469_v19 = vpop.f32.mrb[23].mxu0  ;;  %v5389_v13 = vpack.c.bf16 %v4642_v7, %v4641_v6  ;;  %v4574_v20 = vmul.f32 %v6120_v8, %v7762_v18  ;;  %v6122_v22 = vadd.f32 %v6075_v10, %v5883_v62 }
 0x203   :  { %v5384_v25 = vpack.c.bf16 %v4640_v17, %v4639_v11  ;;  %v4572_v26 = vmul.f32 %v6121_v12, %v7762_v18  ;;  %v6123_v24 = vadd.f32 %v4469_v19, %v2187_v23 }
 0x204   :  { %5429 = vst [vmem:[%s7893_s7 + $0x48] sm:$0xff] %v5389_v13   ;;  %v4613_v27 = vadd.f32 %v7767_v21, %v4574_v20  ;;  %v4575_v28 = vmul.f32 %v6122_v22, %v7762_v18 }
 0x205   :  { %5428 = vst [vmem:[%s7893_s7 + $0x40] sm:$0xff] %v5384_v25   ;;  %v4611_v29 = vadd.f32 %v7767_v21, %v4572_v26  ;;  %v4573_v30 = vmul.f32 %v6123_v24, %v7762_v18  ;;  %v5886_v36 = vpop.f32.mrb[24].mxu1 }
 0x206   :  { %v4614_v31 = vadd.f32 %v7767_v21, %v4575_v28  ;;  %v4645_v38 = vmax.f32 %v4613_v27, 0.0  ;;  %v2200_v15 = vpop.f32.mrb[25].mxu1 }
 0x207   :  { %v6078_v32 = vpop.f32.mrb[24].mxu0  ;;  %v4612_v34 = vadd.f32 %v7767_v21, %v4573_v30  ;;  %v4643_v40 = vmax.f32 %v4611_v29, 0.0  ;;  %v5887_v42 = vpop.f32.mrb[26].mxu1 }
 0x208   :  { %v4482_v37 = vpop.f32.mrb[25].mxu0  ;;  %v4646_v1 = vmax.f32 %v4614_v31, 0.0  ;;  %v6124_v14 = vadd.f32 %v6078_v32, %v5886_v36  ;;  %v2203_v47 = vpop.f32.mrb[27].mxu1 }
 0x209   :  { %v6079_v39 = vpop.f32.mrb[26].mxu0  ;;  %v4644_v16 = vmax.f32 %v4612_v34, 0.0  ;;  %v6125_v41 = vadd.f32 %v4482_v37, %v2200_v15 }
 0x20a   :  { %v4485_v43 = vpop.f32.mrb[27].mxu0  ;;  %v5399_v44 = vpack.c.bf16 %v4646_v1, %v4645_v38  ;;  %v4578_v45 = vmul.f32 %v6124_v14, %v7762_v18  ;;  %v6126_v46 = vadd.f32 %v6079_v39, %v5887_v42 }
 0x20b   :  { %v5394_v48 = vpack.c.bf16 %v4644_v16, %v4643_v40  ;;  %v4576_v33 = vmul.f32 %v6125_v41, %v7762_v18  ;;  %v6127_v49 = vadd.f32 %v4485_v43, %v2203_v47 }
 0x20c   :  { %5431 = vst [vmem:[%s7893_s7 + $0x58] sm:$0xff] %v5399_v44   ;;  %v4617_v35 = vadd.f32 %v7767_v21, %v4578_v45  ;;  %v4579_v50 = vmul.f32 %v6126_v46, %v7762_v18 }
 0x20d   :  { %5430 = vst [vmem:[%s7893_s7 + $0x50] sm:$0xff] %v5394_v48   ;;  %v4615_v51 = vadd.f32 %v7767_v21, %v4576_v33  ;;  %v4577_v52 = vmul.f32 %v6127_v49, %v7762_v18  ;;  %v5890_v56 = vpop.f32.mrb[28].mxu1 }
 0x20e   :  { %v4618_v53 = vadd.f32 %v7767_v21, %v4579_v50  ;;  %v4649_v58 = vmax.f32 %v4617_v35, 0.0  ;;  %v2216_v63 = vpop.f32.mrb[29].mxu1 }
 0x20f   :  { %v6082_v54 = vpop.f32.mrb[28].mxu0  ;;  %v4616_v55 = vadd.f32 %v7767_v21, %v4577_v52  ;;  %v4647_v2 = vmax.f32 %v4615_v51, 0.0  ;;  %v5891_v59 = vpop.f32.mrb[30].mxu1 }
 0x210   :  { %v4498_v57 = vpop.f32.mrb[29].mxu0  ;;  %v4650_v60 = vmax.f32 %v4618_v53, 0.0  ;;  %v6128_v61 = vadd.f32 %v6082_v54, %v5890_v56  ;;  %v2219_v9 = vpop.f32.mrb[31].mxu1 }
 0x211   :  { %v6083_v0 = vpop.f32.mrb[30].mxu0  ;;  %v4648_v3 = vmax.f32 %v4616_v55, 0.0  ;;  %v6129_v4 = vadd.f32 %v4498_v57, %v2216_v63 }
 0x212   :  { %v4501_v5 = vpop.f32.mrb[31].mxu0  ;;  %v5409_v6 = vpack.c.bf16 %v4650_v60, %v4649_v58  ;;  %v4582_v7 = vmul.f32 %v6128_v61, %v7762_v18  ;;  %v6130_v8 = vadd.f32 %v6083_v0, %v5891_v59 }
 0x213   :  { %v5404_v10 = vpack.c.bf16 %v4648_v3, %v4647_v2  ;;  %v4580_v11 = vmul.f32 %v6129_v4, %v7762_v18  ;;  %v6131_v17 = vadd.f32 %v4501_v5, %v2219_v9 }
 0x214   :  { %5433 = vst [vmem:[%s7893_s7 + $0x68] sm:$0xff] %v5409_v6   ;;  %v4621_v12 = vadd.f32 %v7767_v21, %v4582_v7  ;;  %v4583_v62 = vmul.f32 %v6130_v8, %v7762_v18 }
 0x215   :  { %5432 = vst [vmem:[%s7893_s7 + $0x60] sm:$0xff] %v5404_v10   ;;  %v4619_v19 = vadd.f32 %v7767_v21, %v4580_v11  ;;  %v4581_v13 = vmul.f32 %v6131_v17, %v7762_v18 }
 0x216   :  { %v4622_v20 = vadd.f32 %v7767_v21, %v4583_v62  ;;  %v4653_v23 = vmax.f32 %v4621_v12, 0.0 }
 0x217   :  { %v4620_v22 = vadd.f32 %v7767_v21, %v4581_v13  ;;  %v4651_v26 = vmax.f32 %v4619_v19, 0.0 }
 0x218   :  { %v4654_v25 = vmax.f32 %v4622_v20, 0.0 }
 0x219   :  { %v4652_v24 = vmax.f32 %v4620_v22, 0.0 }
 0x21a   :  { %v5419_v27 = vpack.c.bf16 %v4654_v25, %v4653_v23 }
 0x21b   :  { %v5414_v28 = vpack.c.bf16 %v4652_v24, %v4651_v26 }
 0x21c   :  { %5435 = vst [vmem:[%s7893_s7 + $0x78] sm:$0xff] %v5419_v27  }
 0x21d   :  { %5434 = vst [vmem:[%s7893_s7 + $0x70] sm:$0xff] %v5414_v28  }

// kernel: wrapped_resnet101_forward.11
= control target key start
LH: loop header
LB: loop body
LE: loop exit
PB: predicated region body
PF: predicated region fallthrough
CT: control target
= control target key end

     0   :  { %s799_s9 = smov 0   ;;  %s947_s0 = inlined_call_operand.vmem [shape: f32[1024,64], index: 0, kind: input, shape index: {}]   ;;  %s948_s1 = inlined_call_operand.vmem [shape: f32[64,128], index: 1, kind: input, shape index: {}]   ;;  %s949_s2 = inlined_call_operand.vmem [shape: f32[1024,128], index: 2, kind: output, shape index: {}]  }
   0x1 LB: > { %s597_s10 = sadd.s32 4294967295, %s782_s9   ;;  %p601_p0 = scmp.ge.s32.totalorder %s782_s9, 1  ;;  %s782_s9 = sphi %s799_s9, %s12_s9  }
   0x2   : > { %p113_p1 = scmp.lt.s32.totalorder %s782_s9, 5 }
   0x4   : > { %p114_p2 = pnand %p601_p0, %p113_p1 }
   0x5   : > { %v179_v0 = vld [vmem:[%s948_s1] sm:$0xff] (!%p114_p2)  ;;  %v180_v1 = vld [vmem:[%s948_s1 + $0x8] sm:$0xff] (!%p114_p2)  ;;  %v181_v2 = vld [vmem:[%s948_s1 + $0x10] sm:$0xff] (!%p114_p2)  ;;  %s602_s17 = sshll.u32 (!%p114_p2), %s597_s10, 5  ;;  %vm187_vm0 = vcmask (!%p114_p2), 523264  }
   0x6   : > { %117 = sbr.rel (%p114_p2) target bundleno = 267 (0x10b), region = 28  ;;  %v744_v3 = vpack.c.bf16 (!%p114_p2), %v180_v1, %v179_v0  ;;  %v182_v4 = vld [vmem:[%s948_s1 + $0x18] sm:$0xff] (!%p114_p2)  ;;  %p136_p3 = scmp.lt.s32.totalorder (!%p114_p2), %s602_s17, 127  ;;  %v183_v6 = vld [vmem:[%s948_s1 + $0x20] sm:$0xff] (!%p114_p2)  ;;  %v184_v7 = vld [vmem:[%s948_s1 + $0x28] sm:$0xff] (!%p114_p2) }
   0x7   : > { %v748_v5 = vpack.c.bf16 (!%p114_p2), %v182_v4, %v181_v2  ;;  %v752_v8 = vpack.c.bf16 (!%p114_p2), %v184_v7, %v183_v6  ;;  %v185_v9 = vld [vmem:[%s948_s1 + $0x30] sm:$0xff] (!%p114_p2)  ;;  %v186_v10 = vld [vmem:[%s948_s1 + $0x38] sm:$0xff] (!%p114_p2) }
   0x8   : > { %745 = vmatprep.subr.bf16.mxu0 (!%p114_p2), %v744_v3  ;;  %760 = vmatprep.subr.bf16.mxu1 (!%p114_p2), %v744_v3  ;;  %v756_v13 = vpack.c.bf16 (!%p114_p2), %v186_v10, %v185_v9 }
   0x9   : > { %747 = vmatpush3.bf16.msra.mxu0 (!%p114_p2), %v744_v3  ;;  %764 = vmatpush3.bf16.msra.mxu1 (!%p114_p2), %v744_v3 }
   0xa   : > { %749 = vmatprep.subr.bf16.mxu0 (!%p114_p2), %v748_v5  ;;  %761 = vmatprep.subr.bf16.mxu1 (!%p114_p2), %v748_v5 }
   0xd   : > { %s951_s17 = smov (!%p136_p3, %s602_s17), 127  ;;  %751 = vmatpush3.bf16.msra.mxu0 %v748_v5  ;;  %765 = vmatpush3.bf16.msra.mxu1 %v748_v5 }
   0xe   : > { %s603_s24 = sshll.u32 %s951_s17, 3  ;;  %753 = vmatprep.subr.bf16.mxu0 %v752_v8  ;;  %762 = vmatprep.subr.bf16.mxu1 %v752_v8 }
   0xf   : > { %s839_s3 = scalar_lea.vmem %s947_s0, %s603_s24  ;;  %s910_s6 = scalar_lea.vmem %s949_s2, %s603_s24 }
  0x10   : > { %v147_v11 = vld [vmem:[%s839_s3] sm:$0xff]  ;;  %v148_v14 = vld [vmem:[%s839_s3 + $0x8] sm:$0xff]  ;;  %v149_v16 = vld [vmem:[%s839_s3 + $0x10] sm:$0xff] }
  0x11   : > { %v163_v12 = vld [vmem:[%s839_s3 + $0x80] sm:$0xff]  ;;  %696 = vmatprep.mubr.msk.f32.mxu0 %vm187_vm0, %v147_v11  ;;  %755 = vmatpush3.bf16.msra.mxu0 %v752_v8  ;;  %v164_v15 = vld [vmem:[%s839_s3 + $0x88] sm:$0xff]  ;;  %v165_v17 = vld [vmem:[%s839_s3 + $0x90] sm:$0xff] }
  0x12   : > { %720 = vmatprep.mubr.msk.f32.mxu1 %vm187_vm0, %v163_v12  ;;  %766 = vmatpush3.bf16.msra.mxu1 %v752_v8  ;;  %v150_v18 = vld [vmem:[%s839_s3 + $0x18] sm:$0xff]  ;;  %v151_v20 = vld [vmem:[%s839_s3 + $0x20] sm:$0xff]  ;;  %v152_v22 = vld [vmem:[%s839_s3 + $0x28] sm:$0xff] }
  0x13   : > { %757 = vmatprep.subr.bf16.mxu0 %v756_v13  ;;  %763 = vmatprep.subr.bf16.mxu1 %v756_v13  ;;  %v166_v19 = vld [vmem:[%s839_s3 + $0x98] sm:$0xff]  ;;  %v167_v21 = vld [vmem:[%s839_s3 + $0xa0] sm:$0xff]  ;;  %v168_v23 = vld [vmem:[%s839_s3 + $0xa8] sm:$0xff] }
  0x14   : > { %v153_v24 = vld [vmem:[%s839_s3 + $0x30] sm:$0xff]  ;;  %v154_v26 = vld [vmem:[%s839_s3 + $0x38] sm:$0xff]  ;;  %v155_v28 = vld [vmem:[%s839_s3 + $0x40] sm:$0xff] }
  0x15   : > { %759 = vmatpush3.bf16.msra.mxu0 %v756_v13  ;;  %v169_v25 = vld [vmem:[%s839_s3 + $0xb0] sm:$0xff]  ;;  %v170_v27 = vld [vmem:[%s839_s3 + $0xb8] sm:$0xff]  ;;  %v171_v29 = vld [vmem:[%s839_s3 + $0xc0] sm:$0xff] }
  0x16   : > { %767 = vmatpush3.bf16.msra.mxu1 %v756_v13  ;;  %v156_v30 = vld [vmem:[%s839_s3 + $0x48] sm:$0xff]  ;;  %v157_v32 = vld [vmem:[%s839_s3 + $0x50] sm:$0xff]  ;;  %v158_v34 = vld [vmem:[%s839_s3 + $0x58] sm:$0xff] }
  0x17   : > { %v172_v31 = vld [vmem:[%s839_s3 + $0xc8] sm:$0xff]  ;;  %v173_v33 = vld [vmem:[%s839_s3 + $0xd0] sm:$0xff]  ;;  %v174_v35 = vld [vmem:[%s839_s3 + $0xd8] sm:$0xff] }
  0x18   : > { %697 = vmatmul.mubr.msk.f32.vlgmr.msra.gmra.mrb[0].mxu0 %vm187_vm0, %v148_v14  ;;  %v159_v36 = vld [vmem:[%s839_s3 + $0x60] sm:$0xff]  ;;  %v160_v38 = vld [vmem:[%s839_s3 + $0x68] sm:$0xff]  ;;  %v161_v40 = vld [vmem:[%s839_s3 + $0x70] sm:$0xff] }
  0x19   : > { %721 = vmatmul.mubr.msk.f32.vlgmr.msra.gmra.mrb[0].mxu1 %vm187_vm0, %v164_v15  ;;  %699 = vmatprep.mubr.msk.f32.mxu0 %vm187_vm0, %v149_v16  ;;  %v175_v37 = vld [vmem:[%s839_s3 + $0xe0] sm:$0xff]  ;;  %v176_v39 = vld [vmem:[%s839_s3 + $0xe8] sm:$0xff]  ;;  %v177_v41 = vld [vmem:[%s839_s3 + $0xf0] sm:$0xff] }
  0x1a   : > { %723 = vmatprep.mubr.msk.f32.mxu1 %vm187_vm0, %v165_v17  ;;  %v162_v42 = vld [vmem:[%s839_s3 + $0x78] sm:$0xff] }
  0x1b   : > { %v178_v43 = vld [vmem:[%s839_s3 + $0xf8] sm:$0xff] }
  0x1c   : > { %700 = vmatmul.mubr.msk.f32.gmra.mrb[2].mxu0 %vm187_vm0, %v150_v18 }
  0x1d   : > { %724 = vmatmul.mubr.msk.f32.gmra.mrb[2].mxu1 %vm187_vm0, %v166_v19  ;;  %702 = vmatprep.mubr.msk.f32.mxu0 %vm187_vm0, %v151_v20 }
  0x1e   : > { %726 = vmatprep.mubr.msk.f32.mxu1 %vm187_vm0, %v167_v21 }
  0x20   : > { %703 = vmatmul.mubr.msk.f32.gmra.mrb[4].mxu0 %vm187_vm0, %v152_v22 }
  0x21   : > { %727 = vmatmul.mubr.msk.f32.gmra.mrb[4].mxu1 %vm187_vm0, %v168_v23  ;;  %705 = vmatprep.mubr.msk.f32.mxu0 %vm187_vm0, %v153_v24 }
  0x22   : > { %729 = vmatprep.mubr.msk.f32.mxu1 %vm187_vm0, %v169_v25 }
  0x24   : > { %706 = vmatmul.mubr.msk.f32.gmra.mrb[6].mxu0 %vm187_vm0, %v154_v26 }
  0x25   : > { %730 = vmatmul.mubr.msk.f32.gmra.mrb[6].mxu1 %vm187_vm0, %v170_v27  ;;  %708 = vmatprep.mubr.msk.f32.mxu0 %vm187_vm0, %v155_v28 }
  0x26   : > { %732 = vmatprep.mubr.msk.f32.mxu1 %vm187_vm0, %v171_v29 }
  0x28   : > { %709 = vmatmul.mubr.msk.f32.gmra.mrb[8].mxu0 %vm187_vm0, %v156_v30 }
  0x29   : > { %733 = vmatmul.mubr.msk.f32.gmra.mrb[8].mxu1 %vm187_vm0, %v172_v31  ;;  %711 = vmatprep.mubr.msk.f32.mxu0 %vm187_vm0, %v157_v32 }
  0x2a   : > { %735 = vmatprep.mubr.msk.f32.mxu1 %vm187_vm0, %v173_v33 }
  0x2c   : > { %712 = vmatmul.mubr.msk.f32.gmra.mrb[10].mxu0 %vm187_vm0, %v158_v34 }
  0x2d   : > { %736 = vmatmul.mubr.msk.f32.gmra.mrb[10].mxu1 %vm187_vm0, %v174_v35  ;;  %714 = vmatprep.mubr.msk.f32.mxu0 %vm187_vm0, %v159_v36 }
  0x2e   : > { %738 = vmatprep.mubr.msk.f32.mxu1 %vm187_vm0, %v175_v37 }
  0x30   : > { %715 = vmatmul.mubr.msk.f32.gmra.mrb[12].mxu0 %vm187_vm0, %v160_v38 }
  0x31   : > { %739 = vmatmul.mubr.msk.f32.gmra.mrb[12].mxu1 %vm187_vm0, %v176_v39  ;;  %717 = vmatprep.mubr.msk.f32.mxu0 %vm187_vm0, %v161_v40 }
  0x32   : > { %741 = vmatprep.mubr.msk.f32.mxu1 %vm187_vm0, %v177_v41 }
  0x34   : > { %718 = vmatmul.mubr.msk.f32.gmra.mrb[14].mxu0 %vm187_vm0, %v162_v42 }
  0x35   : > { %742 = vmatmul.mubr.msk.f32.gmra.mrb[14].mxu1 %vm187_vm0, %v178_v43 }
  0xeb   : > { %v698_v44 = vpop.f32.mrb[0].mxu0 }
  0xec   : > { %v722_v45 = vpop.f32.mrb[0].mxu1  ;;  %510 = vst [vmem:[%s910_s6 + $0x8] sm:$0xff] %v698_v44  ;;  %v350_v46 = vpop.f32.mrb[1].mxu0 }
  0xed   : > { %526 = vst [vmem:[%s910_s6 + $0x88] sm:$0xff] %v722_v45  ;;  %v430_v47 = vpop.f32.mrb[1].mxu1  ;;  %509 = vst [vmem:[%s910_s6] sm:$0xff] %v350_v46 }
  0xee   : > { %525 = vst [vmem:[%s910_s6 + $0x80] sm:$0xff] %v430_v47 }
  0xef   : > { %v701_v48 = vpop.f32.mrb[2].mxu0 }
  0xf0   : > { %v725_v49 = vpop.f32.mrb[2].mxu1  ;;  %512 = vst [vmem:[%s910_s6 + $0x18] sm:$0xff] %v701_v48  ;;  %v360_v50 = vpop.f32.mrb[3].mxu0 }
  0xf1   : > { %528 = vst [vmem:[%s910_s6 + $0x98] sm:$0xff] %v725_v49  ;;  %v440_v51 = vpop.f32.mrb[3].mxu1  ;;  %511 = vst [vmem:[%s910_s6 + $0x10] sm:$0xff] %v360_v50 }
  0xf2   : > { %527 = vst [vmem:[%s910_s6 + $0x90] sm:$0xff] %v440_v51 }
  0xf3   : > { %v704_v52 = vpop.f32.mrb[4].mxu0 }
  0xf4   : > { %v728_v53 = vpop.f32.mrb[4].mxu1  ;;  %514 = vst [vmem:[%s910_s6 + $0x28] sm:$0xff] %v704_v52  ;;  %v370_v54 = vpop.f32.mrb[5].mxu0 }
  0xf5   : > { %530 = vst [vmem:[%s910_s6 + $0xa8] sm:$0xff] %v728_v53  ;;  %v450_v55 = vpop.f32.mrb[5].mxu1  ;;  %513 = vst [vmem:[%s910_s6 + $0x20] sm:$0xff] %v370_v54 }
  0xf6   : > { %529 = vst [vmem:[%s910_s6 + $0xa0] sm:$0xff] %v450_v55 }
  0xf7   : > { %v707_v56 = vpop.f32.mrb[6].mxu0 }
  0xf8   : > { %v731_v57 = vpop.f32.mrb[6].mxu1  ;;  %516 = vst [vmem:[%s910_s6 + $0x38] sm:$0xff] %v707_v56  ;;  %v380_v58 = vpop.f32.mrb[7].mxu0 }
  0xf9   : > { %532 = vst [vmem:[%s910_s6 + $0xb8] sm:$0xff] %v731_v57  ;;  %v460_v59 = vpop.f32.mrb[7].mxu1  ;;  %515 = vst [vmem:[%s910_s6 + $0x30] sm:$0xff] %v380_v58 }
  0xfa   : > { %531 = vst [vmem:[%s910_s6 + $0xb0] sm:$0xff] %v460_v59 }
  0xfb   : > { %v710_v60 = vpop.f32.mrb[8].mxu0 }
  0xfc   : > { %v734_v61 = vpop.f32.mrb[8].mxu1  ;;  %518 = vst [vmem:[%s910_s6 + $0x48] sm:$0xff] %v710_v60  ;;  %v390_v62 = vpop.f32.mrb[9].mxu0 }
  0xfd   : > { %534 = vst [vmem:[%s910_s6 + $0xc8] sm:$0xff] %v734_v61  ;;  %v470_v63 = vpop.f32.mrb[9].mxu1  ;;  %517 = vst [vmem:[%s910_s6 + $0x40] sm:$0xff] %v390_v62 }
  0xfe   : > { %533 = vst [vmem:[%s910_s6 + $0xc0] sm:$0xff] %v470_v63 }
  0xff   : > { %v713_v0 = vpop.f32.mrb[10].mxu0 }
 0x100   : > { %v737_v1 = vpop.f32.mrb[10].mxu1  ;;  %520 = vst [vmem:[%s910_s6 + $0x58] sm:$0xff] %v713_v0  ;;  %v400_v2 = vpop.f32.mrb[11].mxu0 }
 0x101   : > { %536 = vst [vmem:[%s910_s6 + $0xd8] sm:$0xff] %v737_v1  ;;  %v480_v3 = vpop.f32.mrb[11].mxu1  ;;  %519 = vst [vmem:[%s910_s6 + $0x50] sm:$0xff] %v400_v2 }
 0x102   : > { %535 = vst [vmem:[%s910_s6 + $0xd0] sm:$0xff] %v480_v3 }
 0x103   : > { %v716_v4 = vpop.f32.mrb[12].mxu0 }
 0x104   : > { %v740_v5 = vpop.f32.mrb[12].mxu1  ;;  %522 = vst [vmem:[%s910_s6 + $0x68] sm:$0xff] %v716_v4  ;;  %v410_v6 = vpop.f32.mrb[13].mxu0 }
 0x105   : > { %538 = vst [vmem:[%s910_s6 + $0xe8] sm:$0xff] %v740_v5  ;;  %v490_v7 = vpop.f32.mrb[13].mxu1  ;;  %521 = vst [vmem:[%s910_s6 + $0x60] sm:$0xff] %v410_v6 }
 0x106   : > { %537 = vst [vmem:[%s910_s6 + $0xe0] sm:$0xff] %v490_v7 }
 0x107   : > { %v719_v8 = vpop.f32.mrb[14].mxu0 }
 0x108   : > { %v743_v9 = vpop.f32.mrb[14].mxu1  ;;  %524 = vst [vmem:[%s910_s6 + $0x78] sm:$0xff] %v719_v8  ;;  %v420_v10 = vpop.f32.mrb[15].mxu0 }
 0x109   : > { %540 = vst [vmem:[%s910_s6 + $0xf8] sm:$0xff] %v743_v9  ;;  %v500_v11 = vpop.f32.mrb[15].mxu1  ;;  %523 = vst [vmem:[%s910_s6 + $0x70] sm:$0xff] %v420_v10 }
 0x10a   : > { %539 = vst [vmem:[%s910_s6 + $0xf0] sm:$0xff] %v500_v11 }
 0x10b PF: > { %s12_s9 = sadd.s32 1, %s782_s9  }
 0x10c   : > { %p9_p4 = scmp.ge.s32.totalorder %s12_s9, 6  }
 0x10e   :  { %11 = sbr.rel (!%p9_p4) target bundleno = 1 (0x1), region = 58 }

</bundles_post_ra>
